<compile_context>
chip_gen: v5e
topology: v5e:2x2
jax: 0.10.0
libtpu: 0.0.40
codegen_flags: <defaults>
</compile_context>

<pallas_src>
import functools
import math

import jax
import jax.numpy as jnp
from jax import lax
from jax.experimental import pallas as pl
from jax.experimental.pallas import tpu as pltpu


def mqa_kernel(x_ref, k_ref, v_ref, wq_ref, wo_ref, bo_ref, o_ref,
               qf_ref, m_ref, l_ref, acc_ref, *opt_scratch,
               num_heads, head_dim, tq, tk, exp_dtype):
    """Grid = (B, num_q_tiles, num_kv_tiles); kv is the sequential reduction axis.

    x_ref  : (1, TQ, E)   query-side input rows for this q tile (compute dtype)
    k_ref  : (1, N, hd)   shared K, full sequence, VMEM-resident per batch
    v_ref  : (1, N, hd)   shared V, full sequence, VMEM-resident per batch
    wq_ref : (E, C)       query projection (transposed Linear weight)
    wo_ref : (C, C)       output projection
    bo_ref : (1, C)       output projection bias (f32)
    o_ref  : (1, TQ, C)   output block (written once, in the epilogue)
    qf_ref : (H*TQ, hd)   folded, pre-scaled Q (persistent per q tile)
    m_ref  : (H*TQ, 1)    running max (f32)
    l_ref  : (H*TQ, 1)    running sum (f32)
    acc_ref: (H*TQ, hd)   un-normalized accumulator (f32)
    opt_scratch: optional (TQ, C) buffer for the packed epilogue (hd % 128 == 0)
    """
    qi = pl.program_id(1)
    ki = pl.program_id(2)
    H, hd = num_heads, head_dim
    inv_sqrt_hd = 1.0 / math.sqrt(hd)

    # ---------- per-q-tile prologue: project Q once, fold heads, pre-scale ----------
    @pl.when(ki == 0)
    def _init():
        xq = x_ref[0]                                                    # (TQ, E)
        q = jnp.dot(xq, wq_ref[...],
                    preferred_element_type=jnp.float32) * inv_sqrt_hd    # (TQ, C) f32
        for h in range(H):   # static unroll; lane/sublane slices, no transposes
            qf_ref[h * tq:(h + 1) * tq, :] = (
                q[:, h * hd:(h + 1) * hd].astype(qf_ref.dtype))
        m_ref[...] = jnp.full_like(m_ref, -1e30)
        l_ref[...] = jnp.zeros_like(l_ref)
        acc_ref[...] = jnp.zeros_like(acc_ref)

    start = pl.multiple_of(ki * tk, tk)

    def _attend(masked):
        k = k_ref[0, pl.ds(start, tk), :]                                # (TK, hd)
        v = v_ref[0, pl.ds(start, tk), :]                                # (TK, hd)
        qf = qf_ref[...]                                                 # (H*TQ, hd)

        # One MXU matmul for all heads (K is shared in MQA): (H*TQ, TK).
        # TODO(synk): if a bundle dump shows a per-step vxpose for the K^T
        # contraction, pre-transpose K to (B, hd, N) in the wrapper instead.
        s = lax.dot_general(qf, k, (((1,), (1,)), ((), ())),
                            preferred_element_type=jnp.float32)

        if masked:
            # Causal mask, generated in-kernel, only on diagonal-straddling tiles.
            rows = lax.broadcasted_iota(jnp.int32, s.shape, 0) & (tq - 1)  # tq pow2
            cols = lax.broadcasted_iota(jnp.int32, s.shape, 1)
            above_diag = (ki * tk + cols) > (qi * tq + rows)
            s = jnp.where(above_diag, -1e30, s)

        # Online softmax (stats in f32; exp optionally bf16 on v6e/v7x).
        m_prev = m_ref[...]
        m_new = jnp.maximum(m_prev, jnp.max(s, axis=-1, keepdims=True))
        alpha = jnp.exp(m_prev - m_new)
        p = jnp.exp((s - m_new).astype(exp_dtype))                       # (H*TQ, TK)
        if masked:
            # Explicitly zero masked probs so fully-masked rows are exact even
            # before m becomes finite (no reliance on kv-ordering invariants).
            p = jnp.where(above_diag, 0.0, p)
        l_ref[...] = alpha * l_ref[...] + jnp.sum(
            p, axis=-1, keepdims=True, dtype=jnp.float32)
        acc_ref[...] = alpha * acc_ref[...] + jnp.dot(
            p.astype(v.dtype), v, preferred_element_type=jnp.float32)
        m_ref[...] = m_new

    # kv tiles strictly above the causal diagonal are skipped entirely.
    needed = ki * tk < (qi + 1) * tq               # tile overlaps the causal region
    below_diag = (ki + 1) * tk <= qi * tq + 1      # tile is fully unmasked

    @pl.when(jnp.logical_and(needed, below_diag))
    def _no_mask():
        _attend(masked=False)

    @pl.when(jnp.logical_and(needed, jnp.logical_not(below_diag)))
    def _straddling():
        _attend(masked=True)

    # ---------- per-q-tile epilogue: normalize once, project, lane-dense store ----------
    @pl.when(ki == pl.num_programs(2) - 1)
    def _epilogue():
        # Exact reciprocal (training-grade numerics): runs once per q tile.
        z = acc_ref[...] * pl.reciprocal(l_ref[...], approx=False)       # (H*TQ, hd) f32
        C = o_ref.shape[-1]
        if opt_scratch:
            # head_dim % 128 == 0: lane-aligned pack of head slabs, then one
            # full-depth (TQ, C) @ (C, C) matmul (better MXU utilization).
            z_ref = opt_scratch[0]
            for h in range(H):
                z_ref[:, h * hd:(h + 1) * hd] = (
                    z[h * tq:(h + 1) * tq, :].astype(z_ref.dtype))
            out = jnp.dot(z_ref[...], wo_ref[...],
                          preferred_element_type=jnp.float32)
        else:
            # Small head_dim: per-head partial matmuls, summed in f32.
            out = jnp.zeros((tq, C), jnp.float32)
            for h in range(H):
                out += jnp.dot(z[h * tq:(h + 1) * tq, :].astype(wo_ref.dtype),
                               wo_ref[h * hd:(h + 1) * hd, :],
                               preferred_element_type=jnp.float32)
        out = out + bo_ref[...]                                          # (+ bias, f32)
        o_ref[0] = out.astype(o_ref.dtype)


def multi_query_attention(x, wq_t, wk_t, wv_t, wo_t, bo, *, num_heads,
                          block_q=128, block_k=512,
                          compute_dtype=jnp.bfloat16, exp_dtype=jnp.float32):
    """x: (B, N, E); weights stored as (in, out). Returns (B, N, C).

    compute_dtype: MXU-operand dtype.  bf16 strongly recommended for f32
        models (4-8x cheaper MXU passes, half the K/V/weight DMA bytes);
        accumulation and softmax statistics stay f32 regardless.
    exp_dtype: dtype fed to the softmax exp.  Keep f32 on v5e (no bf16 EUP);
        bf16 roughly doubles EUP exp throughput on v6e/v7x.
    block_k: sweep up to 512 on v5e/v6e; keep smaller on v7x if VMEM-bound.
    """
    B, N, E = x.shape
    C = wq_t.shape[1]
    assert C % num_heads == 0
    head_dim = C // num_heads

    tq = min(block_q, N)
    tk = min(block_k, N)
    assert N % tq == 0 and N % tk == 0, "sequence length must divide tile sizes"
    assert tq & (tq - 1) == 0, "block_q must be a power of two (mask uses row & (tq-1))"
    assert tk % 8 == 0, "block_k must be sublane-aligned"
    n_q, n_kv = N // tq, N // tk

    # K/V are shared across all heads AND needed by every q tile: project them
    # once here (one big XLA matmul) and hand the kernel the results, cast to
    # the MXU compute dtype.  They are kept VMEM-resident per batch below.
    k_all = jnp.dot(x, wk_t).astype(compute_dtype)        # (B, N, head_dim)
    v_all = jnp.dot(x, wv_t).astype(compute_dtype)        # (B, N, head_dim)
    xc = x.astype(compute_dtype)
    wq_c = wq_t.astype(compute_dtype)
    wo_c = wo_t.astype(compute_dtype)
    bo2 = bo.reshape(1, C).astype(jnp.float32)

    packed_epilogue = (head_dim % 128 == 0)

    scratch_shapes = [
        pltpu.VMEM((num_heads * tq, head_dim), compute_dtype),   # folded, scaled Q
        pltpu.VMEM((num_heads * tq, 1), jnp.float32),            # running max m
        pltpu.VMEM((num_heads * tq, 1), jnp.float32),            # running sum l
        pltpu.VMEM((num_heads * tq, head_dim), jnp.float32),     # un-normalized acc
    ]
    if packed_epilogue:
        scratch_shapes.append(pltpu.VMEM((tq, C), compute_dtype))

    # VMEM budget derived from the actual footprint (never hard-code 64 MiB:
    # that is all of v7x's physical VMEM per TensorCore).
    cb = jnp.dtype(compute_dtype).itemsize
    ob = jnp.dtype(x.dtype).itemsize
    est = (
        2 * 2 * N * head_dim * cb                      # K + V resident per batch (2 buffers)
        + 2 * tq * E * cb                              # x tile (double-buffered)
        + 2 * (E * C + C * C) * cb + 2 * C * 4         # weights + bias (double-buffered)
        + 2 * tq * C * ob                              # output tile (double-buffered)
        + num_heads * tq * (head_dim * cb + 8 + head_dim * 4)   # qf + m + l + acc
        + (tq * C * cb if packed_epilogue else 0)
    )
    est = int(1.25 * est)
    vmem_limit = None
    if est > 32 * 1024 * 1024:
        try:
            cap = int(pltpu.get_tpu_info().vmem_capacity_bytes)
        except Exception:
            cap = 64 * 1024 * 1024                     # conservative (v7x per-core)
        vmem_limit = min(est, (3 * cap) // 4)
    # TODO(synk): on v7x with very large C, hoist the output projection back to
    # XLA (or mark the constant weight BlockSpecs pipeline_mode=pl.Buffered(1))
    # so the resident (C, C) weight does not dominate the 64 MiB VMEM.

    kernel = functools.partial(mqa_kernel, num_heads=num_heads,
                               head_dim=head_dim, tq=tq, tk=tk,
                               exp_dtype=exp_dtype)

    # TODO(synk): the grid still enumerates (and skips) kv tiles above the
    # causal diagonal; a splash-style per-(b,qi) kv schedule via scalar
    # prefetch would remove that per-step overhead for long sequences.
    return pl.pallas_call(
        kernel,
        out_shape=jax.ShapeDtypeStruct((B, N, C), x.dtype),
        grid_spec=pltpu.PrefetchScalarGridSpec(
            num_scalar_prefetch=0,
            grid=(B, n_q, n_kv),
            in_specs=[
                pl.BlockSpec((1, tq, E), lambda b, qi, ki: (b, qi, 0)),       # x (q rows)
                pl.BlockSpec((1, N, head_dim), lambda b, qi, ki: (b, 0, 0)),  # K resident/batch
                pl.BlockSpec((1, N, head_dim), lambda b, qi, ki: (b, 0, 0)),  # V resident/batch
                pl.BlockSpec((E, C), lambda b, qi, ki: (0, 0)),               # Wq^T
                pl.BlockSpec((C, C), lambda b, qi, ki: (0, 0)),               # Wo^T
                pl.BlockSpec((1, C), lambda b, qi, ki: (0, 0)),               # bo
            ],
            out_specs=pl.BlockSpec((1, tq, C), lambda b, qi, ki: (b, qi, 0)),
            scratch_shapes=scratch_shapes,
        ),
        compiler_params=pltpu.CompilerParams(
            # batch & q-tile axes are independent ("parallel") so both v7x
            # TensorCores get work whenever B * n_q >= 2; kv is the reduction.
            dimension_semantics=("parallel", "parallel", "arbitrary"),
            vmem_limit_bytes=vmem_limit,
        ),
    )(xc, k_all, v_all, wq_c, wo_c, bo2)


def reference_mqa(x, wq_t, wk_t, wv_t, wo_t, bo, *, num_heads):
    """Pure-JAX reference mirroring the PyTorch forward (eval mode)."""
    B, N, E = x.shape
    C = wq_t.shape[1]
    hd = C // num_heads
    q = x @ wq_t                                                    # (B, N, C)
    k = x @ wk_t                                                    # (B, N, hd)
    v = x @ wv_t                                                    # (B, N, hd)
    q = q.reshape(B, N, num_heads, hd).transpose(0, 2, 1, 3)        # (B, H, N, hd)
    scores = jnp.einsum('bhnd,bmd->bhnm', q, k)                     # (B, H, N, N)
    mask = jnp.triu(jnp.ones((N, N), bool), k=1)
    scores = jnp.where(mask, -jnp.inf, scores)
    w = jax.nn.softmax(scores / math.sqrt(hd), axis=-1)
    z = jnp.einsum('bhnm,bmd->bhnd', w, v)                          # (B, H, N, hd)
    z = z.transpose(0, 2, 1, 3).reshape(B, N, C)
    return z @ wo_t + bo


if __name__ == "__main__":
    # Small shapes consistent with the module's forward; tiles chosen so the
    # flash loop, causal skip, no-mask/masked paths, and epilogue are exercised.
    B, N = 2, 64                # batch, num_tokens (== context_length)
    token_emb_dim = 32
    context_dim = 64
    num_heads = 4
    head_dim = context_dim // num_heads

    key = jax.random.PRNGKey(0)
    kx, kq, kk, kv, ko, kb = jax.random.split(key, 6)

    x = jax.random.normal(kx, (B, N, token_emb_dim), dtype=jnp.float32)

    # Deterministic parameter init (stored transposed: (in_features, out_features)).
    def lin_init(k, fan_in, fan_out):
        bound = 1.0 / math.sqrt(fan_in)
        return jax.random.uniform(k, (fan_in, fan_out), jnp.float32, -bound, bound)

    wq_t = lin_init(kq, token_emb_dim, context_dim)
    wk_t = lin_init(kk, token_emb_dim, head_dim)
    wv_t = lin_init(kv, token_emb_dim, head_dim)
    wo_t = lin_init(ko, context_dim, context_dim)
    bo = jax.random.uniform(kb, (context_dim,), jnp.float32,
                            -1.0 / math.sqrt(context_dim),
                            1.0 / math.sqrt(context_dim))

    ref = reference_mqa(x, wq_t, wk_t, wv_t, wo_t, bo, num_heads=num_heads)

    # 1) f32 MXU operands: numerically tight check of the kernel structure.
    out_f32 = multi_query_attention(x, wq_t, wk_t, wv_t, wo_t, bo,
                                    num_heads=num_heads, block_q=32, block_k=32,
                                    compute_dtype=jnp.float32)
    out_f32 = jax.block_until_ready(out_f32)
    assert out_f32.shape == (B, N, context_dim)
    err32 = float(jnp.max(jnp.abs(out_f32 - ref)))
    assert jnp.allclose(out_f32, ref, atol=2e-4, rtol=2e-4), f"f32 mismatch: {err32}"

    # 2) bf16 MXU operands (default, performance-recommended): looser tolerance
    #    accounts for bf16 rounding of the MXU operands (accumulation is f32).
    out_bf16 = multi_query_attention(x, wq_t, wk_t, wv_t, wo_t, bo,
                                     num_heads=num_heads, block_q=32, block_k=32)
    out_bf16 = jax.block_until_ready(out_bf16)
    assert out_bf16.shape == (B, N, context_dim)
    err16 = float(jnp.max(jnp.abs(out_bf16 - ref)))
    assert jnp.allclose(out_bf16, ref, atol=8e-2, rtol=8e-2), f"bf16 mismatch: {err16}"

    print("KERNEL_OK")
</pallas_src>

<mosaic_0001>
module attributes {stable_mosaic.version = 11 : i64} {
  func.func @mqa_kernel(%arg0: i32, %arg1: i32, %arg2: i32, %arg3: memref<1x32x32xf32, #tpu.memory_space<vmem>>, %arg4: memref<1x64x16xf32, #tpu.memory_space<vmem>>, %arg5: memref<1x64x16xf32, #tpu.memory_space<vmem>>, %arg6: memref<32x64xf32, #tpu.memory_space<vmem>>, %arg7: memref<64x64xf32, #tpu.memory_space<vmem>>, %arg8: memref<1x64xf32, #tpu.memory_space<vmem>>, %arg9: memref<1x32x64xf32, #tpu.memory_space<vmem>>, %arg10: memref<128x16xf32, #tpu.memory_space<vmem>>, %arg11: memref<128x1xf32, #tpu.memory_space<vmem>>, %arg12: memref<128x1xf32, #tpu.memory_space<vmem>>, %arg13: memref<128x16xf32, #tpu.memory_space<vmem>>) attributes {dimension_semantics = [#tpu.dimension_semantics<parallel>, #tpu.dimension_semantics<parallel>, #tpu.dimension_semantics<arbitrary>], iteration_bounds = array<i64: 2, 2, 2>, scalar_prefetch = 0 : i64, scratch_operands = 4 : i64, tpu.core_type = #tpu.core_type<tc>, window_params = [{transform_indices = @transform_0, window_bounds = array<i64: 1, 32, 32>}, {transform_indices = @transform_1, window_bounds = array<i64: 1, 64, 16>}, {transform_indices = @transform_2, window_bounds = array<i64: 1, 64, 16>}, {pipeline_mode = #tpu.pipeline_mode<synchronous>, transform_indices = @transform_3, window_bounds = array<i64: 32, 64>}, {pipeline_mode = #tpu.pipeline_mode<synchronous>, transform_indices = @transform_4, window_bounds = array<i64: 64, 64>}, {pipeline_mode = #tpu.pipeline_mode<synchronous>, transform_indices = @transform_5, window_bounds = array<i64: 1, 64>}, {transform_indices = @transform_6, window_bounds = array<i64: 1, 32, 64>}]} {
    %c0_i32 = arith.constant 0 : i32
    %0 = arith.cmpi eq, %arg2, %c0_i32 : i32
    %1 = arith.extui %0 : i1 to i32
    %c0_i32_0 = arith.constant 0 : i32
    %2 = arith.cmpi ne, %1, %c0_i32_0 : i32
    scf.if %2 {
      %c0 = arith.constant 0 : index
      %c0_11 = arith.constant 0 : index
      %c0_12 = arith.constant 0 : index
      %24 = vector.load %arg3[%c0, %c0_11, %c0_12] : memref<1x32x32xf32, #tpu.memory_space<vmem>>, vector<1x32x32xf32>
      %25 = vector.shape_cast %24 : vector<1x32x32xf32> to vector<32x32xf32>
      %c0_13 = arith.constant 0 : index
      %c0_14 = arith.constant 0 : index
      %26 = vector.load %arg6[%c0_13, %c0_14] : memref<32x64xf32, #tpu.memory_space<vmem>>, vector<32x64xf32>
      %cst = arith.constant dense<0.000000e+00> : vector<32x64xf32>
      %27 = tpu.matmul %25, %26, %cst {dimension_numbers = #tpu.dot_dimension_numbers<[1], [0], [0], [1], [0, 0, 1, 1], [], []>} : vector<32x32xf32>, vector<32x64xf32>, vector<32x64xf32> -> vector<32x64xf32>
      %cst_15 = arith.constant 2.500000e-01 : f32
      %28 = vector.broadcast %cst_15 : f32 to vector<32x64xf32>
      %29 = arith.mulf %27, %28 : vector<32x64xf32>
      %30 = vector.extract_strided_slice %29 {offsets = [0, 0], sizes = [32, 16], strides = [1, 1]} : vector<32x64xf32> to vector<32x16xf32>
      %c0_16 = arith.constant 0 : index
      %c0_17 = arith.constant 0 : index
      %31 = vector.load %arg10[%c0_16, %c0_17] : memref<128x16xf32, #tpu.memory_space<vmem>>, vector<32x16xf32>
      tpu.vector_store %arg10[%c0_16, %c0_17], %30 {strides = array<i32>} : memref<128x16xf32, #tpu.memory_space<vmem>>, vector<32x16xf32>,
      %32 = vector.extract_strided_slice %29 {offsets = [0, 16], sizes = [32, 16], strides = [1, 1]} : vector<32x64xf32> to vector<32x16xf32>
      %c32 = arith.constant 32 : index
      %c0_18 = arith.constant 0 : index
      %33 = vector.load %arg10[%c32, %c0_18] : memref<128x16xf32, #tpu.memory_space<vmem>>, vector<32x16xf32>
      tpu.vector_store %arg10[%c32, %c0_18], %32 {strides = array<i32>} : memref<128x16xf32, #tpu.memory_space<vmem>>, vector<32x16xf32>,
      %34 = vector.extract_strided_slice %29 {offsets = [0, 32], sizes = [32, 16], strides = [1, 1]} : vector<32x64xf32> to vector<32x16xf32>
      %c64 = arith.constant 64 : index
      %c0_19 = arith.constant 0 : index
      %35 = vector.load %arg10[%c64, %c0_19] : memref<128x16xf32, #tpu.memory_space<vmem>>, vector<32x16xf32>
      tpu.vector_store %arg10[%c64, %c0_19], %34 {strides = array<i32>} : memref<128x16xf32, #tpu.memory_space<vmem>>, vector<32x16xf32>,
      %36 = vector.extract_strided_slice %29 {offsets = [0, 48], sizes = [32, 16], strides = [1, 1]} : vector<32x64xf32> to vector<32x16xf32>
      %c96 = arith.constant 96 : index
      %c0_20 = arith.constant 0 : index
      %37 = vector.load %arg10[%c96, %c0_20] : memref<128x16xf32, #tpu.memory_space<vmem>>, vector<32x16xf32>
      tpu.vector_store %arg10[%c96, %c0_20], %36 {strides = array<i32>} : memref<128x16xf32, #tpu.memory_space<vmem>>, vector<32x16xf32>,
      %cst_21 = arith.constant -1.000000e+30 : f32
      %38 = vector.broadcast %cst_21 : f32 to vector<128x1xf32>
      %c0_22 = arith.constant 0 : index
      %c0_23 = arith.constant 0 : index
      %39 = vector.load %arg11[%c0_22, %c0_23] : memref<128x1xf32, #tpu.memory_space<vmem>>, vector<128x1xf32>
      tpu.vector_store %arg11[%c0_22, %c0_23], %38 {strides = array<i32>} : memref<128x1xf32, #tpu.memory_space<vmem>>, vector<128x1xf32>,
      %cst_24 = arith.constant 0.000000e+00 : f32
      %40 = vector.broadcast %cst_24 : f32 to vector<128x1xf32>
      %c0_25 = arith.constant 0 : index
      %c0_26 = arith.constant 0 : index
      %41 = vector.load %arg12[%c0_25, %c0_26] : memref<128x1xf32, #tpu.memory_space<vmem>>, vector<128x1xf32>
      tpu.vector_store %arg12[%c0_25, %c0_26], %40 {strides = array<i32>} : memref<128x1xf32, #tpu.memory_space<vmem>>, vector<128x1xf32>,
      %cst_27 = arith.constant 0.000000e+00 : f32
      %42 = vector.broadcast %cst_27 : f32 to vector<128x16xf32>
      %c0_28 = arith.constant 0 : index
      %c0_29 = arith.constant 0 : index
      %43 = vector.load %arg13[%c0_28, %c0_29] : memref<128x16xf32, #tpu.memory_space<vmem>>, vector<128x16xf32>
      tpu.vector_store %arg13[%c0_28, %c0_29], %42 {strides = array<i32>} : memref<128x16xf32, #tpu.memory_space<vmem>>, vector<128x16xf32>,
    } else {
    }
    %c32_i32 = arith.constant 32 : i32
    %3 = arith.muli %arg2, %c32_i32 : i32
    %4 = tpu.assume_multiple %3, 32 : i32
    %c32_i32_1 = arith.constant 32 : i32
    %5 = arith.muli %arg2, %c32_i32_1 : i32
    %c1_i32 = arith.constant 1 : i32
    %6 = arith.addi %arg1, %c1_i32 : i32
    %c32_i32_2 = arith.constant 32 : i32
    %7 = arith.muli %6, %c32_i32_2 : i32
    %8 = arith.cmpi slt, %5, %7 : i32
    %c1_i32_3 = arith.constant 1 : i32
    %9 = arith.addi %arg2, %c1_i32_3 : i32
    %c32_i32_4 = arith.constant 32 : i32
    %10 = arith.muli %9, %c32_i32_4 : i32
    %c32_i32_5 = arith.constant 32 : i32
    %11 = arith.muli %arg1, %c32_i32_5 : i32
    %c1_i32_6 = arith.constant 1 : i32
    %12 = arith.addi %11, %c1_i32_6 : i32
    %13 = arith.cmpi sle, %10, %12 : i32
    %14 = arith.andi %8, %13 : i1
    %15 = arith.extui %14 : i1 to i32
    %c0_i32_7 = arith.constant 0 : i32
    %16 = arith.cmpi ne, %15, %c0_i32_7 : i32
    scf.if %16 {
      %c0 = arith.constant 0 : index
      %24 = arith.index_cast %4 : i32 to index
      %c0_11 = arith.constant 0 : index
      %25 = vector.load %arg4[%c0, %24, %c0_11] : memref<1x64x16xf32, #tpu.memory_space<vmem>>, vector<1x32x16xf32>
      %26 = vector.shape_cast %25 : vector<1x32x16xf32> to vector<32x16xf32>
      %c0_12 = arith.constant 0 : index
      %27 = arith.index_cast %4 : i32 to index
      %c0_13 = arith.constant 0 : index
      %28 = vector.load %arg5[%c0_12, %27, %c0_13] : memref<1x64x16xf32, #tpu.memory_space<vmem>>, vector<1x32x16xf32>
      %29 = vector.shape_cast %28 : vector<1x32x16xf32> to vector<32x16xf32>
      %c0_14 = arith.constant 0 : index
      %c0_15 = arith.constant 0 : index
      %30 = vector.load %arg10[%c0_14, %c0_15] : memref<128x16xf32, #tpu.memory_space<vmem>>, vector<128x16xf32>
      %cst = arith.constant dense<0.000000e+00> : vector<128x32xf32>
      %31 = tpu.matmul %30, %26, %cst {dimension_numbers = #tpu.dot_dimension_numbers<[1], [1], [0], [0], [0, 0, 1, 0], [], []>} : vector<128x16xf32>, vector<32x16xf32>, vector<128x32xf32> -> vector<128x32xf32>
      %c0_16 = arith.constant 0 : index
      %c0_17 = arith.constant 0 : index
      %32 = vector.load %arg11[%c0_16, %c0_17] : memref<128x1xf32, #tpu.memory_space<vmem>>, vector<128x1xf32>
      %cst_18 = arith.constant dense<0xFF800000> : vector<128xf32>
      %33 = vector.multi_reduction <maximumf>, %31, %cst_18 [1] : vector<128x32xf32> to vector<128xf32>
      %34 = vector.shape_cast %33 : vector<128xf32> to vector<128x1xf32>
      %35 = arith.maximumf %32, %34 : vector<128x1xf32>
      %36 = arith.subf %32, %35 : vector<128x1xf32>
      %37 = math.exp %36 : vector<128x1xf32>
      %38 = vector.broadcast %35 : vector<128x1xf32> to vector<128x32xf32>
      %39 = arith.subf %31, %38 : vector<128x32xf32>
      %40 = math.exp %39 : vector<128x32xf32>
      %c0_19 = arith.constant 0 : index
      %c0_20 = arith.constant 0 : index
      %41 = vector.load %arg12[%c0_19, %c0_20] : memref<128x1xf32, #tpu.memory_space<vmem>>, vector<128x1xf32>
      %42 = arith.mulf %37, %41 : vector<128x1xf32>
      %cst_21 = arith.constant dense<0.000000e+00> : vector<128xf32>
      %43 = vector.multi_reduction <add>, %40, %cst_21 [1] : vector<128x32xf32> to vector<128xf32>
      %44 = vector.shape_cast %43 : vector<128xf32> to vector<128x1xf32>
      %45 = arith.addf %42, %44 : vector<128x1xf32>
      %c0_22 = arith.constant 0 : index
      %c0_23 = arith.constant 0 : index
      %46 = vector.load %arg12[%c0_22, %c0_23] : memref<128x1xf32, #tpu.memory_space<vmem>>, vector<128x1xf32>
      tpu.vector_store %arg12[%c0_22, %c0_23], %45 {strides = array<i32>} : memref<128x1xf32, #tpu.memory_space<vmem>>, vector<128x1xf32>,
      %c0_24 = arith.constant 0 : index
      %c0_25 = arith.constant 0 : index
      %47 = vector.load %arg13[%c0_24, %c0_25] : memref<128x16xf32, #tpu.memory_space<vmem>>, vector<128x16xf32>
      %48 = vector.broadcast %37 : vector<128x1xf32> to vector<128x16xf32>
      %49 = arith.mulf %48, %47 : vector<128x16xf32>
      %cst_26 = arith.constant dense<0.000000e+00> : vector<128x16xf32>
      %50 = tpu.matmul %40, %29, %cst_26 {dimension_numbers = #tpu.dot_dimension_numbers<[1], [0], [0], [1], [0, 0, 1, 1], [], []>} : vector<128x32xf32>, vector<32x16xf32>, vector<128x16xf32> -> vector<128x16xf32>
      %51 = arith.addf %49, %50 : vector<128x16xf32>
      %c0_27 = arith.constant 0 : index
      %c0_28 = arith.constant 0 : index
      %52 = vector.load %arg13[%c0_27, %c0_28] : memref<128x16xf32, #tpu.memory_space<vmem>>, vector<128x16xf32>
      tpu.vector_store %arg13[%c0_27, %c0_28], %51 {strides = array<i32>} : memref<128x16xf32, #tpu.memory_space<vmem>>, vector<128x16xf32>,
      %c0_29 = arith.constant 0 : index
      %c0_30 = arith.constant 0 : index
      %53 = vector.load %arg11[%c0_29, %c0_30] : memref<128x1xf32, #tpu.memory_space<vmem>>, vector<128x1xf32>
      tpu.vector_store %arg11[%c0_29, %c0_30], %35 {strides = array<i32>} : memref<128x1xf32, #tpu.memory_space<vmem>>, vector<128x1xf32>,
    } else {
    }
    %true = arith.constant true
    %17 = arith.xori %13, %true : i1
    %18 = arith.andi %8, %17 : i1
    %19 = arith.extui %18 : i1 to i32
    %c0_i32_8 = arith.constant 0 : i32
    %20 = arith.cmpi ne, %19, %c0_i32_8 : i32
    scf.if %20 {
      %c0 = arith.constant 0 : index
      %24 = arith.index_cast %4 : i32 to index
      %c0_11 = arith.constant 0 : index
      %25 = vector.load %arg4[%c0, %24, %c0_11] : memref<1x64x16xf32, #tpu.memory_space<vmem>>, vector<1x32x16xf32>
      %26 = vector.shape_cast %25 : vector<1x32x16xf32> to vector<32x16xf32>
      %c0_12 = arith.constant 0 : index
      %27 = arith.index_cast %4 : i32 to index
      %c0_13 = arith.constant 0 : index
      %28 = vector.load %arg5[%c0_12, %27, %c0_13] : memref<1x64x16xf32, #tpu.memory_space<vmem>>, vector<1x32x16xf32>
      %29 = vector.shape_cast %28 : vector<1x32x16xf32> to vector<32x16xf32>
      %c0_14 = arith.constant 0 : index
      %c0_15 = arith.constant 0 : index
      %30 = vector.load %arg10[%c0_14, %c0_15] : memref<128x16xf32, #tpu.memory_space<vmem>>, vector<128x16xf32>
      %cst = arith.constant dense<0.000000e+00> : vector<128x32xf32>
      %31 = tpu.matmul %30, %26, %cst {dimension_numbers = #tpu.dot_dimension_numbers<[1], [1], [0], [0], [0, 0, 1, 0], [], []>} : vector<128x16xf32>, vector<32x16xf32>, vector<128x32xf32> -> vector<128x32xf32>
      %32 = tpu.iota {dimensions = array<i32: 0>} : vector<128x32xi32>
      %c31_i32 = arith.constant 31 : i32
      %33 = vector.broadcast %c31_i32 : i32 to vector<128x32xi32>
      %34 = arith.andi %32, %33 : vector<128x32xi32>
      %35 = tpu.iota {dimensions = array<i32: 1>} : vector<128x32xi32>
      %c32_i32_16 = arith.constant 32 : i32
      %36 = arith.muli %arg2, %c32_i32_16 : i32
      %37 = vector.broadcast %36 : i32 to vector<128x32xi32>
      %38 = arith.addi %37, %35 : vector<128x32xi32>
      %c32_i32_17 = arith.constant 32 : i32
      %39 = arith.muli %arg1, %c32_i32_17 : i32
      %40 = vector.broadcast %39 : i32 to vector<128x32xi32>
      %41 = arith.addi %40, %34 : vector<128x32xi32>
      %42 = arith.cmpi sgt, %38, %41 : vector<128x32xi32>
      %cst_18 = arith.constant -1.000000e+30 : f32
      %43 = vector.broadcast %cst_18 : f32 to vector<128x32xf32>
      %44 = arith.select %42, %43, %31 : vector<128x32xi1>, vector<128x32xf32>
      %c0_19 = arith.constant 0 : index
      %c0_20 = arith.constant 0 : index
      %45 = vector.load %arg11[%c0_19, %c0_20] : memref<128x1xf32, #tpu.memory_space<vmem>>, vector<128x1xf32>
      %cst_21 = arith.constant dense<0xFF800000> : vector<128xf32>
      %46 = vector.multi_reduction <maximumf>, %44, %cst_21 [1] : vector<128x32xf32> to vector<128xf32>
      %47 = vector.shape_cast %46 : vector<128xf32> to vector<128x1xf32>
      %48 = arith.maximumf %45, %47 : vector<128x1xf32>
      %49 = arith.subf %45, %48 : vector<128x1xf32>
      %50 = math.exp %49 : vector<128x1xf32>
      %51 = vector.broadcast %48 : vector<128x1xf32> to vector<128x32xf32>
      %52 = arith.subf %44, %51 : vector<128x32xf32>
      %53 = math.exp %52 : vector<128x32xf32>
      %cst_22 = arith.constant 0.000000e+00 : f32
      %54 = vector.broadcast %cst_22 : f32 to vector<128x32xf32>
      %55 = arith.select %42, %54, %53 : vector<128x32xi1>, vector<128x32xf32>
      %c0_23 = arith.constant 0 : index
      %c0_24 = arith.constant 0 : index
      %56 = vector.load %arg12[%c0_23, %c0_24] : memref<128x1xf32, #tpu.memory_space<vmem>>, vector<128x1xf32>
      %57 = arith.mulf %50, %56 : vector<128x1xf32>
      %cst_25 = arith.constant dense<0.000000e+00> : vector<128xf32>
      %58 = vector.multi_reduction <add>, %55, %cst_25 [1] : vector<128x32xf32> to vector<128xf32>
      %59 = vector.shape_cast %58 : vector<128xf32> to vector<128x1xf32>
      %60 = arith.addf %57, %59 : vector<128x1xf32>
      %c0_26 = arith.constant 0 : index
      %c0_27 = arith.constant 0 : index
      %61 = vector.load %arg12[%c0_26, %c0_27] : memref<128x1xf32, #tpu.memory_space<vmem>>, vector<128x1xf32>
      tpu.vector_store %arg12[%c0_26, %c0_27], %60 {strides = array<i32>} : memref<128x1xf32, #tpu.memory_space<vmem>>, vector<128x1xf32>,
      %c0_28 = arith.constant 0 : index
      %c0_29 = arith.constant 0 : index
      %62 = vector.load %arg13[%c0_28, %c0_29] : memref<128x16xf32, #tpu.memory_space<vmem>>, vector<128x16xf32>
      %63 = vector.broadcast %50 : vector<128x1xf32> to vector<128x16xf32>
      %64 = arith.mulf %63, %62 : vector<128x16xf32>
      %cst_30 = arith.constant dense<0.000000e+00> : vector<128x16xf32>
      %65 = tpu.matmul %55, %29, %cst_30 {dimension_numbers = #tpu.dot_dimension_numbers<[1], [0], [0], [1], [0, 0, 1, 1], [], []>} : vector<128x32xf32>, vector<32x16xf32>, vector<128x16xf32> -> vector<128x16xf32>
      %66 = arith.addf %64, %65 : vector<128x16xf32>
      %c0_31 = arith.constant 0 : index
      %c0_32 = arith.constant 0 : index
      %67 = vector.load %arg13[%c0_31, %c0_32] : memref<128x16xf32, #tpu.memory_space<vmem>>, vector<128x16xf32>
      tpu.vector_store %arg13[%c0_31, %c0_32], %66 {strides = array<i32>} : memref<128x16xf32, #tpu.memory_space<vmem>>, vector<128x16xf32>,
      %c0_33 = arith.constant 0 : index
      %c0_34 = arith.constant 0 : index
      %68 = vector.load %arg11[%c0_33, %c0_34] : memref<128x1xf32, #tpu.memory_space<vmem>>, vector<128x1xf32>
      tpu.vector_store %arg11[%c0_33, %c0_34], %48 {strides = array<i32>} : memref<128x1xf32, #tpu.memory_space<vmem>>, vector<128x1xf32>,
    } else {
    }
    %c1_i32_9 = arith.constant 1 : i32
    %21 = arith.cmpi eq, %arg2, %c1_i32_9 : i32
    %22 = arith.extui %21 : i1 to i32
    %c0_i32_10 = arith.constant 0 : i32
    %23 = arith.cmpi ne, %22, %c0_i32_10 : i32
    scf.if %23 {
      %c0 = arith.constant 0 : index
      %c0_11 = arith.constant 0 : index
      %24 = vector.load %arg13[%c0, %c0_11] : memref<128x16xf32, #tpu.memory_space<vmem>>, vector<128x16xf32>
      %c0_12 = arith.constant 0 : index
      %c0_13 = arith.constant 0 : index
      %25 = vector.load %arg12[%c0_12, %c0_13] : memref<128x1xf32, #tpu.memory_space<vmem>>, vector<128x1xf32>
      %26 = tpu.reciprocal %25 : vector<128x1xf32> -> vector<128x1xf32>
      %27 = vector.broadcast %26 : vector<128x1xf32> to vector<128x16xf32>
      %28 = arith.mulf %24, %27 : vector<128x16xf32>
      %cst = arith.constant 0.000000e+00 : f32
      %29 = vector.broadcast %cst : f32 to vector<32x64xf32>
      %30 = vector.extract_strided_slice %28 {offsets = [0, 0], sizes = [32, 16], strides = [1, 1]} : vector<128x16xf32> to vector<32x16xf32>
      %c0_14 = arith.constant 0 : index
      %c0_15 = arith.constant 0 : index
      %31 = vector.load %arg7[%c0_14, %c0_15] : memref<64x64xf32, #tpu.memory_space<vmem>>, vector<16x64xf32>
      %cst_16 = arith.constant dense<0.000000e+00> : vector<32x64xf32>
      %32 = tpu.matmul %30, %31, %cst_16 {dimension_numbers = #tpu.dot_dimension_numbers<[1], [0], [0], [1], [0, 0, 1, 1], [], []>} : vector<32x16xf32>, vector<16x64xf32>, vector<32x64xf32> -> vector<32x64xf32>
      %33 = arith.addf %29, %32 : vector<32x64xf32>
      %34 = vector.extract_strided_slice %28 {offsets = [32, 0], sizes = [32, 16], strides = [1, 1]} : vector<128x16xf32> to vector<32x16xf32>
      %c16 = arith.constant 16 : index
      %c0_17 = arith.constant 0 : index
      %35 = vector.load %arg7[%c16, %c0_17] : memref<64x64xf32, #tpu.memory_space<vmem>>, vector<16x64xf32>
      %cst_18 = arith.constant dense<0.000000e+00> : vector<32x64xf32>
      %36 = tpu.matmul %34, %35, %cst_18 {dimension_numbers = #tpu.dot_dimension_numbers<[1], [0], [0], [1], [0, 0, 1, 1], [], []>} : vector<32x16xf32>, vector<16x64xf32>, vector<32x64xf32> -> vector<32x64xf32>
      %37 = arith.addf %33, %36 : vector<32x64xf32>
      %38 = vector.extract_strided_slice %28 {offsets = [64, 0], sizes = [32, 16], strides = [1, 1]} : vector<128x16xf32> to vector<32x16xf32>
      %c32 = arith.constant 32 : index
      %c0_19 = arith.constant 0 : index
      %39 = vector.load %arg7[%c32, %c0_19] : memref<64x64xf32, #tpu.memory_space<vmem>>, vector<16x64xf32>
      %cst_20 = arith.constant dense<0.000000e+00> : vector<32x64xf32>
      %40 = tpu.matmul %38, %39, %cst_20 {dimension_numbers = #tpu.dot_dimension_numbers<[1], [0], [0], [1], [0, 0, 1, 1], [], []>} : vector<32x16xf32>, vector<16x64xf32>, vector<32x64xf32> -> vector<32x64xf32>
      %41 = arith.addf %37, %40 : vector<32x64xf32>
      %42 = vector.extract_strided_slice %28 {offsets = [96, 0], sizes = [32, 16], strides = [1, 1]} : vector<128x16xf32> to vector<32x16xf32>
      %c48 = arith.constant 48 : index
      %c0_21 = arith.constant 0 : index
      %43 = vector.load %arg7[%c48, %c0_21] : memref<64x64xf32, #tpu.memory_space<vmem>>, vector<16x64xf32>
      %cst_22 = arith.constant dense<0.000000e+00> : vector<32x64xf32>
      %44 = tpu.matmul %42, %43, %cst_22 {dimension_numbers = #tpu.dot_dimension_numbers<[1], [0], [0], [1], [0, 0, 1, 1], [], []>} : vector<32x16xf32>, vector<16x64xf32>, vector<32x64xf32> -> vector<32x64xf32>
      %45 = arith.addf %41, %44 : vector<32x64xf32>
      %c0_23 = arith.constant 0 : index
      %c0_24 = arith.constant 0 : index
      %46 = vector.load %arg8[%c0_23, %c0_24] : memref<1x64xf32, #tpu.memory_space<vmem>>, vector<1x64xf32>
      %47 = vector.broadcast %46 : vector<1x64xf32> to vector<32x64xf32>
      %48 = arith.addf %45, %47 : vector<32x64xf32>
      %c0_25 = arith.constant 0 : index
      %c0_26 = arith.constant 0 : index
      %c0_27 = arith.constant 0 : index
      %49 = vector.load %arg9[%c0_25, %c0_26, %c0_27] : memref<1x32x64xf32, #tpu.memory_space<vmem>>, vector<1x32x64xf32>
      %50 = vector.shape_cast %49 : vector<1x32x64xf32> to vector<32x64xf32>
      %51 = vector.shape_cast %48 : vector<32x64xf32> to vector<1x32x64xf32>
      tpu.vector_store %arg9[%c0_25, %c0_26, %c0_27], %51 {strides = array<i32>} : memref<1x32x64xf32, #tpu.memory_space<vmem>>, vector<1x32x64xf32>,
    } else {
    }
    return
  }
  func.func @transform_0(%arg0: i32, %arg1: i32, %arg2: i32) -> (i32, i32, i32) {
    %c0_i32 = arith.constant 0 : i32
    %c0_i32_0 = arith.constant 0 : i32
    return %arg0, %arg1, %c0_i32 : i32, i32, i32
  }
  func.func @transform_1(%arg0: i32, %arg1: i32, %arg2: i32) -> (i32, i32, i32) {
    %c0_i32 = arith.constant 0 : i32
    %c0_i32_0 = arith.constant 0 : i32
    %c0_i32_1 = arith.constant 0 : i32
    return %arg0, %c0_i32, %c0_i32_0 : i32, i32, i32
  }
  func.func @transform_2(%arg0: i32, %arg1: i32, %arg2: i32) -> (i32, i32, i32) {
    %c0_i32 = arith.constant 0 : i32
    %c0_i32_0 = arith.constant 0 : i32
    %c0_i32_1 = arith.constant 0 : i32
    return %arg0, %c0_i32, %c0_i32_0 : i32, i32, i32
  }
  func.func @transform_3(%arg0: i32, %arg1: i32, %arg2: i32) -> (i32, i32) {
    %c0_i32 = arith.constant 0 : i32
    %c0_i32_0 = arith.constant 0 : i32
    %c0_i32_1 = arith.constant 0 : i32
    return %c0_i32, %c0_i32_0 : i32, i32
  }
  func.func @transform_4(%arg0: i32, %arg1: i32, %arg2: i32) -> (i32, i32) {
    %c0_i32 = arith.constant 0 : i32
    %c0_i32_0 = arith.constant 0 : i32
    %c0_i32_1 = arith.constant 0 : i32
    return %c0_i32, %c0_i32_0 : i32, i32
  }
  func.func @transform_5(%arg0: i32, %arg1: i32, %arg2: i32) -> (i32, i32) {
    %c0_i32 = arith.constant 0 : i32
    %c0_i32_0 = arith.constant 0 : i32
    %c0_i32_1 = arith.constant 0 : i32
    return %c0_i32, %c0_i32_0 : i32, i32
  }
  func.func @transform_6(%arg0: i32, %arg1: i32, %arg2: i32) -> (i32, i32, i32) {
    %c0_i32 = arith.constant 0 : i32
    %c0_i32_0 = arith.constant 0 : i32
    return %arg0, %arg1, %c0_i32 : i32, i32, i32
  }
}

</mosaic_0001>

<bundles_post_ra>
// kernel: tpu_custom_call.1
= control target key start
LH: loop header
LB: loop body
LE: loop exit
PB: predicated region body
PF: predicated region fallthrough
CT: control target
= control target key end

     0   :  { %11 = vsyncpa [#allocation7], 0  ;;  %s5079_s0 = inlined_call_operand.vmem [shape: f32[2,64,32], index: 0, kind: input, shape index: {}]   ;;  %s5080_s1 = inlined_call_operand.vmem [shape: f32[2,64,16], index: 1, kind: input, shape index: {}]   ;;  %s5081_s2 = inlined_call_operand.vmem [shape: f32[2,64,16], index: 2, kind: input, shape index: {}]   ;;  %s5082_s3 = inlined_call_operand.vmem [shape: f32[32,64], index: 3, kind: input, shape index: {}]   ;;  %s5083_s4 = inlined_call_operand.vmem [shape: f32[64,64], index: 4, kind: input, shape index: {}]   ;;  %s5084_s5 = inlined_call_operand.vmem [shape: f32[1,64], index: 5, kind: input, shape index: {}]   ;;  %s5085_s6 = inlined_call_operand.hbm [shape: f32[2,64,64], index: 6, kind: output, shape index: {}]  }
   0x1   :  { %13 = vsyncpa [#allocation7 + $0x1], 0  ;;  %s3465_s21 = smov 0   ;;  %s3467_s22 = smov 0  }
   0x2   :  { %s3469_s23 = smov 0   ;;  %s3471_s24 = smov 0  }
   0x3   :  { %s3473_s25 = smov 0   ;;  %s3475_s26 = smov 0  }
   0x4   :  { %s3477_s27 = smov 0   ;;  %s3479_s28 = smov 0  }
   0x5   :  { %s3481_s29 = smov 0   ;;  %s3483_s30 = smov 0  }
   0x6 LB: > { %5104 = sst [smem:[#allocation9_spill]] %s3382_s21  ;;  %s2890_s7 = sadd.s32 4294967295, %s3418_s30   ;;  %s3418_s30 = sphi %s3483_s30, %s19_s30   ;;  %s3414_s29 = sphi %s3481_s29, %s5212_s29   ;;  %s3410_s28 = sphi %s3479_s28, %s5207_s28   ;;  %s3406_s27 = sphi %s3477_s27, %s5206_s27   ;;  %s3402_s26 = sphi %s3475_s26, %s5205_s26   ;;  %s3398_s25 = sphi %s3473_s25, %s5204_s25   ;;  %s3394_s24 = sphi %s3471_s24, %s5203_s24   ;;  %s3390_s23 = sphi %s3469_s23, %s5211_s23   ;;  %s3386_s22 = sphi %s3467_s22, %s5210_s22   ;;  %s3382_s21 = sphi %s3465_s21, %s5209_s21  }
   0x7   : > { %5105 = sst [smem:[#allocation10_spill]] %s3390_s23  ;;  %s2891_s8 = sadd.s32 4294967294, %s3418_s30  }
   0x8   : > { %5106 = sst [smem:[#allocation11_spill]] %s3406_s27  ;;  %s31_s9 = sadd.s32 1, %s3406_s27 }
   0x9   : > { %5107 = sst [smem:[#allocation12_spill]] %s3410_s28  ;;  %p32_p0 = scmp.ge.s32.totalorder %s31_s9, 2 }
   0xa   : > { %5108 = sst [smem:[#allocation13_spill]] %s3414_s29  ;;  %s34_s10 = sadd.s32 1, %s3410_s28 }
   0xb   : > { %s38_s11 = sadd.s32 1, %s3414_s29  ;;  %p200_p1 = scmp.ne.s32.totalorder %s3390_s23, %s3386_s22 }
   0xc   : > { %s5214_s9 = smov (%p32_p0, %s31_s9), 0  ;;  %s5216_s10 = smov (!%p32_p0, %s34_s10), %s3410_s28 }
   0xd   : > { %5109 = sst [smem:[#allocation14_spill]] %s5214_s9  ;;  %p201_p2 = scmp.eq.s32.totalorder %s2890_s7, 7 }
   0xe   : > { %p206_p3 = scmp.ne.s32.totalorder %s3386_s22, %s3382_s21  ;;  %p36_p4 = scmp.ge.s32.totalorder %s5216_s10, 2 }
   0xf   : > { %p207_p5 = scmp.eq.s32.totalorder %s2891_s8, 7  ;;  %p3527_p6 = por %p201_p2, %p200_p1 }
  0x10   : > { %s5218_s10 = smov (%p36_p4, %s5216_s10), 0  ;;  %s5220_s11 = smov (!%p36_p4, %s38_s11), %s3414_s29 }
  0x11   : > { %5111 = sst [smem:[#allocation15_spill]] %s5218_s10  ;;  %p3534_p7 = por %p207_p5, %p206_p3 }
  0x12   : > { %p2894_p8 = scmp.ge.s32.totalorder %s3418_s30, 1  ;;  %p40_p9 = scmp.ge.s32.totalorder %s5220_s11, 2 }
  0x13   : > { %s5112_s13 = scalar_select %p3534_p7, 1, 0 }
  0x14   : > { %p263_p10 = scmp.lt.s32.totalorder %s3418_s30, 9  ;;  %s186_s14 = ssub.s32 %s3410_s28, %s5218_s10 }
  0x15   : > { %5113 = sst [smem:[#allocation16_spill]] %s5112_s13  ;;  %s5222_s11 = smov (%p40_p9, %s5220_s11), 0 }
  0x16   : > { %5114 = sst [smem:[#allocation17_spill]] %s5222_s11  ;;  %p264_p11 = pnand %p2894_p8, %p263_p10 }
  0x17   : > { %s185_s15 = ssub.s32 %s3414_s29, %s5222_s11  ;;  %s190_s17 = sadd.s32 1, %s3390_s23 }
  0x18   : > { %s187_s16 = sor.u32 %s186_s14, %s185_s15  ;;  %s5092_s19 = sand.u32 (!%p264_p11), 1, %s3386_s22  }
  0x19   : > { %p188_p12 = scmp.eq.s32.totalorder %s187_s16, 0  ;;  %267 = sbr.rel (%p264_p11) target bundleno = 1908 (0x774), region = 44 }
  0x1a   : > { %s3552_s20 = sshll.u32 (!%p264_p11), %s3398_s25, 2  ;;  %s2895_s7 = sshll.u32 (!%p264_p11), %s5092_s19, 5 }
  0x1b   : > { %s3548_s18 = scalar_select %p188_p12, %s3390_s23, %s190_s17  }
  0x1c   : > { %p308_p13 = scmp.lt.s32.totalorder (!%p264_p11), %s3402_s26, 1  ;;  %p310_p0 = scmp.lt.s32.totalorder (!%p264_p11), %s3552_s20, 7 }
  0x1d   : > { %5115 = sst [smem:[#allocation18_spill]] %s3548_s18  ;;  %s3573_s21 = scalar_lea.vmem (!%p264_p11), [#allocation6], %s2895_s7 }
  0x1e   : > { %s309_s8 = scalar_select %p308_p13, %s3402_s26, 1 }
  0x1f   : > { %s311_s14 = scalar_select %p310_p0, %s3552_s20, 7 }
  0x20   : > { %s2897_s15 = sshll.u32 %s309_s8, 3  ;;  %s3007_s16 = sshll.u32 %s309_s8, 6 }
  0x21   : > { %s313_s17 = sadd.s32 %s2897_s15, %s311_s14  ;;  %s3563_s9 = scalar_lea.vmem %s5080_s1, %s3007_s16 }
  0x22   : > { %s2898_s29 = sshll.u32 %s313_s17, 3  ;;  %s3568_s18 = scalar_lea.vmem %s5081_s2, %s3007_s16 }
  0x23   : > { %s315_s13 = scalar_lea.vmem %s5079_s0, %s2898_s29  ;;  %p2903_p1 = scmp.ne.s32.totalorder %s3394_s24, 0 }
  0x24   : > { %s3423_s19 = smov (!%p2903_p1), 112   ;;  %s3424_s7 = smov (!%p2903_p1), 80  }
  0x25   : > { %331 = sbr.rel (%p2903_p1) target bundleno = 324 (0x144), region = 48 }
  0x2a   : > { %v339_v0 = vld [vmem:[%s5082_s3 + $0x18] sm:$0xff]  ;;  %v338_v1 = vld [vmem:[%s5082_s3 + $0x10] sm:$0xff]  ;;  %v337_v2 = vld [vmem:[%s5082_s3 + $0x8] sm:$0xff]  ;;  %vm340_vm0 = vcmask 261120   ;;  %vm443_vm1 = vcmask 7168   ;;  %v3421_v9 = vmov 0.0  }
  0x2b   : > { %365 = vmatpush.msra.mxu0 %v339_v0  ;;  %3014 = vmatpush.msra.mxu2 %v339_v0  ;;  %v336_v3 = vld [vmem:[%s5082_s3] sm:$0xff]  ;;  %v334_v5 = vld [vmem:[%s315_s13 + $0x10] sm:$0xff]  ;;  %v333_v6 = vld [vmem:[%s315_s13 + $0x8] sm:$0xff]  ;;  %v3420_v8 = vmov -1e+30   ;;  %460 = vst.msk [vmem:[#allocation4] sm:$0xff] %vm443_vm1, %v3421_v9 }
  0x2c   : > { %3013 = vmatpush.msra.mxu1 %v339_v0  ;;  %3015 = vmatpush.msra.mxu3 %v339_v0  ;;  %v332_v4 = vld [vmem:[%s315_s13] sm:$0xff]  ;;  %v335_v7 = vld [vmem:[%s315_s13 + $0x18] sm:$0xff]  ;;  %444 = vst.msk [vmem:[#allocation3] sm:$0xff] %vm443_vm1, %v3420_v8  ;;  %vm386_vm2 = vcmask 130048   ;;  %s3422_s13 = smov 96  }
  0x2d   : > { %366 = vmatpush.msra.mxu0 %v338_v1  ;;  %3017 = vmatpush.msra.mxu2 %v338_v1  ;;  %445 = vst.msk [vmem:[#allocation3 + $0x8] sm:$0xff] %vm443_vm1, %v3420_v8 }
  0x2e   : > { %3016 = vmatpush.msra.mxu1 %v338_v1  ;;  %3018 = vmatpush.msra.mxu3 %v338_v1  ;;  %446 = vst.msk [vmem:[#allocation3 + $0x10] sm:$0xff] %vm443_vm1, %v3420_v8 }
  0x2f   : > { %367 = vmatpush.msra.mxu0 %v337_v2  ;;  %3020 = vmatpush.msra.mxu2 %v337_v2  ;;  %447 = vst.msk [vmem:[#allocation3 + $0x18] sm:$0xff] %vm443_vm1, %v3420_v8 }
  0x30   : > { %3019 = vmatpush.msra.mxu1 %v337_v2  ;;  %3021 = vmatpush.msra.mxu3 %v337_v2  ;;  %448 = vst.msk [vmem:[#allocation3 + $0x20] sm:$0xff] %vm443_vm1, %v3420_v8 }
  0x31   : > { %368 = vmatpush.msra.mxu0 %v336_v3  ;;  %3023 = vmatpush.msra.mxu2 %v336_v3  ;;  %449 = vst.msk [vmem:[#allocation3 + $0x28] sm:$0xff] %vm443_vm1, %v3420_v8 }
  0x32   : > { %2904 = vmatmul.msk.f32.vlgmr.msra.gmra.mxu0 %vm340_vm0, %v332_v4  ;;  %2906 = vmatmul.msk.f32.vlgmr.msra.gmra.mxu2 %vm340_vm0, %v334_v5  ;;  %450 = vst.msk [vmem:[#allocation3 + $0x30] sm:$0xff] %vm443_vm1, %v3420_v8 }
  0x33   : > { %3022 = vmatpush.msra.mxu1 %v336_v3  ;;  %3024 = vmatpush.msra.mxu3 %v336_v3  ;;  %451 = vst.msk [vmem:[#allocation3 + $0x38] sm:$0xff] %vm443_vm1, %v3420_v8 }
  0x34   : > { %2905 = vmatmul.msk.f32.vlgmr.msra.gmra.mxu1 %vm340_vm0, %v333_v6  ;;  %2907 = vmatmul.msk.f32.vlgmr.msra.gmra.mxu3 %vm340_vm0, %v335_v7  ;;  %452 = vst.msk [vmem:[#allocation3 + $0x40] sm:$0xff] %vm443_vm1, %v3420_v8 }
  0x35   : > { %453 = vst.msk [vmem:[#allocation3 + $0x48] sm:$0xff] %vm443_vm1, %v3420_v8 }
  0x36   : > { %454 = vst.msk [vmem:[#allocation3 + $0x50] sm:$0xff] %vm443_vm1, %v3420_v8 }
  0x37   : > { %455 = vst.msk [vmem:[#allocation3 + $0x58] sm:$0xff] %vm443_vm1, %v3420_v8 }
  0x38   : > { %456 = vst.msk [vmem:[#allocation3 + $0x60] sm:$0xff] %vm443_vm1, %v3420_v8 }
  0x39   : > { %457 = vst.msk [vmem:[#allocation3 + $0x68] sm:$0xff] %vm443_vm1, %v3420_v8 }
  0x3a   : > { %458 = vst.msk [vmem:[#allocation3 + $0x70] sm:$0xff] %vm443_vm1, %v3420_v8 }
  0x3b   : > { %459 = vst.msk [vmem:[#allocation3 + $0x78] sm:$0xff] %vm443_vm1, %v3420_v8 }
  0x3c   : > { %461 = vst.msk [vmem:[#allocation4 + $0x8] sm:$0xff] %vm443_vm1, %v3421_v9 }
  0x3d   : > { %462 = vst.msk [vmem:[#allocation4 + $0x10] sm:$0xff] %vm443_vm1, %v3421_v9 }
  0x3e   : > { %463 = vst.msk [vmem:[#allocation4 + $0x18] sm:$0xff] %vm443_vm1, %v3421_v9 }
  0x3f   : > { %464 = vst.msk [vmem:[#allocation4 + $0x20] sm:$0xff] %vm443_vm1, %v3421_v9 }
  0x40   : > { %465 = vst.msk [vmem:[#allocation4 + $0x28] sm:$0xff] %vm443_vm1, %v3421_v9 }
  0x41   : > { %466 = vst.msk [vmem:[#allocation4 + $0x30] sm:$0xff] %vm443_vm1, %v3421_v9 }
  0x42   : > { %467 = vst.msk [vmem:[#allocation4 + $0x38] sm:$0xff] %vm443_vm1, %v3421_v9 }
  0x43   : > { %468 = vst.msk [vmem:[#allocation4 + $0x40] sm:$0xff] %vm443_vm1, %v3421_v9 }
  0x44   : > { %469 = vst.msk [vmem:[#allocation4 + $0x48] sm:$0xff] %vm443_vm1, %v3421_v9 }
  0x45   : > { %470 = vst.msk [vmem:[#allocation4 + $0x50] sm:$0xff] %vm443_vm1, %v3421_v9 }
  0x46   : > { %471 = vst.msk [vmem:[#allocation4 + $0x58] sm:$0xff] %vm443_vm1, %v3421_v9 }
  0x47   : > { %472 = vst.msk [vmem:[#allocation4 + $0x60] sm:$0xff] %vm443_vm1, %v3421_v9 }
  0x48   : > { %473 = vst.msk [vmem:[#allocation4 + $0x68] sm:$0xff] %vm443_vm1, %v3421_v9 }
  0x49   : > { %474 = vst.msk [vmem:[#allocation4 + $0x70] sm:$0xff] %vm443_vm1, %v3421_v9 }
  0x4a   : > { %475 = vst.msk [vmem:[#allocation4 + $0x78] sm:$0xff] %vm443_vm1, %v3421_v9 }
  0x4b   : > { %476 = vst.msk [vmem:[#allocation5] sm:$0xff] %vm386_vm2, %v3421_v9 }
  0x4c   : > { %477 = vst.msk [vmem:[#allocation5 + $0x8] sm:$0xff] %vm386_vm2, %v3421_v9 }
  0x4d   : > { %478 = vst.msk [vmem:[#allocation5 + $0x10] sm:$0xff] %vm386_vm2, %v3421_v9 }
  0x4e   : > { %479 = vst.msk [vmem:[#allocation5 + $0x18] sm:$0xff] %vm386_vm2, %v3421_v9 }
  0x4f   : > { %480 = vst.msk [vmem:[#allocation5 + $0x20] sm:$0xff] %vm386_vm2, %v3421_v9 }
  0x50   : > { %481 = vst.msk [vmem:[#allocation5 + $0x28] sm:$0xff] %vm386_vm2, %v3421_v9 }
  0x51   : > { %482 = vst.msk [vmem:[#allocation5 + $0x30] sm:$0xff] %vm386_vm2, %v3421_v9 }
  0x52   : > { %483 = vst.msk [vmem:[#allocation5 + $0x38] sm:$0xff] %vm386_vm2, %v3421_v9 }
  0x53   : > { %484 = vst.msk [vmem:[#allocation5 + $0x40] sm:$0xff] %vm386_vm2, %v3421_v9 }
  0x54   : > { %485 = vst.msk [vmem:[#allocation5 + $0x48] sm:$0xff] %vm386_vm2, %v3421_v9 }
  0x55   : > { %486 = vst.msk [vmem:[#allocation5 + $0x50] sm:$0xff] %vm386_vm2, %v3421_v9 }
  0x56   : > { %487 = vst.msk [vmem:[#allocation5 + $0x58] sm:$0xff] %vm386_vm2, %v3421_v9 }
  0x57   : > { %488 = vst.msk [vmem:[#allocation5 + $0x60] sm:$0xff] %vm386_vm2, %v3421_v9 }
  0x58   : > { %489 = vst.msk [vmem:[#allocation5 + $0x68] sm:$0xff] %vm386_vm2, %v3421_v9 }
  0x59   : > { %490 = vst.msk [vmem:[#allocation5 + $0x70] sm:$0xff] %vm386_vm2, %v3421_v9 }
  0x5a   : > { %491 = vst.msk [vmem:[#allocation5 + $0x78] sm:$0xff] %vm386_vm2, %v3421_v9 }
  0xaf   : > { %v370_v10 = vpop.f32.mrf.mxu0 }
  0xb0   : > { %v382_v11 = vmul.f32 0.25, %v370_v10 }
  0xb1   : > { %v373_v12 = vpop.f32.mrf.mxu1 }
  0xb2   : > { %387 = vst.msk [vmem:[#allocation2] sm:$0xff] %vm386_vm2, %v382_v11  ;;  %411 = vrot.lane.b32.xlu2 %v382_v11, %s3422_s13  ;;  %395 = vrot.lane.b32.xlu0 %v382_v11, %s3423_s19  ;;  %v383_v15 = vmul.f32 0.25, %v373_v12 }
  0xb4   : > { %388 = vst.msk [vmem:[#allocation2 + $0x8] sm:$0xff] %vm386_vm2, %v383_v15 }
  0xb5   : > { %v376_v13 = vpop.f32.mrf.mxu2 }
  0xb6   : > { %v384_v14 = vmul.f32 0.25, %v376_v13 }
  0xb7   : > { %v379_v16 = vpop.f32.mrf.mxu3 }
  0xb8   : > { %399 = vrot.lane.b32.xlu1 %v384_v14, %s3423_s19  ;;  %v385_v17 = vmul.f32 0.25, %v379_v16  ;;  %389 = vst.msk [vmem:[#allocation2 + $0x10] sm:$0xff] %vm386_vm2, %v384_v14 }
  0xba   : > { %413 = vrot.lane.b32.xlu2 %v383_v15, %s3422_s13  ;;  %397 = vrot.lane.b32.xlu0 %v383_v15, %s3423_s19  ;;  %390 = vst.msk [vmem:[#allocation2 + $0x18] sm:$0xff] %vm386_vm2, %v385_v17 }
  0xc0   : > { %401 = vrot.lane.b32.xlu1 %v385_v17, %s3423_s19 }
  0xc2   : > { %427 = vrot.lane.b32.xlu2 %v382_v11, %s3424_s7  ;;  %415 = vrot.lane.b32.xlu0 %v384_v14, %s3422_s13 }
  0xc8   : > { %417 = vrot.lane.b32.xlu1 %v385_v17, %s3422_s13 }
  0xca   : > { %433 = vrot.lane.b32.xlu2 %v385_v17, %s3424_s7  ;;  %429 = vrot.lane.b32.xlu0 %v383_v15, %s3424_s7 }
  0xd0   : > { %431 = vrot.lane.b32.xlu1 %v384_v14, %s3424_s7 }
 0x10c   : > { %v412_v18 = vpop.permute.xlu2 %411 }
 0x10d   : > { %423 = vst.msk [vmem:[#allocation2 + $0x40] sm:$0xff] %vm386_vm2, %v412_v18 }
 0x114   : > { %v414_v19 = vpop.permute.xlu2 %413 }
 0x115   : > { %424 = vst.msk [vmem:[#allocation2 + $0x48] sm:$0xff] %vm386_vm2, %v414_v19 }
 0x11c   : > { %v428_v20 = vpop.permute.xlu2 %427 }
 0x11d   : > { %439 = vst.msk [vmem:[#allocation2 + $0x60] sm:$0xff] %vm386_vm2, %v428_v20 }
 0x124   : > { %v434_v21 = vpop.permute.xlu2 %433  ;;  %v396_v22 = vpop.permute.xlu0 %395 }
 0x125   : > { %442 = vst.msk [vmem:[#allocation2 + $0x78] sm:$0xff] %vm386_vm2, %v434_v21 }
 0x126   : > { %407 = vst.msk [vmem:[#allocation2 + $0x20] sm:$0xff] %vm386_vm2, %v396_v22 }
 0x12a   : > { %v400_v23 = vpop.permute.xlu1 %399 }
 0x12b   : > { %409 = vst.msk [vmem:[#allocation2 + $0x30] sm:$0xff] %vm386_vm2, %v400_v23 }
 0x12c   : > { %v398_v24 = vpop.permute.xlu0 %397 }
 0x12d   : > { %408 = vst.msk [vmem:[#allocation2 + $0x28] sm:$0xff] %vm386_vm2, %v398_v24 }
 0x132   : > { %v402_v25 = vpop.permute.xlu1 %401 }
 0x133   : > { %410 = vst.msk [vmem:[#allocation2 + $0x38] sm:$0xff] %vm386_vm2, %v402_v25 }
 0x134   : > { %v416_v26 = vpop.permute.xlu0 %415 }
 0x135   : > { %425 = vst.msk [vmem:[#allocation2 + $0x50] sm:$0xff] %vm386_vm2, %v416_v26 }
 0x13a   : > { %v418_v27 = vpop.permute.xlu1 %417 }
 0x13b   : > { %426 = vst.msk [vmem:[#allocation2 + $0x58] sm:$0xff] %vm386_vm2, %v418_v27 }
 0x13c   : > { %v430_v28 = vpop.permute.xlu0 %429 }
 0x13d   : > { %440 = vst.msk [vmem:[#allocation2 + $0x68] sm:$0xff] %vm386_vm2, %v430_v28 }
 0x142   : > { %v432_v29 = vpop.permute.xlu1 %431 }
 0x143   : > { %441 = vst.msk [vmem:[#allocation2 + $0x70] sm:$0xff] %vm386_vm2, %v432_v29 }
 0x144 PF: > { %s3657_s15 = sshll.u32 %s3394_s24, 5  ;;  %s3660_s16 = sshll.u32 %s3398_s25, 5 }
 0x145   : > { %s3010_s17 = sadd.s32 32, %s3660_s16  ;;  %s3012_s8 = sadd.s32 32, %s3657_s15 }
 0x146   : > { %p3665_p2 = scmp.lt.s32.totalorder %s3657_s15, %s3010_s17  ;;  %s499_s10 = sadd.s32 1, %s3660_s16 }
 0x147   : > { %p500_p3 = scmp.le.s32.totalorder %s3012_s8, %s499_s10 }
 0x149   : > { %p501_p4 = pnand %p500_p3, %p3665_p2 }
 0x14a   : > { %s505_s25 = scalar_lea.vmem (!%p501_p4), %s3563_s9, %s3657_s15  ;;  %s510_s11 = scalar_lea.vmem (!%p501_p4), %s3568_s18, %s3657_s15 }
 0x14b   : > { %504 = sbr.rel (%p501_p4) target bundleno = 947 (0x3b3), region = 52 }
 0x150   : > { %vm531_vm3 = vcmask 130048   ;;  %v509_v30 = vld [vmem:[%s505_s25 + $0x18] sm:$0xff]  ;;  %v508_v31 = vld [vmem:[%s505_s25 + $0x10] sm:$0xff]  ;;  %v507_v32 = vld [vmem:[%s505_s25 + $0x8] sm:$0xff]  ;;  %vm673_vm4 = vcmask 261120   ;;  %v3425_v18 = vmov 0  }
 0x151   : > { %2912 = vmatpush.xpose.msk.msra.mxu0 %vm531_vm3, %v509_v30  ;;  %3025 = vmatpush.xpose.msk.msra.mxu2 %vm531_vm3, %v509_v30  ;;  %v506_v33 = vld [vmem:[%s505_s25] sm:$0xff]  ;;  %v516_v36 = vld [vmem:[#allocation2 + $0x8] sm:$0xff]  ;;  %v517_v38 = vld [vmem:[#allocation2 + $0x10] sm:$0xff]  ;;  %vm1010_vm5 = vcmask 7168  }
 0x152   : > { %v515_v34 = vld [vmem:[#allocation2] sm:$0xff]  ;;  %v524_v37 = vld [vmem:[#allocation2 + $0x48] sm:$0xff]  ;;  %v525_v39 = vld [vmem:[#allocation2 + $0x50] sm:$0xff]  ;;  %3138 = vset.pattern.permute.xlu1 %v3425_v18  ;;  %3139 = vset.pattern.permute.xlu2 %v3425_v18 }
 0x153   : > { %v523_v35 = vld [vmem:[#allocation2 + $0x40] sm:$0xff]  ;;  %v526_v40 = vld [vmem:[#allocation2 + $0x58] sm:$0xff]  ;;  %v528_v44 = vld [vmem:[#allocation2 + $0x68] sm:$0xff]  ;;  %3140 = vset.pattern.permute.xlu0 %v3425_v18 }
 0x154   : > { %v518_v41 = vld [vmem:[#allocation2 + $0x18] sm:$0xff]  ;;  %v527_v42 = vld [vmem:[#allocation2 + $0x60] sm:$0xff]  ;;  %v520_v45 = vld [vmem:[#allocation2 + $0x28] sm:$0xff] }
 0x155   : > { %2913 = vmatpush.xpose.msk.msra.mxu0 %vm531_vm3, %v508_v31  ;;  %3026 = vmatpush.xpose.msk.msra.mxu2 %vm531_vm3, %v508_v31  ;;  %v519_v43 = vld [vmem:[#allocation2 + $0x20] sm:$0xff]  ;;  %v529_v46 = vld [vmem:[#allocation2 + $0x70] sm:$0xff]  ;;  %v530_v48 = vld [vmem:[#allocation2 + $0x78] sm:$0xff] }
 0x156   : > { %v521_v47 = vld [vmem:[#allocation2 + $0x30] sm:$0xff]  ;;  %v522_v49 = vld [vmem:[#allocation2 + $0x38] sm:$0xff]  ;;  %v3766_v19 = vld [vmem:[#allocation3] sm:$0xff] }
 0x157   : > { %v3774_v22 = vld [vmem:[#allocation3 + $0x40] sm:$0xff]  ;;  %v3776_v24 = vld [vmem:[#allocation3 + $0x8] sm:$0xff]  ;;  %v3793_v30 = vld [vmem:[#allocation3 + $0x10] sm:$0xff] }
 0x158   : > { %v3791_v29 = vld [vmem:[#allocation3 + $0x48] sm:$0xff] }
 0x159   : > { %2914 = vmatpush.xpose.msk.msra.mxu0 %vm531_vm3, %v507_v32  ;;  %3027 = vmatpush.xpose.msk.msra.mxu2 %vm531_vm3, %v507_v32 }
 0x15d   : > { %2915 = vmatpush.xpose.msk.msra.mxu0 %vm531_vm3, %v506_v33  ;;  %3028 = vmatpush.xpose.msk.msra.mxu2 %vm531_vm3, %v506_v33 }
 0x160   : > { %2916 = vmatmul.msk.f32.vlgmr.msra.gmra.mxu0 %vm531_vm3, %v515_v34  ;;  %2924 = vmatmul.msk.f32.vlgmr.msra.gmra.mxu2 %vm531_vm3, %v523_v35 }
 0x168   : > { %2917 = vmatmul.msk.f32.gmra.mxu0 %vm531_vm3, %v516_v36  ;;  %2925 = vmatmul.msk.f32.gmra.mxu2 %vm531_vm3, %v524_v37  ;;  %v3804_v36 = vld [vmem:[#allocation3 + $0x50] sm:$0xff] }
 0x170   : > { %2918 = vmatmul.msk.f32.gmra.mxu0 %vm531_vm3, %v517_v38  ;;  %2926 = vmatmul.msk.f32.gmra.mxu2 %vm531_vm3, %v525_v39  ;;  %v3812_v39 = vld [vmem:[#allocation3 + $0x58] sm:$0xff] }
 0x178   : > { %2927 = vmatmul.msk.f32.gmra.mxu2 %vm531_vm3, %v526_v40  ;;  %2919 = vmatmul.msk.f32.gmra.mxu0 %vm531_vm3, %v518_v41  ;;  %v3814_v41 = vld [vmem:[#allocation3 + $0x18] sm:$0xff] }
 0x180   : > { %2928 = vmatmul.msk.f32.gmra.mxu2 %vm531_vm3, %v527_v42  ;;  %2920 = vmatmul.msk.f32.gmra.mxu0 %vm531_vm3, %v519_v43 }
 0x188   : > { %2929 = vmatmul.msk.f32.gmra.mxu2 %vm531_vm3, %v528_v44  ;;  %2921 = vmatmul.msk.f32.gmra.mxu0 %vm531_vm3, %v520_v45  ;;  %v3823_v45 = vld [vmem:[#allocation3 + $0x60] sm:$0xff] }
 0x190   : > { %2930 = vmatmul.msk.f32.gmra.mxu2 %vm531_vm3, %v529_v46  ;;  %2922 = vmatmul.msk.f32.gmra.mxu0 %vm531_vm3, %v521_v47  ;;  %v661_v46 = vld [vmem:[#allocation3 + $0x20] sm:$0xff] }
 0x198   : > { %2931 = vmatmul.msk.f32.gmra.mxu2 %vm531_vm3, %v530_v48  ;;  %2923 = vmatmul.msk.f32.gmra.mxu0 %vm531_vm3, %v522_v49 }
 0x1dd   : > { %v3702_v50 = vpop.f32.mrf.mxu0 }
 0x1de   : > { %v674_v51 = vsel %vm673_vm4, %v3702_v50, -inf }
 0x1df   : > { %675 = vmax.xlane.f32.xlu0 %v674_v51 }
 0x1e3   : > { %v3706_v52 = vpop.f32.mrf.mxu2 }
 0x1e4   : > { %v698_v53 = vsel %vm673_vm4, %v3706_v52, -inf }
 0x1e5   : > { %699 = vmax.xlane.f32.xlu2 %v698_v53  ;;  %v3710_v54 = vpop.f32.mrf.mxu0  ;;  %v3833_v53 = vld [vmem:[#allocation3 + $0x68] sm:$0xff] }
 0x1e6   : > { %v677_v55 = vsel %vm673_vm4, %v3710_v54, -inf }
 0x1e7   : > { %678 = vmax.xlane.f32.xlu0 %v677_v55  ;;  %v662_v55 = vld [vmem:[#allocation3 + $0x28] sm:$0xff] }
 0x1eb   : > { %v3714_v56 = vpop.f32.mrf.mxu2 }
 0x1ec   : > { %v701_v58 = vsel %vm673_vm4, %v3714_v56, -inf }
 0x1ed   : > { %v3716_v57 = vpop.f32.mrf.mxu0 }
 0x1ee   : > { %v680_v59 = vsel %vm673_vm4, %v3716_v57, -inf }
 0x1ef   : > { %702 = vmax.xlane.f32.xlu0 %v701_v58  ;;  %681 = vmax.xlane.f32.xlu1 %v680_v59 }
 0x1f3   : > { %v3722_v60 = vpop.f32.mrf.mxu2 }
 0x1f4   : > { %v704_v62 = vsel %vm673_vm4, %v3722_v60, -inf }
 0x1f5   : > { %v3724_v61 = vpop.f32.mrf.mxu0 }
 0x1f6   : > { %v683_v2 = vsel %vm673_vm4, %v3724_v61, -inf }
 0x1f7   : > { %705 = vmax.xlane.f32.xlu1 %v704_v62  ;;  %v663_v62 = vld [vmem:[#allocation3 + $0x30] sm:$0xff] }
 0x1fb   : > { %v3728_v63 = vpop.f32.mrf.mxu2 }
 0x1fc   : > { %v707_v0 = vsel %vm673_vm4, %v3728_v63, -inf }
 0x1fd   : > { %708 = vmax.xlane.f32.xlu2 %v707_v0  ;;  %v3732_v1 = vpop.f32.mrf.mxu0 }
 0x1fe   : > { %v686_v3 = vsel %vm673_vm4, %v3732_v1, -inf }
 0x1ff   : > { %684 = vmax.xlane.f32.xlu1 %v683_v2 }
 0x203   : > { %v3738_v4 = vpop.f32.mrf.mxu2 }
 0x204   : > { %v710_v5 = vsel %vm673_vm4, %v3738_v4, -inf }
 0x205   : > { %711 = vmax.xlane.f32.xlu0 %v710_v5  ;;  %687 = vmax.xlane.f32.xlu2 %v686_v3  ;;  %v3742_v6 = vpop.f32.mrf.mxu0 }
 0x206   : > { %v689_v7 = vsel %vm673_vm4, %v3742_v6, -inf }
 0x20b   : > { %v3746_v8 = vpop.f32.mrf.mxu2 }
 0x20c   : > { %v713_v9 = vsel %vm673_vm4, %v3746_v8, -inf }
 0x20d   : > { %714 = vmax.xlane.f32.xlu1 %v713_v9  ;;  %690 = vmax.xlane.f32.xlu2 %v689_v7  ;;  %v3750_v10 = vpop.f32.mrf.mxu0  ;;  %v3845_v9 = vld [vmem:[#allocation3 + $0x70] sm:$0xff] }
 0x20e   : > { %v692_v11 = vsel %vm673_vm4, %v3750_v10, -inf }
 0x20f   : > { %693 = vmax.xlane.f32.xlu0 %v692_v11 }
 0x213   : > { %v3754_v12 = vpop.f32.mrf.mxu2 }
 0x214   : > { %v716_v13 = vsel %vm673_vm4, %v3754_v12, -inf }
 0x215   : > { %717 = vmax.xlane.f32.xlu2 %v716_v13  ;;  %v3758_v14 = vpop.f32.mrf.mxu0  ;;  %v664_v13 = vld [vmem:[#allocation3 + $0x38] sm:$0xff] }
 0x216   : > { %v695_v15 = vsel %vm673_vm4, %v3758_v14, -inf }
 0x217   : > { %696 = vmax.xlane.f32.xlu1 %v695_v15 }
 0x21b   : > { %v3762_v16 = vpop.f32.mrf.mxu2 }
 0x21c   : > { %v719_v17 = vsel %vm673_vm4, %v3762_v16, -inf }
 0x21d   : > { %720 = vmax.xlane.f32.xlu0 %v719_v17 }
 0x252   : > { %v676_v20 = vpop.xlane.xlu0 %675 }
 0x253   : > { %v3769_v21 = vmax.f32 %v3766_v19, %v676_v20 }
 0x255   : > { %1284 = vst.msk [vmem:[#allocation3] sm:$0xff] %vm1010_vm5, %v3769_v21  ;;  %788 = vperm.xlu1 %3138, %v3769_v21   ;;  %v738_v18 = vsub.f32 %v3766_v19, %v3769_v21  ;;  %v3862_v19 = vld [vmem:[#allocation3 + $0x78] sm:$0xff] }
 0x257   : > { %v754_v21 = vmul.f32 1.442695, %v738_v18 }
 0x258   : > { %v700_v23 = vpop.xlane.xlu2 %699 }
 0x259   : > { %v3779_v25 = vmax.f32 %v3774_v22, %v700_v23  ;;  %3141 = vpow2.f32 %v754_v21 }
 0x25a   : > { %v679_v26 = vpop.xlane.xlu0 %678 }
 0x25b   : > { %v746_v27 = vsub.f32 %v3774_v22, %v3779_v25  ;;  %1292 = vst.msk [vmem:[#allocation3 + $0x40] sm:$0xff] %vm1010_vm5, %v3779_v25  ;;  %v3786_v28 = vmax.f32 %v3776_v24, %v679_v26 }
 0x25d   : > { %1285 = vst.msk [vmem:[#allocation3 + $0x8] sm:$0xff] %vm1010_vm5, %v3786_v28  ;;  %793 = vperm.xlu2 %3139, %v3786_v28  }
 0x262   : > { %v703_v31 = vpop.xlane.xlu0 %702  ;;  %v682_v32 = vpop.xlane.xlu1 %681 }
 0x263   : > { %v3796_v33 = vmax.f32 %v3791_v29, %v703_v31  ;;  %v724_v34 = vmax.f32 %v3793_v30, %v682_v32  ;;  %v739_v31 = vsub.f32 %v3776_v24, %v3786_v28 }
 0x265   : > { %v747_v35 = vsub.f32 %v3791_v29, %v3796_v33  ;;  %1293 = vst.msk [vmem:[#allocation3 + $0x48] sm:$0xff] %vm1010_vm5, %v3796_v33  ;;  %798 = vperm.xlu0 %3140, %v724_v34   ;;  %v740_v26 = vsub.f32 %v3793_v30, %v724_v34 }
 0x266   : > { %1286 = vst.msk [vmem:[#allocation3 + $0x10] sm:$0xff] %vm1010_vm5, %v724_v34 }
 0x267   : > { %v758_v32 = vmul.f32 1.442695, %v740_v26  ;;  %v772_v22 = vmul.f32 1.442695, %v747_v35  ;;  %v512_v35 = vld [vmem:[%s510_s11 + $0x8] sm:$0xff] }
 0x269   : > { %3143 = vpow2.f32 %v758_v32 }
 0x26a   : > { %v706_v37 = vpop.xlane.xlu1 %705 }
 0x26b   : > { %v3807_v38 = vmax.f32 %v3804_v36, %v706_v37 }
 0x26d   : > { %1294 = vst.msk [vmem:[#allocation3 + $0x50] sm:$0xff] %vm1010_vm5, %v3807_v38  ;;  %838 = vperm.xlu1 %3138, %v3807_v38  }
 0x270   : > { %v709_v40 = vpop.xlane.xlu2 %708 }
 0x271   : > { %v3817_v42 = vmax.f32 %v3812_v39, %v709_v40 }
 0x272   : > { %v685_v43 = vpop.xlane.xlu1 %684 }
 0x273   : > { %1295 = vst.msk [vmem:[#allocation3 + $0x58] sm:$0xff] %vm1010_vm5, %v3817_v42  ;;  %v725_v44 = vmax.f32 %v3814_v41, %v685_v43  ;;  %v756_v43 = vmul.f32 1.442695, %v739_v31  ;;  %v511_v31 = vld [vmem:[%s510_s11] sm:$0xff] }
 0x275   : > { %1287 = vst.msk [vmem:[#allocation3 + $0x18] sm:$0xff] %vm1010_vm5, %v725_v44  ;;  %803 = vperm.xlu2 %3139, %v725_v44   ;;  %3145 = vpow2.f32 %v756_v43 }
 0x278   : > { %v712_v47 = vpop.xlane.xlu0 %711  ;;  %v688_v48 = vpop.xlane.xlu2 %687 }
 0x279   : > { %v3826_v49 = vmax.f32 %v3823_v45, %v712_v47  ;;  %v726_v51 = vmax.f32 %v661_v46, %v688_v48  ;;  %v741_v47 = vsub.f32 %v3814_v41, %v725_v44 }
 0x27b   : > { %1296 = vst.msk [vmem:[#allocation3 + $0x60] sm:$0xff] %vm1010_vm5, %v3826_v49  ;;  %848 = vperm.xlu0 %3140, %v3826_v49   ;;  %808 = vperm.xlu1 %3138, %v726_v51   ;;  %v742_v24 = vsub.f32 %v661_v46, %v726_v51  ;;  %v760_v34 = vmul.f32 1.442695, %v741_v47  ;;  %v748_v46 = vsub.f32 %v3804_v36, %v3807_v38 }
 0x27c   : > { %1288 = vst.msk [vmem:[#allocation3 + $0x20] sm:$0xff] %vm1010_vm5, %v726_v51  ;;  %v749_v38 = vsub.f32 %v3812_v39, %v3817_v42  ;;  %v750_v39 = vsub.f32 %v3823_v45, %v3826_v49 }
 0x27d   : > { %833 = vperm.xlu2 %3139, %v3796_v33   ;;  %v762_v48 = vmul.f32 1.442695, %v742_v24  ;;  %3147 = vpow2.f32 %v760_v34 }
 0x27e   : > { %v778_v33 = vmul.f32 1.442695, %v750_v39 }
 0x27f   : > { %3149 = vpow2.f32 %v762_v48 }
 0x280   : > { %v715_v58 = vpop.xlane.xlu1 %714  ;;  %v691_v59 = vpop.xlane.xlu2 %690 }
 0x281   : > { %v3836_v0 = vmax.f32 %v3833_v53, %v715_v58  ;;  %v727_v2 = vmax.f32 %v662_v55, %v691_v59  ;;  %v3874_v58 = vpop.eup %3141 }
 0x282   : > { %v694_v3 = vpop.xlane.xlu0 %693  ;;  %v3876_v41 = vpop.eup %3143 }
 0x283   : > { %v751_v5 = vsub.f32 %v3833_v53, %v3836_v0  ;;  %1297 = vst.msk [vmem:[#allocation3 + $0x68] sm:$0xff] %vm1010_vm5, %v3836_v0  ;;  %843 = vperm.xlu1 %3138, %v3817_v42   ;;  %v728_v7 = vmax.f32 %v663_v62, %v694_v3  ;;  %v743_v28 = vsub.f32 %v662_v55, %v727_v2  ;;  %v3880_v3 = vpop.eup %3145  ;;  %v774_v55 = vmul.f32 1.442695, %v748_v46  ;;  %v514_v42 = vld [vmem:[%s510_s11 + $0x18] sm:$0xff] }
 0x284   : > { %1289 = vst.msk [vmem:[#allocation3 + $0x28] sm:$0xff] %vm1010_vm5, %v727_v2  ;;  %1199 = vmatpush.msra.mxu1 %v514_v42  ;;  %3029 = vmatpush.msra.mxu3 %v514_v42 }
 0x285   : > { %813 = vperm.xlu2 %3139, %v727_v2   ;;  %1290 = vst.msk [vmem:[#allocation3 + $0x30] sm:$0xff] %vm1010_vm5, %v728_v7  ;;  %v764_v44 = vmul.f32 1.442695, %v743_v28  ;;  %v744_v59 = vsub.f32 %v663_v62, %v728_v7  ;;  %v3885_v2 = vpop.eup %3147 }
 0x286   : > { %v3887_v62 = vpop.eup %3149 }
 0x287   : > { %3151 = vpow2.f32 %v764_v44  ;;  %v766_v51 = vmul.f32 1.442695, %v744_v59 }
 0x288   : > { %v718_v11 = vpop.xlane.xlu2 %717 }
 0x289   : > { %v3848_v15 = vmax.f32 %v3845_v9, %v718_v11  ;;  %3153 = vpow2.f32 %v766_v51 }
 0x28a   : > { %v697_v17 = vpop.xlane.xlu1 %696  ;;  %3155 = vpow2.f32 %v774_v55 }
 0x28b   : > { %v752_v20 = vsub.f32 %v3845_v9, %v3848_v15  ;;  %1298 = vst.msk [vmem:[#allocation3 + $0x70] sm:$0xff] %vm1010_vm5, %v3848_v15  ;;  %858 = vperm.xlu0 %3140, %v3848_v15   ;;  %818 = vperm.xlu1 %3138, %v728_v7   ;;  %v729_v23 = vmax.f32 %v664_v13, %v697_v17  ;;  %v770_v7 = vmul.f32 1.442695, %v746_v27  ;;  %v776_v27 = vmul.f32 1.442695, %v749_v38 }
 0x28d   : > { %853 = vperm.xlu2 %3139, %v3836_v0   ;;  %1291 = vst.msk [vmem:[#allocation3 + $0x38] sm:$0xff] %vm1010_vm5, %v729_v23  ;;  %v745_v11 = vsub.f32 %v664_v13, %v729_v23  ;;  %v3894_v36 = vpop.eup %3151  ;;  %3157 = vpow2.f32 %v770_v7 }
 0x28f   : > { %v768_v17 = vmul.f32 1.442695, %v745_v11  ;;  %v3899_v18 = vpop.eup %3153 }
 0x290   : > { %v721_v37 = vpop.xlane.xlu0 %720 }
 0x291   : > { %v3865_v40 = vmax.f32 %v3862_v19, %v721_v37  ;;  %3159 = vpow2.f32 %v768_v17 }
 0x292   : > { %3161 = vpow2.f32 %v772_v22 }
 0x293   : > { %v753_v30 = vsub.f32 %v3862_v19, %v3865_v40  ;;  %1299 = vst.msk [vmem:[#allocation3 + $0x78] sm:$0xff] %vm1010_vm5, %v3865_v40  ;;  %828 = vperm.xlu0 %3140, %v3779_v25   ;;  %863 = vperm.xlu1 %3138, %v3865_v40   ;;  %v3906_v25 = vpop.eup %3155  ;;  %3163 = vpow2.f32 %v776_v27 }
 0x294   : > { %v3910_v13 = vpop.eup %3157  ;;  %3165 = vpow2.f32 %v778_v33 }
 0x295   : > { %823 = vperm.xlu2 %3139, %v729_v23   ;;  %v513_v23 = vld [vmem:[%s510_s11 + $0x10] sm:$0xff] }
 0x296   : > { %1200 = vmatpush.msra.mxu1 %v513_v23  ;;  %3030 = vmatpush.msra.mxu3 %v513_v23 }
 0x297   : > { %v3915_v29 = vpop.eup %3159 }
 0x298   : > { %1201 = vmatpush.msra.mxu1 %v512_v35  ;;  %v3917_v26 = vpop.eup %3161  ;;  %3031 = vmatpush.msra.mxu3 %v512_v35 }
 0x299   : > { %v3921_v45 = vpop.eup %3163 }
 0x29a   : > { %1202 = vmatpush.msra.mxu1 %v511_v31  ;;  %3032 = vmatpush.msra.mxu3 %v511_v31  ;;  %v3924_v49 = vpop.eup %3165 }
 0x29b   : > { %1055 = vperm.xlu0 %3140, %v3876_v41   ;;  %1045 = vperm.xlu1 %3138, %v3874_v58  }
 0x29d   : > { %1050 = vperm.xlu2 %3139, %v3880_v3  }
 0x2a3   : > { %1065 = vperm.xlu0 %3140, %v3887_v62   ;;  %1060 = vperm.xlu1 %3138, %v3885_v2  }
 0x2a5   : > { %1070 = vperm.xlu2 %3139, %v3894_v36  }
 0x2ab   : > { %1095 = vperm.xlu0 %3140, %v3906_v25   ;;  %1075 = vperm.xlu1 %3138, %v3899_v18  }
 0x2ad   : > { %1085 = vperm.xlu2 %3139, %v3910_v13  }
 0x2b3   : > { %1090 = vperm.xlu1 %3138, %v3917_v26   ;;  %1080 = vperm.xlu0 %3140, %v3915_v29  }
 0x2b5   : > { %1100 = vperm.xlu2 %3139, %v3921_v45  }
 0x2b7   : > { %v794_v21 = vpop.permute.xlu2 %793 }
 0x2b8   : > { %v867_v47 = vsub.f32 %v3710_v54, %v794_v21 }
 0x2ba   : > { %v884_v28 = vmul.f32 1.442695, %v867_v47 }
 0x2bb   : > { %1105 = vperm.xlu1 %3138, %v3924_v49  }
 0x2c7   : > { %v789_v32 = vpop.permute.xlu1 %788 }
 0x2c8   : > { %v866_v37 = vsub.f32 %v3702_v50, %v789_v32 }
 0x2ca   : > { %v882_v43 = vmul.f32 1.442695, %v866_v37 }
 0x2cc   : > { %3167 = vpow2.f32 %v882_v43 }
 0x2cd   : > { %3169 = vpow2.f32 %v884_v28 }
 0x2cf   : > { %v804_v24 = vpop.permute.xlu2 %803 }
 0x2d0   : > { %v869_v50 = vsub.f32 %v3724_v61, %v804_v24 }
 0x2d2   : > { %v3168_v34 = vpop.eup %3167  ;;  %v888_v38 = vmul.f32 1.442695, %v869_v50 }
 0x2d3   : > { %2932 = vmatmul.msk.f32.vlgmr.msra.gmra.mxu1 %vm673_vm4, %v3168_v34  ;;  %v3170_v51 = vpop.eup %3169  ;;  %v946_v54 = vsel %vm673_vm4, %v3168_v34, 0.0 }
 0x2d4   : > { %v949_v61 = vsel %vm673_vm4, %v3170_v51, 0.0 }
 0x2d7   : > { %v834_v48 = vpop.permute.xlu2 %833  ;;  %v799_v44 = vpop.permute.xlu0 %798 }
 0x2d8   : > { %v875_v59 = vsub.f32 %v3714_v56, %v834_v48  ;;  %v868_v46 = vsub.f32 %v3716_v57, %v799_v44 }
 0x2da   : > { %v900_v55 = vmul.f32 1.442695, %v875_v59  ;;  %v886_v7 = vmul.f32 1.442695, %v868_v46 }
 0x2db   : > { %2933 = vmatmul.msk.f32.gmra.mxu1 %vm673_vm4, %v3170_v51 }
 0x2dc   : > { %3171 = vpow2.f32 %v900_v55 }
 0x2dd   : > { %3173 = vpow2.f32 %v886_v7 }
 0x2de   : > { %947 = vadd.xlane.f32.xlu2 %v946_v54  ;;  %3175 = vpow2.f32 %v888_v38 }
 0x2df   : > { %v839_v11 = vpop.permute.xlu1 %838  ;;  %v814_v56 = vpop.permute.xlu2 %813 }
 0x2e0   : > { %v876_v17 = vsub.f32 %v3722_v60, %v839_v11  ;;  %v871_v28 = vsub.f32 %v3742_v6, %v814_v56 }
 0x2e2   : > { %v3172_v22 = vpop.eup %3171  ;;  %v902_v27 = vmul.f32 1.442695, %v876_v17  ;;  %v892_v46 = vmul.f32 1.442695, %v871_v28 }
 0x2e3   : > { %v3174_v57 = vpop.eup %3173  ;;  %2941 = vmatmul.msk.f32.vlgmr.msra.gmra.mxu3 %vm673_vm4, %v3172_v22  ;;  %v973_v39 = vsel %vm673_vm4, %v3172_v22, 0.0 }
 0x2e4   : > { %2934 = vmatmul.msk.f32.gmra.mxu1 %vm673_vm4, %v3174_v57  ;;  %974 = vadd.xlane.f32.xlu0 %v973_v39  ;;  %3177 = vpow2.f32 %v902_v27  ;;  %v3940_v42 = vpop.eup %3175  ;;  %v952_v33 = vsel %vm673_vm4, %v3174_v57, 0.0 }
 0x2e5   : > { %950 = vadd.xlane.f32.xlu1 %v949_v61 }
 0x2e7   : > { %v854_v60 = vpop.permute.xlu2 %853 }
 0x2e8   : > { %v879_v24 = vsub.f32 %v3746_v8, %v854_v60 }
 0x2ea   : > { %v3178_v23 = vpop.eup %3177  ;;  %v908_v34 = vmul.f32 1.442695, %v879_v24  ;;  %v780_v24 = vmul.f32 1.442695, %v751_v5 }
 0x2eb   : > { %2942 = vmatmul.msk.f32.gmra.mxu3 %vm673_vm4, %v3178_v23  ;;  %v976_v35 = vsel %vm673_vm4, %v3178_v23, 0.0 }
 0x2ec   : > { %2935 = vmatmul.msk.f32.gmra.mxu1 %vm673_vm4, %v3940_v42  ;;  %953 = vadd.xlane.f32.xlu0 %v952_v33 }
 0x2ed   : > { %v849_v31 = vpop.permute.xlu0 %848  ;;  %977 = vadd.xlane.f32.xlu1 %v976_v35  ;;  %v809_v21 = vpop.permute.xlu1 %808 }
 0x2ee   : > { %v878_v32 = vsub.f32 %v3738_v4, %v849_v31  ;;  %v870_v37 = vsub.f32 %v3732_v1, %v809_v21 }
 0x2ef   : > { %v824_v44 = vpop.permute.xlu2 %823 }
 0x2f0   : > { %v906_v43 = vmul.f32 1.442695, %v878_v32  ;;  %v890_v47 = vmul.f32 1.442695, %v870_v37  ;;  %v873_v1 = vsub.f32 %v3758_v14, %v824_v44 }
 0x2f2   : > { %3179 = vpow2.f32 %v906_v43  ;;  %v896_v8 = vmul.f32 1.442695, %v873_v1  ;;  %v784_v43 = vmul.f32 1.442695, %v753_v30 }
 0x2f3   : > { %3181 = vpow2.f32 %v890_v47  ;;  %v955_v47 = vsel %vm673_vm4, %v3940_v42, 0.0 }
 0x2f4   : > { %3183 = vpow2.f32 %v908_v34 }
 0x2f5   : > { %v844_v48 = vpop.permute.xlu1 %843 }
 0x2f6   : > { %v877_v59 = vsub.f32 %v3728_v63, %v844_v48 }
 0x2f7   : > { %v1051_v53 = vpop.permute.xlu2 %1050 }
 0x2f8   : > { %v3180_v51 = vpop.eup %3179  ;;  %v904_v55 = vmul.f32 1.442695, %v877_v59 }
 0x2f9   : > { %v3182_v7 = vpop.eup %3181  ;;  %v982_v4 = vsel %vm673_vm4, %v3180_v51, 0.0 }
 0x2fa   : > { %3185 = vpow2.f32 %v904_v55  ;;  %2936 = vmatmul.msk.f32.gmra.mxu1 %vm673_vm4, %v3182_v7  ;;  %983 = vadd.xlane.f32.xlu0 %v982_v4  ;;  %v958_v6 = vsel %vm673_vm4, %v3182_v7, 0.0  ;;  %v3184_v11 = vpop.eup %3183 }
 0x2fb   : > { %3187 = vpow2.f32 %v892_v46  ;;  %959 = vadd.xlane.f32.xlu1 %v958_v6  ;;  %v985_v14 = vsel %vm673_vm4, %v3184_v11, 0.0  ;;  %v782_v46 = vmul.f32 1.442695, %v752_v20  ;;  %v1027_v6 = vld [vmem:[#allocation5] sm:$0xff] }
 0x2fc   : > { %3189 = vpow2.f32 %v896_v8  ;;  %v914_v8 = vld [vmem:[#allocation4] sm:$0xff] }
 0x2fd   : > { %v859_v50 = vpop.permute.xlu0 %858  ;;  %v819_v63 = vpop.permute.xlu1 %818  ;;  %v930_v15 = vmul.f32 %v3874_v58, %v914_v8 }
 0x2fe   : > { %v872_v54 = vsub.f32 %v3750_v10, %v819_v63  ;;  %v880_v33 = vsub.f32 %v3754_v12, %v859_v50 }
 0x2ff   : > { %v3991_v48 = vpop.permute.xlu2 %1070 }
 0x300   : > { %v3186_v38 = vpop.eup %3185  ;;  %v894_v17 = vmul.f32 1.442695, %v872_v54 }
 0x301   : > { %v3188_v22 = vpop.eup %3187  ;;  %2943 = vmatmul.msk.f32.gmra.mxu3 %vm673_vm4, %v3186_v38  ;;  %v979_v28 = vsel %vm673_vm4, %v3186_v38, 0.0 }
 0x302   : > { %2937 = vmatmul.msk.f32.gmra.mxu1 %vm673_vm4, %v3188_v22  ;;  %3191 = vpow2.f32 %v894_v17  ;;  %v3190_v10 = vpop.eup %3189  ;;  %v961_v42 = vsel %vm673_vm4, %v3188_v22, 0.0  ;;  %v923_v17 = vld [vmem:[#allocation4 + $0x48] sm:$0xff] }
 0x303   : > { %986 = vadd.xlane.f32.xlu1 %v985_v14  ;;  %v967_v35 = vsel %vm673_vm4, %v3190_v10, 0.0  ;;  %v1028_v22 = vld [vmem:[#allocation5 + $0x8] sm:$0xff] }
 0x304   : > { %v915_v14 = vld [vmem:[#allocation4 + $0x8] sm:$0xff] }
 0x305   : > { %v829_v56 = vpop.permute.xlu0 %828  ;;  %v864_v27 = vpop.permute.xlu1 %863 }
 0x306   : > { %v874_v57 = vsub.f32 %v3706_v52, %v829_v56  ;;  %v881_v39 = vsub.f32 %v3762_v16, %v864_v27  ;;  %v910_v52 = vmul.f32 1.442695, %v880_v33  ;;  %v939_v56 = vmul.f32 %v3917_v26, %v923_v17  ;;  %v916_v33 = vld [vmem:[#allocation4 + $0x10] sm:$0xff]  ;;  %v1031_v17 = vld [vmem:[#allocation5 + $0x20] sm:$0xff] }
 0x307   : > { %v1124_v27 = vmul.f32 %v1051_v53, %v1028_v22  ;;  %v932_v26 = vmul.f32 %v3876_v41, %v916_v33  ;;  %v926_v53 = vld [vmem:[#allocation4 + $0x60] sm:$0xff] }
 0x308   : > { %v898_v61 = vmul.f32 1.442695, %v874_v57  ;;  %v912_v23 = vmul.f32 1.442695, %v881_v39  ;;  %v3192_v60 = vpop.eup %3191  ;;  %v931_v39 = vmul.f32 %v3880_v3, %v915_v14 }
 0x309   : > { %2944 = vmatmul.msk.f32.gmra.mxu3 %vm673_vm4, %v3180_v51  ;;  %v964_v31 = vsel %vm673_vm4, %v3192_v60, 0.0  ;;  %v4000_v51 = vpop.permute.xlu2 %1085 }
 0x30a   : > { %3193 = vpow2.f32 %v898_v61  ;;  %2938 = vmatmul.msk.f32.gmra.mxu1 %vm673_vm4, %v3192_v60  ;;  %965 = vadd.xlane.f32.xlu0 %v964_v31  ;;  %v1029_v31 = vld [vmem:[#allocation5 + $0x10] sm:$0xff] }
 0x30b   : > { %3195 = vpow2.f32 %v912_v23  ;;  %968 = vadd.xlane.f32.xlu1 %v967_v35  ;;  %v924_v35 = vld [vmem:[#allocation4 + $0x50] sm:$0xff] }
 0x30c   : > { %3197 = vpow2.f32 %v910_v52  ;;  %v940_v52 = vmul.f32 %v3906_v25, %v924_v35  ;;  %v1038_v35 = vld [vmem:[#allocation5 + $0x58] sm:$0xff] }
 0x30d   : > { %3199 = vpow2.f32 %v784_v43  ;;  %v1046_v30 = vpop.permute.xlu1 %1045  ;;  %v1056_v0 = vpop.permute.xlu0 %1055  ;;  %v1036_v43 = vld [vmem:[#allocation5 + $0x48] sm:$0xff] }
 0x30e   : > { %3201 = vpow2.f32 %v780_v24  ;;  %v1123_v50 = vmul.f32 %v1046_v30, %v1027_v6  ;;  %v1030_v24 = vld [vmem:[#allocation5 + $0x18] sm:$0xff]  ;;  %v942_v6 = vmul.f32 %v3924_v49, %v926_v53 }
 0x30f   : > { %3203 = vpow2.f32 %v782_v46  ;;  %v1037_v46 = vld [vmem:[#allocation5 + $0x50] sm:$0xff] }
 0x310   : > { %v3194_v16 = vpop.eup %3193 }
 0x311   : > { %v3196_v21 = vpop.eup %3195  ;;  %2945 = vmatmul.msk.f32.gmra.mxu3 %vm673_vm4, %v3184_v11  ;;  %v970_v32 = vsel %vm673_vm4, %v3194_v16, 0.0  ;;  %v4006_v4 = vpop.permute.xlu2 %1100 }
 0x312   : > { %2939 = vmatmul.msk.f32.gmra.mxu1 %vm673_vm4, %v3190_v10  ;;  %971 = vadd.xlane.f32.xlu2 %v970_v32  ;;  %v991_v12 = vsel %vm673_vm4, %v3196_v21, 0.0  ;;  %v3198_v37 = vpop.eup %3197 }
 0x313   : > { %992 = vadd.xlane.f32.xlu0 %v991_v12  ;;  %v3983_v19 = vpop.eup %3199  ;;  %v988_v5 = vsel %vm673_vm4, %v3198_v37, 0.0 }
 0x314   : > { %v3986_v40 = vpop.eup %3201 }
 0x315   : > { %v1061_v34 = vpop.permute.xlu1 %1060  ;;  %v3993_v44 = vpop.permute.xlu0 %1065 }
 0x316   : > { %v4004_v1 = vpop.eup %3203  ;;  %v1127_v22 = vmul.f32 %v3993_v44, %v1031_v17 }
 0x319   : > { %2946 = vmatmul.msk.f32.gmra.mxu3 %vm673_vm4, %v3198_v37 }
 0x31a   : > { %2940 = vmatmul.msk.f32.gmra.mxu1 %vm673_vm4, %v3194_v16  ;;  %956 = vadd.xlane.f32.xlu2 %v955_v47  ;;  %v1125_v16 = vmul.f32 %v1056_v0, %v1029_v31 }
 0x31d   : > { %v3995_v59 = vpop.permute.xlu1 %1075  ;;  %v4002_v55 = vpop.permute.xlu0 %1095 }
 0x321   : > { %2947 = vmatmul.msk.f32.gmra.mxu3 %vm673_vm4, %v3196_v21 }
 0x322   : > { %980 = vadd.xlane.f32.xlu2 %v979_v28 }
 0x324   : > { %1120 = vperm.xlu1 %3138, %v3983_v19  }
 0x325   : > { %v1091_v7 = vpop.permute.xlu1 %1090  ;;  %v4009_v63 = vpop.permute.xlu0 %1080 }
 0x326   : > { %v1132_v28 = vmul.f32 %v1091_v7, %v1036_v43  ;;  %v1133_v7 = vmul.f32 %v4002_v55, %v1037_v46 }
 0x327   : > { %1110 = vperm.xlu0 %3140, %v3986_v40  }
 0x32a   : > { %962 = vadd.xlane.f32.xlu2 %v961_v42  ;;  %v1126_v42 = vmul.f32 %v1061_v34, %v1030_v24 }
 0x32d   : > { %v4011_v54 = vpop.permute.xlu1 %1105 }
 0x332   : > { %989 = vadd.xlane.f32.xlu2 %v988_v5  ;;  %v918_v5 = vld [vmem:[#allocation4 + $0x20] sm:$0xff] }
 0x34a   : > { %1115 = vperm.xlu2 %3139, %v4004_v1  }
 0x350   : > { %v1204_v9 = vpop.f32.mrf.mxu1 }
 0x351   : > { %v1252_v20 = vadd.f32 %v1204_v9, %v1123_v50  ;;  %v948_v11 = vpop.xlane.xlu2 %947  ;;  %v934_v50 = vmul.f32 %v3887_v62, %v918_v5 }
 0x352   : > { %v994_v38 = vadd.f32 %v948_v11, %v930_v15 }
 0x353   : > { %1268 = vst.msk [vmem:[#allocation5] sm:$0xff] %vm531_vm3, %v1252_v20 }
 0x354   : > { %1011 = vst.msk [vmem:[#allocation4] sm:$0xff] %vm1010_vm5, %v994_v38  ;;  %v927_v38 = vld [vmem:[#allocation4 + $0x68] sm:$0xff] }
 0x355   : > { %v943_v49 = vmul.f32 %v3986_v40, %v927_v38 }
 0x357   : > { %v975_v57 = vpop.xlane.xlu0 %974 }
 0x358   : > { %v1003_v10 = vadd.f32 %v975_v57, %v939_v56  ;;  %v1207_v61 = vpop.f32.mrf.mxu1  ;;  %v951_v23 = vpop.xlane.xlu1 %950  ;;  %v921_v57 = vld [vmem:[#allocation4 + $0x38] sm:$0xff] }
 0x359   : > { %v1253_v58 = vadd.f32 %v1207_v61, %v1124_v27  ;;  %v995_v60 = vadd.f32 %v951_v23, %v931_v39  ;;  %v920_v27 = vld [vmem:[#allocation4 + $0x30] sm:$0xff]  ;;  %v1032_v39 = vld [vmem:[#allocation5 + $0x28] sm:$0xff]  ;;  %v937_v61 = vmul.f32 %v3915_v29, %v921_v57 }
 0x35a   : > { %1020 = vst.msk [vmem:[#allocation4 + $0x48] sm:$0xff] %vm1010_vm5, %v1003_v10  ;;  %v936_v10 = vmul.f32 %v3899_v18, %v920_v27  ;;  %v1128_v23 = vmul.f32 %v3991_v48, %v1032_v39  ;;  %v1033_v18 = vld [vmem:[#allocation5 + $0x30] sm:$0xff] }
 0x35b   : > { %1269 = vst.msk [vmem:[#allocation5 + $0x8] sm:$0xff] %vm531_vm3, %v1253_v58 }
 0x35c   : > { %1012 = vst.msk [vmem:[#allocation4 + $0x8] sm:$0xff] %vm1010_vm5, %v995_v60 }
 0x35f   : > { %v954_v3 = vpop.xlane.xlu0 %953 }
 0x360   : > { %v978_v21 = vpop.xlane.xlu1 %977  ;;  %v996_v32 = vadd.f32 %v954_v3, %v932_v26  ;;  %v922_v26 = vld [vmem:[#allocation4 + $0x40] sm:$0xff] }
 0x361   : > { %v1210_v12 = vpop.f32.mrf.mxu1  ;;  %v1004_v37 = vadd.f32 %v978_v21, %v940_v52  ;;  %v929_v52 = vld [vmem:[#allocation4 + $0x78] sm:$0xff]  ;;  %v938_v48 = vmul.f32 %v3910_v13, %v922_v26 }
 0x362   : > { %v1254_v47 = vadd.f32 %v1210_v12, %v1125_v16  ;;  %1013 = vst.msk [vmem:[#allocation4 + $0x10] sm:$0xff] %vm1010_vm5, %v996_v32  ;;  %v1134_v16 = vmul.f32 %v4006_v4, %v1038_v35  ;;  %v945_v32 = vmul.f32 %v3983_v19, %v929_v52  ;;  %v1129_v12 = vmul.f32 %v3995_v59, %v1033_v18  ;;  %v1034_v13 = vld [vmem:[#allocation5 + $0x38] sm:$0xff] }
 0x363   : > { %1021 = vst.msk [vmem:[#allocation4 + $0x50] sm:$0xff] %vm1010_vm5, %v1004_v37  ;;  %v1130_v53 = vmul.f32 %v4009_v63, %v1034_v13  ;;  %v1040_v63 = vld [vmem:[#allocation5 + $0x68] sm:$0xff] }
 0x364   : > { %1270 = vst.msk [vmem:[#allocation5 + $0x10] sm:$0xff] %vm531_vm3, %v1254_v47 }
 0x366   : > { %v1231_v30 = vpop.f32.mrf.mxu3 }
 0x367   : > { %v1261_v41 = vadd.f32 %v1231_v30, %v1132_v28  ;;  %v1039_v28 = vld [vmem:[#allocation5 + $0x60] sm:$0xff]  ;;  %v917_v30 = vld [vmem:[#allocation4 + $0x18] sm:$0xff] }
 0x368   : > { %v1135_v19 = vmul.f32 %v4011_v54, %v1039_v28  ;;  %v933_v59 = vmul.f32 %v3885_v2, %v917_v30 }
 0x369   : > { %1277 = vst.msk [vmem:[#allocation5 + $0x48] sm:$0xff] %vm531_vm3, %v1261_v41  ;;  %v1213_v25 = vpop.f32.mrf.mxu1 }
 0x36a   : > { %v1255_v0 = vadd.f32 %v1213_v25, %v1126_v42 }
 0x36c   : > { %1271 = vst.msk [vmem:[#allocation5 + $0x18] sm:$0xff] %vm531_vm3, %v1255_v0 }
 0x36d   : > { %v984_v8 = vpop.xlane.xlu0 %983 }
 0x36e   : > { %v1006_v9 = vadd.f32 %v984_v8, %v942_v6  ;;  %v960_v15 = vpop.xlane.xlu1 %959  ;;  %v1234_v34 = vpop.f32.mrf.mxu3  ;;  %v925_v6 = vld [vmem:[#allocation4 + $0x58] sm:$0xff]  ;;  %v1035_v8 = vld [vmem:[#allocation5 + $0x40] sm:$0xff] }
 0x36f   : > { %v998_v20 = vadd.f32 %v960_v15, %v934_v50  ;;  %v1262_v11 = vadd.f32 %v1234_v34, %v1133_v7  ;;  %v941_v54 = vmul.f32 %v3921_v45, %v925_v6  ;;  %v1131_v2 = vmul.f32 %v4000_v51, %v1035_v8  ;;  %v1042_v51 = vld [vmem:[#allocation5 + $0x78] sm:$0xff] }
 0x370   : > { %1023 = vst.msk [vmem:[#allocation4 + $0x60] sm:$0xff] %vm1010_vm5, %v1006_v9 }
 0x371   : > { %1015 = vst.msk [vmem:[#allocation4 + $0x20] sm:$0xff] %vm1010_vm5, %v998_v20 }
 0x372   : > { %1278 = vst.msk [vmem:[#allocation5 + $0x50] sm:$0xff] %vm531_vm3, %v1262_v11  ;;  %v919_v11 = vld [vmem:[#allocation4 + $0x28] sm:$0xff] }
 0x376   : > { %v987_v62 = vpop.xlane.xlu1 %986 }
 0x377   : > { %v1007_v14 = vadd.f32 %v987_v62, %v943_v49  ;;  %v1216_v55 = vpop.f32.mrf.mxu1 }
 0x378   : > { %v1256_v56 = vadd.f32 %v1216_v55, %v1127_v22  ;;  %v935_v22 = vmul.f32 %v3894_v36, %v919_v11  ;;  %v928_v55 = vld [vmem:[#allocation4 + $0x70] sm:$0xff] }
 0x379   : > { %1024 = vst.msk [vmem:[#allocation4 + $0x68] sm:$0xff] %vm1010_vm5, %v1007_v14  ;;  %v944_v57 = vmul.f32 %v4004_v1, %v928_v55  ;;  %v1041_v36 = vld [vmem:[#allocation5 + $0x70] sm:$0xff] }
 0x37a   : > { %1272 = vst.msk [vmem:[#allocation5 + $0x20] sm:$0xff] %vm531_vm3, %v1256_v56 }
 0x37d   : > { %v966_v40 = vpop.xlane.xlu0 %965 }
 0x37e   : > { %v969_v58 = vpop.xlane.xlu1 %968  ;;  %v1000_v44 = vadd.f32 %v966_v40, %v936_v10 }
 0x37f   : > { %v1001_v60 = vadd.f32 %v969_v58, %v937_v61  ;;  %v1219_v33 = vpop.f32.mrf.mxu1 }
 0x380   : > { %v1257_v31 = vadd.f32 %v1219_v33, %v1128_v23  ;;  %1017 = vst.msk [vmem:[#allocation4 + $0x30] sm:$0xff] %vm1010_vm5, %v1000_v44 }
 0x381   : > { %1018 = vst.msk [vmem:[#allocation4 + $0x38] sm:$0xff] %vm1010_vm5, %v1001_v60 }
 0x382   : > { %1273 = vst.msk [vmem:[#allocation5 + $0x28] sm:$0xff] %vm531_vm3, %v1257_v31 }
 0x384   : > { %v1237_v29 = vpop.f32.mrf.mxu3 }
 0x385   : > { %v1263_v3 = vadd.f32 %v1237_v29, %v1134_v16  ;;  %v972_v21 = vpop.xlane.xlu2 %971 }
 0x386   : > { %v1002_v37 = vadd.f32 %v972_v21, %v938_v48  ;;  %v993_v43 = vpop.xlane.xlu0 %992 }
 0x387   : > { %1279 = vst.msk [vmem:[#allocation5 + $0x58] sm:$0xff] %vm531_vm3, %v1263_v3  ;;  %v1009_v47 = vadd.f32 %v993_v43, %v945_v32  ;;  %v1222_v24 = vpop.f32.mrf.mxu1 }
 0x388   : > { %1019 = vst.msk [vmem:[#allocation4 + $0x40] sm:$0xff] %vm1010_vm5, %v1002_v37  ;;  %v1258_v4 = vadd.f32 %v1222_v24, %v1129_v12 }
 0x389   : > { %1026 = vst.msk [vmem:[#allocation4 + $0x78] sm:$0xff] %vm1010_vm5, %v1009_v47 }
 0x38a   : > { %1274 = vst.msk [vmem:[#allocation5 + $0x30] sm:$0xff] %vm531_vm3, %v1258_v4 }
 0x38c   : > { %v1240_v41 = vpop.f32.mrf.mxu3 }
 0x38d   : > { %v1264_v42 = vadd.f32 %v1240_v41, %v1135_v19  ;;  %v957_v25 = vpop.xlane.xlu2 %956 }
 0x38e   : > { %v997_v0 = vadd.f32 %v957_v25, %v933_v59 }
 0x38f   : > { %1280 = vst.msk [vmem:[#allocation5 + $0x60] sm:$0xff] %vm531_vm3, %v1264_v42  ;;  %v1225_v5 = vpop.f32.mrf.mxu1 }
 0x390   : > { %1014 = vst.msk [vmem:[#allocation4 + $0x18] sm:$0xff] %vm1010_vm5, %v997_v0  ;;  %v1259_v46 = vadd.f32 %v1225_v5, %v1130_v53 }
 0x392   : > { %1275 = vst.msk [vmem:[#allocation5 + $0x38] sm:$0xff] %vm531_vm3, %v1259_v46 }
 0x394   : > { %v1243_v50 = vpop.f32.mrf.mxu3 }
 0x395   : > { %v981_v7 = vpop.xlane.xlu2 %980 }
 0x396   : > { %v1005_v9 = vadd.f32 %v981_v7, %v941_v54  ;;  %v1121_v14 = vpop.permute.xlu1 %1120 }
 0x397   : > { %v1228_v15 = vpop.f32.mrf.mxu1  ;;  %v1138_v56 = vmul.f32 %v1121_v14, %v1042_v51 }
 0x398   : > { %1022 = vst.msk [vmem:[#allocation4 + $0x58] sm:$0xff] %vm1010_vm5, %v1005_v9  ;;  %v1260_v20 = vadd.f32 %v1228_v15, %v1131_v2 }
 0x399   : > { %v1111_v34 = vpop.permute.xlu0 %1110 }
 0x39a   : > { %1276 = vst.msk [vmem:[#allocation5 + $0x40] sm:$0xff] %vm531_vm3, %v1260_v20  ;;  %v1136_v38 = vmul.f32 %v1111_v34, %v1040_v63 }
 0x39c   : > { %v1265_v17 = vadd.f32 %v1243_v50, %v1136_v38  ;;  %v1246_v49 = vpop.f32.mrf.mxu3 }
 0x39d   : > { %v963_v62 = vpop.xlane.xlu2 %962 }
 0x39e   : > { %1281 = vst.msk [vmem:[#allocation5 + $0x68] sm:$0xff] %vm531_vm3, %v1265_v17  ;;  %v999_v45 = vadd.f32 %v963_v62, %v935_v22 }
 0x3a0   : > { %1016 = vst.msk [vmem:[#allocation4 + $0x28] sm:$0xff] %vm1010_vm5, %v999_v45 }
 0x3a4   : > { %v1249_v27 = vpop.f32.mrf.mxu3 }
 0x3a5   : > { %v1267_v39 = vadd.f32 %v1249_v27, %v1138_v56  ;;  %v990_v10 = vpop.xlane.xlu2 %989 }
 0x3a6   : > { %v1008_v61 = vadd.f32 %v990_v10, %v944_v57 }
 0x3a7   : > { %1283 = vst.msk [vmem:[#allocation5 + $0x78] sm:$0xff] %vm531_vm3, %v1267_v39 }
 0x3a8   : > { %1025 = vst.msk [vmem:[#allocation4 + $0x70] sm:$0xff] %vm1010_vm5, %v1008_v61 }
 0x3ad   : > { %v1116_v23 = vpop.permute.xlu2 %1115 }
 0x3ae   : > { %v1137_v40 = vmul.f32 %v1116_v23, %v1041_v36 }
 0x3b0   : > { %v1266_v58 = vadd.f32 %v1246_v49, %v1137_v40 }
 0x3b2   : > { %1282 = vst.msk [vmem:[#allocation5 + $0x70] sm:$0xff] %vm531_vm3, %v1266_v58 }
 0x3b3 PF: > { %p1300_p5 = scmp.gt.s32.totalorder %s3012_s8, %s499_s10 }
 0x3b5   : > { %p1301_p8 = pnand %p1300_p5, %p3665_p2 }
 0x3b7   : > { %1304 = sbr.rel (%p1301_p8) target bundleno = 1570 (0x622), region = 56 }
 0x3bc   : > { %s1305_s27 = scalar_lea.vmem %s3563_s9, %s3657_s15  ;;  %vm5095_vm6 = vcmask 130048   ;;  %v1315_v35 = vld [vmem:[#allocation2] sm:$0xff]  ;;  %v1316_v26 = vld [vmem:[#allocation2 + $0x8] sm:$0xff]  ;;  %v1317_v16 = vld [vmem:[#allocation2 + $0x10] sm:$0xff]  ;;  %v1457_v28 = vlaneseq  ;;  %v1492_v19 = vstv %s3657_s15  ;;  %v4106_v41 = vstv %s3660_s16  ;;  %s1310_s9 = scalar_lea.vmem %s3568_s18, %s3657_s15 }
 0x3bd   : > { %v1309_v1 = vld [vmem:[%s1305_s27 + $0x18] sm:$0xff]  ;;  %v1308_v44 = vld [vmem:[%s1305_s27 + $0x10] sm:$0xff]  ;;  %v1307_v60 = vld [vmem:[%s1305_s27 + $0x8] sm:$0xff]  ;;  %vm1559_vm8 = vcmask 261120  }
 0x3be   : > { %2948 = vmatpush.xpose.msk.msra.mxu0 %vm5095_vm6, %v1309_v1  ;;  %3033 = vmatpush.xpose.msk.msra.mxu2 %vm5095_vm6, %v1309_v1  ;;  %v1306_v33 = vld [vmem:[%s1305_s27] sm:$0xff]  ;;  %v1324_v52 = vld [vmem:[#allocation2 + $0x48] sm:$0xff]  ;;  %v1325_v18 = vld [vmem:[#allocation2 + $0x50] sm:$0xff]  ;;  %v4101_v4 = vshrl.u32 %v1457_v28, 7  ;;  %v1491_v13 = vand.u32 127, %v1457_v28 }
 0x3bf   : > { %v1323_v31 = vld [vmem:[#allocation2 + $0x40] sm:$0xff]  ;;  %v1318_v29 = vld [vmem:[#allocation2 + $0x18] sm:$0xff]  ;;  %v1320_v32 = vld [vmem:[#allocation2 + $0x28] sm:$0xff] }
 0x3c0   : > { %v1326_v48 = vld [vmem:[#allocation2 + $0x58] sm:$0xff]  ;;  %v1319_v3 = vld [vmem:[#allocation2 + $0x20] sm:$0xff]  ;;  %v1328_v12 = vld [vmem:[#allocation2 + $0x68] sm:$0xff]  ;;  %v1474_v30 = vand.u32 31, %v4101_v4  ;;  %v1466_v59 = vadd.s32 64, %v4101_v4  ;;  %v4109_v42 = vadd.s32 %v1492_v19, %v1491_v13  ;;  %v1459_v53 = vadd.s32 8, %v4101_v4 }
 0x3c1   : > { %v1327_v21 = vld [vmem:[#allocation2 + $0x60] sm:$0xff]  ;;  %v1321_v37 = vld [vmem:[#allocation2 + $0x30] sm:$0xff]  ;;  %v1322_v47 = vld [vmem:[#allocation2 + $0x38] sm:$0xff]  ;;  %v1467_v8 = vadd.s32 72, %v4101_v4  ;;  %v1460_v2 = vadd.s32 16, %v4101_v4  ;;  %v1468_v17 = vadd.s32 80, %v4101_v4 }
 0x3c2   : > { %2949 = vmatpush.xpose.msk.msra.mxu0 %vm5095_vm6, %v1308_v44  ;;  %3034 = vmatpush.xpose.msk.msra.mxu2 %vm5095_vm6, %v1308_v44  ;;  %v1329_v43 = vld [vmem:[#allocation2 + $0x70] sm:$0xff]  ;;  %v1330_v24 = vld [vmem:[#allocation2 + $0x78] sm:$0xff]  ;;  %v4112_v25 = vadd.s32 %v4106_v41, %v1474_v30  ;;  %v1482_v0 = vand.u32 31, %v1466_v59  ;;  %v1475_v5 = vand.u32 31, %v1459_v53  ;;  %v1461_v27 = vadd.s32 24, %v4101_v4 }
 0x3c3   : > { %v1483_v9 = vand.u32 31, %v1467_v8  ;;  %v1476_v63 = vand.u32 31, %v1460_v2  ;;  %v1484_v45 = vand.u32 31, %v1468_v17  ;;  %v1469_v57 = vadd.s32 88, %v4101_v4 }
 0x3c4   : > { %vm1511_vm7 = vcmp.gt.s32.totalorder %v4109_v42, %v4112_v25  ;;  %v4118_v6 = vadd.s32 %v4106_v41, %v1482_v0  ;;  %v4129_v7 = vadd.s32 %v4106_v41, %v1475_v5  ;;  %v1477_v36 = vand.u32 31, %v1461_v27 }
 0x3c5   : > { %v4144_v38 = vadd.s32 %v4106_v41, %v1483_v9  ;;  %v4155_v62 = vadd.s32 %v4106_v41, %v1476_v63  ;;  %v4167_v56 = vadd.s32 %v4106_v41, %v1484_v45  ;;  %v1485_v23 = vand.u32 31, %v1469_v57 }
 0x3c6   : > { %2950 = vmatpush.xpose.msk.msra.mxu0 %vm5095_vm6, %v1307_v60  ;;  %3035 = vmatpush.xpose.msk.msra.mxu2 %vm5095_vm6, %v1307_v60  ;;  %5117 = vst [vmem:[#allocation19_spill] sm:$0xff] %v4118_v6  ;;  %vm5096_vm9 = vcmp.gt.s32.totalorder %v4109_v42, %v4118_v6  ;;  %vm1512_vm10 = vcmp.gt.s32.totalorder %v4109_v42, %v4129_v7  ;;  %v1462_v40 = vadd.s32 32, %v4101_v4  ;;  %v1470_v44 = vadd.s32 96, %v4101_v4 }
 0x3c7   : > { %vm1520_vm11 = vcmp.gt.s32.totalorder %v4109_v42, %v4144_v38  ;;  %vm1513_vm12 = vcmp.gt.s32.totalorder %v4109_v42, %v4155_v62  ;;  %vm1521_vm13 = vcmp.gt.s32.totalorder %v4109_v42, %v4167_v56  ;;  %v1465_v9 = vadd.s32 56, %v4101_v4 }
 0x3c8   : > { %v1473_v27 = vadd.s32 120, %v4101_v4 }
 0x3c9   : > { %v1481_v17 = vand.u32 31, %v1465_v9 }
 0x3ca   : > { %2951 = vmatpush.xpose.msk.msra.mxu0 %vm5095_vm6, %v1306_v33  ;;  %3036 = vmatpush.xpose.msk.msra.mxu2 %vm5095_vm6, %v1306_v33  ;;  %v4190_v33 = vadd.s32 %v4106_v41, %v1477_v36  ;;  %v1489_v36 = vand.u32 31, %v1473_v27 }
 0x3cc   : > { %vm1514_vm14 = vcmp.gt.s32.totalorder %v4109_v42, %v4190_v33 }
 0x3cd   : > { %2952 = vmatmul.msk.f32.vlgmr.msra.gmra.mxu0 %vm5095_vm6, %v1315_v35  ;;  %2960 = vmatmul.msk.f32.vlgmr.msra.gmra.mxu2 %vm5095_vm6, %v1323_v31  ;;  %v4193_v35 = vadd.s32 %v4106_v41, %v1485_v23  ;;  %v1478_v31 = vand.u32 31, %v1462_v40 }
 0x3cf   : > { %vm1522_vm15 = vcmp.gt.s32.totalorder %v4109_v42, %v4193_v35 }
 0x3d5   : > { %2953 = vmatmul.msk.f32.gmra.mxu0 %vm5095_vm6, %v1316_v26  ;;  %2961 = vmatmul.msk.f32.gmra.mxu2 %vm5095_vm6, %v1324_v52  ;;  %v1486_v52 = vand.u32 31, %v1470_v44  ;;  %v4299_v44 = vadd.s32 %v4106_v41, %v1489_v36 }
 0x3d7   : > { %5118 = vst [vmem:[#allocation20_spill] sm:$0xff] %v4299_v44 }
 0x3dd   : > { %2954 = vmatmul.msk.f32.gmra.mxu0 %vm5095_vm6, %v1317_v16  ;;  %2962 = vmatmul.msk.f32.gmra.mxu2 %vm5095_vm6, %v1325_v18  ;;  %v4202_v16 = vadd.s32 %v4106_v41, %v1478_v31  ;;  %v1463_v18 = vadd.s32 40, %v4101_v4 }
 0x3df   : > { %vm1515_vm0 = vcmp.gt.s32.totalorder %v4109_v42, %v4202_v16 }
 0x3e5   : > { %2955 = vmatmul.msk.f32.gmra.mxu0 %vm5095_vm6, %v1318_v29  ;;  %2963 = vmatmul.msk.f32.gmra.mxu2 %vm5095_vm6, %v1326_v48 }
 0x3ed   : > { %2956 = vmatmul.msk.f32.gmra.mxu0 %vm5095_vm6, %v1319_v3  ;;  %2964 = vmatmul.msk.f32.gmra.mxu2 %vm5095_vm6, %v1327_v21  ;;  %v4216_v21 = vadd.s32 %v4106_v41, %v1486_v52 }
 0x3ef   : > { %vm1523_vm1 = vcmp.gt.s32.totalorder %v4109_v42, %v4216_v21 }
 0x3f5   : > { %2957 = vmatmul.msk.f32.gmra.mxu0 %vm5095_vm6, %v1320_v32  ;;  %2965 = vmatmul.msk.f32.gmra.mxu2 %vm5095_vm6, %v1328_v12 }
 0x3fd   : > { %2958 = vmatmul.msk.f32.gmra.mxu0 %vm5095_vm6, %v1321_v37  ;;  %2966 = vmatmul.msk.f32.gmra.mxu2 %vm5095_vm6, %v1329_v43  ;;  %v1479_v37 = vand.u32 31, %v1463_v18  ;;  %v1471_v43 = vadd.s32 104, %v4101_v4  ;;  %v3426_v18 = vmov 0  }
 0x3fe   : > { %3205 = vset.pattern.permute.xlu1 %v3426_v18  ;;  %3206 = vset.pattern.permute.xlu2 %v3426_v18 }
 0x3ff   : > { %v4234_v30 = vadd.s32 %v4106_v41, %v1479_v37  ;;  %v1487_v13 = vand.u32 31, %v1471_v43  ;;  %3207 = vset.pattern.permute.xlu0 %v3426_v18  ;;  %v4325_v37 = vld [vmem:[#allocation3 + $0x40] sm:$0xff] }
 0x401   : > { %vm1516_vm2 = vcmp.gt.s32.totalorder %v4109_v42, %v4234_v30  ;;  %v4248_v8 = vadd.s32 %v4106_v41, %v1487_v13 }
 0x403   : > { %vm1524_vm3 = vcmp.gt.s32.totalorder %v4109_v42, %v4248_v8 }
 0x405   : > { %2959 = vmatmul.msk.f32.gmra.mxu0 %vm5095_vm6, %v1322_v47  ;;  %2967 = vmatmul.msk.f32.gmra.mxu2 %vm5095_vm6, %v1330_v24  ;;  %v1464_v24 = vadd.s32 48, %v4101_v4 }
 0x407   : > { %v1480_v53 = vand.u32 31, %v1464_v24 }
 0x409   : > { %v4252_v2 = vadd.s32 %v4106_v41, %v1480_v53  ;;  %v4338_v53 = vld [vmem:[#allocation3 + $0x48] sm:$0xff] }
 0x40b   : > { %vm1517_vm4 = vcmp.gt.s32.totalorder %v4109_v42, %v4252_v2  ;;  %v5126_v2 = vld [vmem:[#allocation19_spill] sm:$0xff] }
 0x44a   : > { %v1409_v46 = vpop.f32.mrf.mxu0 }
 0x44b   : > { %v4124_v50 = vsel %vm1511_vm7, -1e+30, %v1409_v46 }
 0x44c   : > { %v1560_v54 = vsel %vm1559_vm8, %v4124_v50, -inf }
 0x44d   : > { %1561 = vmax.xlane.f32.xlu0 %v1560_v54  ;;  %v1472_v54 = vadd.s32 112, %v4101_v4 }
 0x44f   : > { %v1488_v63 = vand.u32 31, %v1472_v54 }
 0x450   : > { %v1433_v15 = vpop.f32.mrf.mxu2 }
 0x451   : > { %v4139_v20 = vsel %vm5096_vm9, -1e+30, %v1433_v15  ;;  %vm1526_vm9 = vcmp.gt.s32.totalorder %v4109_v42, %v4299_v44  ;;  %v4404_v44 = vld [vmem:[#allocation3 + $0x38] sm:$0xff] }
 0x452   : > { %v1412_v34 = vpop.f32.mrf.mxu0  ;;  %v1584_v11 = vsel %vm1559_vm8, %v4139_v20, -inf }
 0x453   : > { %v4150_v49 = vsel %vm1512_vm10, -1e+30, %v1412_v34  ;;  %1585 = vmax.xlane.f32.xlu2 %v1584_v11 }
 0x454   : > { %v1563_v22 = vsel %vm1559_vm8, %v4150_v49, -inf }
 0x455   : > { %1564 = vmax.xlane.f32.xlu0 %v1563_v22 }
 0x458   : > { %v1436_v51 = vpop.f32.mrf.mxu2 }
 0x459   : > { %v4164_v14 = vsel %vm1520_vm11, -1e+30, %v1436_v51 }
 0x45a   : > { %v1415_v55 = vpop.f32.mrf.mxu0  ;;  %v1587_v10 = vsel %vm1559_vm8, %v4164_v14, -inf }
 0x45b   : > { %v4174_v39 = vsel %vm1513_vm12, -1e+30, %v1415_v55  ;;  %v4274_v55 = vadd.s32 %v4106_v41, %v1488_v63 }
 0x45c   : > { %v1566_v61 = vsel %vm1559_vm8, %v4174_v39, -inf }
 0x45d   : > { %1588 = vmax.xlane.f32.xlu0 %v1587_v10  ;;  %1567 = vmax.xlane.f32.xlu1 %v1566_v61  ;;  %v4283_v10 = vadd.s32 %v4106_v41, %v1481_v17  ;;  %vm5097_vm5 = vcmp.gt.s32.totalorder %v4109_v42, %v4274_v55 }
 0x45f   : > { %vm1518_vm6 = vcmp.gt.s32.totalorder %v4109_v42, %v4283_v10 }
 0x460   : > { %v1439_v58 = vpop.f32.mrf.mxu2 }
 0x461   : > { %v4186_v1 = vsel %vm1521_vm13, -1e+30, %v1439_v58 }
 0x462   : > { %v1418_v60 = vpop.f32.mrf.mxu0  ;;  %v1590_v26 = vsel %vm1559_vm8, %v4186_v1, -inf }
 0x463   : > { %v4208_v48 = vsel %vm1514_vm14, -1e+30, %v1418_v60 }
 0x464   : > { %v1569_v47 = vsel %vm1559_vm8, %v4208_v48, -inf }
 0x465   : > { %1591 = vmax.xlane.f32.xlu1 %v1590_v26 }
 0x468   : > { %v1442_v29 = vpop.f32.mrf.mxu2 }
 0x469   : > { %v4213_v3 = vsel %vm1522_vm15, -1e+30, %v1442_v29  ;;  %v4317_v29 = vld [vmem:[#allocation3] sm:$0xff] }
 0x46a   : > { %v1421_v32 = vpop.f32.mrf.mxu0  ;;  %v1593_v12 = vsel %vm1559_vm8, %v4213_v3, -inf }
 0x46b   : > { %1594 = vmax.xlane.f32.xlu2 %v1593_v12  ;;  %v4229_v28 = vsel %vm1515_vm0, -1e+30, %v1421_v32 }
 0x46c   : > { %v1572_v59 = vsel %vm1559_vm8, %v4229_v28, -inf }
 0x46d   : > { %1570 = vmax.xlane.f32.xlu1 %v1569_v47  ;;  %v4327_v47 = vld [vmem:[#allocation3 + $0x8] sm:$0xff] }
 0x470   : > { %v1445_v19 = vpop.f32.mrf.mxu2 }
 0x471   : > { %v4241_v0 = vsel %vm1523_vm1, -1e+30, %v1445_v19 }
 0x472   : > { %v1424_v5 = vpop.f32.mrf.mxu0  ;;  %v1596_v46 = vsel %vm1559_vm8, %v4241_v0, -inf }
 0x473   : > { %1597 = vmax.xlane.f32.xlu0 %v1596_v46  ;;  %1573 = vmax.xlane.f32.xlu2 %v1572_v59  ;;  %v4258_v15 = vsel %vm1516_vm2, -1e+30, %v1424_v5  ;;  %v4340_v5 = vld [vmem:[#allocation3 + $0x10] sm:$0xff] }
 0x474   : > { %v1575_v11 = vsel %vm1559_vm8, %v4258_v15, -inf }
 0x478   : > { %v1448_v34 = vpop.f32.mrf.mxu2 }
 0x479   : > { %v4269_v22 = vsel %vm1524_vm3, -1e+30, %v1448_v34 }
 0x47a   : > { %v1427_v45 = vpop.f32.mrf.mxu0  ;;  %v1599_v51 = vsel %vm1559_vm8, %v4269_v22, -inf }
 0x47b   : > { %v4280_v57 = vsel %vm1517_vm4, -1e+30, %v1427_v45  ;;  %1600 = vmax.xlane.f32.xlu1 %v1599_v51  ;;  %1576 = vmax.xlane.f32.xlu2 %v1575_v11  ;;  %v4356_v11 = vld [vmem:[#allocation3 + $0x50] sm:$0xff]  ;;  %v4364_v51 = vld [vmem:[#allocation3 + $0x58] sm:$0xff] }
 0x47c   : > { %v1578_v61 = vsel %vm1559_vm8, %v4280_v57, -inf }
 0x47d   : > { %1579 = vmax.xlane.f32.xlu0 %v1578_v61  ;;  %v4366_v61 = vld [vmem:[#allocation3 + $0x18] sm:$0xff] }
 0x480   : > { %v1451_v23 = vpop.f32.mrf.mxu2 }
 0x481   : > { %v4294_v4 = vsel %vm5097_vm5, -1e+30, %v1451_v23  ;;  %vm1912_vm5 = vcmask 7168  }
 0x482   : > { %v1430_v40 = vpop.f32.mrf.mxu0  ;;  %v1602_v58 = vsel %vm1559_vm8, %v4294_v4, -inf }
 0x483   : > { %v4304_v60 = vsel %vm1518_vm6, -1e+30, %v1430_v40  ;;  %1603 = vmax.xlane.f32.xlu2 %v1602_v58  ;;  %v4379_v58 = vld [vmem:[#allocation3 + $0x60] sm:$0xff] }
 0x484   : > { %v1581_v31 = vsel %vm1559_vm8, %v4304_v60, -inf }
 0x485   : > { %1582 = vmax.xlane.f32.xlu1 %v1581_v31  ;;  %v1547_v31 = vld [vmem:[#allocation3 + $0x20] sm:$0xff] }
 0x488   : > { %v1454_v26 = vpop.f32.mrf.mxu2 }
 0x489   : > { %v4313_v52 = vsel %vm1526_vm9, -1e+30, %v1454_v26 }
 0x48a   : > { %v1605_v41 = vsel %vm1559_vm8, %v4313_v52, -inf }
 0x48b   : > { %1606 = vmax.xlane.f32.xlu0 %v1605_v41 }
 0x4c0   : > { %v1562_v32 = vpop.xlane.xlu0 %1561 }
 0x4c1   : > { %v4320_v12 = vmax.f32 %v4317_v29, %v1562_v32 }
 0x4c3   : > { %2186 = vst.msk [vmem:[#allocation3] sm:$0xff] %vm1912_vm5, %v4320_v12  ;;  %1674 = vperm.xlu1 %3205, %v4320_v12  }
 0x4c6   : > { %v1586_v43 = vpop.xlane.xlu2 %1585 }
 0x4c7   : > { %v4330_v24 = vmax.f32 %v4325_v37, %v1586_v43  ;;  %v4389_v43 = vld [vmem:[#allocation3 + $0x68] sm:$0xff] }
 0x4c8   : > { %v1565_v13 = vpop.xlane.xlu0 %1564  ;;  %5119 = vst [vmem:[#allocation21_spill] sm:$0xff] %v4389_v43 }
 0x4c9   : > { %2194 = vst.msk [vmem:[#allocation3 + $0x40] sm:$0xff] %vm1912_vm5, %v4330_v24  ;;  %v1609_v59 = vmax.f32 %v4327_v47, %v1565_v13  ;;  %v1548_v13 = vld [vmem:[#allocation3 + $0x28] sm:$0xff] }
 0x4cb   : > { %2187 = vst.msk [vmem:[#allocation3 + $0x8] sm:$0xff] %vm1912_vm5, %v1609_v59  ;;  %1679 = vperm.xlu2 %3206, %v1609_v59   ;;  %v1625_v19 = vsub.f32 %v4327_v47, %v1609_v59 }
 0x4d0   : > { %v1589_v46 = vpop.xlane.xlu0 %1588  ;;  %v1568_v54 = vpop.xlane.xlu1 %1567 }
 0x4d1   : > { %v4343_v9 = vmax.f32 %v4338_v53, %v1589_v46  ;;  %v4346_v63 = vmax.f32 %v4340_v5, %v1568_v54 }
 0x4d3   : > { %2195 = vst.msk [vmem:[#allocation3 + $0x48] sm:$0xff] %vm1912_vm5, %v4343_v9  ;;  %1719 = vperm.xlu2 %3206, %v4343_v9   ;;  %1684 = vperm.xlu0 %3207, %v4346_v63   ;;  %v1626_v59 = vsub.f32 %v4340_v5, %v4346_v63 }
 0x4d4   : > { %2188 = vst.msk [vmem:[#allocation3 + $0x10] sm:$0xff] %vm1912_vm5, %v4346_v63 }
 0x4d8   : > { %v1592_v17 = vpop.xlane.xlu1 %1591 }
 0x4d9   : > { %v4359_v45 = vmax.f32 %v4356_v11, %v1592_v17  ;;  %v1549_v17 = vld [vmem:[#allocation3 + $0x30] sm:$0xff] }
 0x4db   : > { %2196 = vst.msk [vmem:[#allocation3 + $0x50] sm:$0xff] %vm1912_vm5, %v4359_v45  ;;  %1724 = vperm.xlu1 %3205, %v4359_v45  }
 0x4de   : > { %v1595_v27 = vpop.xlane.xlu2 %1594 }
 0x4df   : > { %v4369_v36 = vmax.f32 %v4364_v51, %v1595_v27 }
 0x4e0   : > { %v1571_v23 = vpop.xlane.xlu1 %1570 }
 0x4e1   : > { %2197 = vst.msk [vmem:[#allocation3 + $0x58] sm:$0xff] %vm1912_vm5, %v4369_v36  ;;  %v4374_v40 = vmax.f32 %v4366_v61, %v1571_v23 }
 0x4e3   : > { %2189 = vst.msk [vmem:[#allocation3 + $0x18] sm:$0xff] %vm1912_vm5, %v4374_v40  ;;  %1689 = vperm.xlu2 %3206, %v4374_v40  }
 0x4e6   : > { %v1598_v26 = vpop.xlane.xlu0 %1597  ;;  %v1574_v41 = vpop.xlane.xlu2 %1573 }
 0x4e7   : > { %v4382_v18 = vmax.f32 %v4379_v58, %v1598_v26  ;;  %v1612_v32 = vmax.f32 %v1547_v31, %v1574_v41 }
 0x4e9   : > { %2198 = vst.msk [vmem:[#allocation3 + $0x60] sm:$0xff] %vm1912_vm5, %v4382_v18  ;;  %1734 = vperm.xlu0 %3207, %v4382_v18   ;;  %1694 = vperm.xlu1 %3205, %v1612_v32  }
 0x4ea   : > { %2190 = vst.msk [vmem:[#allocation3 + $0x20] sm:$0xff] %vm1912_vm5, %v1612_v32 }
 0x4eb   : > { %1729 = vperm.xlu2 %3206, %v4369_v36  }
 0x4ee   : > { %v1601_v46 = vpop.xlane.xlu1 %1600  ;;  %v1577_v54 = vpop.xlane.xlu2 %1576 }
 0x4ef   : > { %v4392_v27 = vmax.f32 %v4389_v43, %v1601_v46  ;;  %v1613_v23 = vmax.f32 %v1548_v13, %v1577_v54  ;;  %v4402_v46 = vld [vmem:[#allocation3 + $0x70] sm:$0xff]  ;;  %v1642_v43 = vmul.f32 1.442695, %v1625_v19 }
 0x4f0   : > { %v1580_v26 = vpop.xlane.xlu0 %1579  ;;  %5121 = vst [vmem:[#allocation23_spill] sm:$0xff] %v4402_v46 }
 0x4f1   : > { %5120 = vst [vmem:[#allocation22_spill] sm:$0xff] %v4392_v27  ;;  %1699 = vperm.xlu1 %3205, %v1613_v23   ;;  %v1614_v34 = vmax.f32 %v1549_v17, %v1580_v26  ;;  %v1624_v26 = vsub.f32 %v4317_v29, %v4320_v12  ;;  %3208 = vpow2.f32 %v1642_v43  ;;  %v1629_v19 = vsub.f32 %v1548_v13, %v1613_v23  ;;  %v4420_v29 = vld [vmem:[#allocation3 + $0x78] sm:$0xff] }
 0x4f2   : > { %2199 = vst.msk [vmem:[#allocation3 + $0x68] sm:$0xff] %vm1912_vm5, %v4392_v27  ;;  %v1628_v43 = vsub.f32 %v1547_v31, %v1612_v32  ;;  %v1634_v32 = vsub.f32 %v4356_v11, %v4359_v45  ;;  %v1314_v45 = vld [vmem:[%s1310_s9 + $0x18] sm:$0xff] }
 0x4f3   : > { %2191 = vst.msk [vmem:[#allocation3 + $0x28] sm:$0xff] %vm1912_vm5, %v1613_v23  ;;  %1739 = vperm.xlu2 %3206, %v4392_v27   ;;  %v1640_v12 = vmul.f32 1.442695, %v1624_v26  ;;  %v5123_v23 = vsub.f32 %v4325_v37, %v4330_v24  ;;  %3037 = vmatpush.msra.mxu3 %v1314_v45 }
 0x4f4   : > { %2192 = vst.msk [vmem:[#allocation3 + $0x30] sm:$0xff] %vm1912_vm5, %v1614_v34  ;;  %2101 = vmatpush.msra.mxu1 %v1314_v45 }
 0x4f5   : > { %3210 = vpow2.f32 %v1640_v12  ;;  %v1656_v26 = vmul.f32 1.442695, %v5123_v23  ;;  %v1636_v23 = vsub.f32 %v4379_v58, %v4382_v18 }
 0x4f6   : > { %v1604_v54 = vpop.xlane.xlu2 %1603 }
 0x4f7   : > { %v4407_v41 = vmax.f32 %v4402_v46, %v1604_v54  ;;  %v1644_v54 = vmul.f32 1.442695, %v1626_v59  ;;  %v4433_v63 = vpop.eup %3208  ;;  %v1630_v59 = vsub.f32 %v1549_v17, %v1614_v34 }
 0x4f8   : > { %v1583_v6 = vpop.xlane.xlu1 %1582 }
 0x4f9   : > { %5122 = vst [vmem:[#allocation24_spill] sm:$0xff] %v4407_v41  ;;  %v1615_v47 = vmax.f32 %v4404_v44, %v1583_v6  ;;  %1744 = vperm.xlu0 %3207, %v4407_v41   ;;  %1704 = vperm.xlu1 %3205, %v1614_v34   ;;  %v1650_v6 = vmul.f32 1.442695, %v1629_v19  ;;  %3212 = vpow2.f32 %v1644_v54  ;;  %v1652_v37 = vmul.f32 1.442695, %v1630_v59 }
 0x4fa   : > { %2200 = vst.msk [vmem:[#allocation3 + $0x70] sm:$0xff] %vm1912_vm5, %v4407_v41  ;;  %v1627_v41 = vsub.f32 %v4366_v61, %v4374_v40 }
 0x4fb   : > { %2193 = vst.msk [vmem:[#allocation3 + $0x38] sm:$0xff] %vm1912_vm5, %v1615_v47  ;;  %1709 = vperm.xlu2 %3206, %v1615_v47   ;;  %3214 = vpow2.f32 %v1650_v6  ;;  %v4436_v61 = vpop.eup %3210  ;;  %v1631_v12 = vsub.f32 %v4404_v44, %v1615_v47  ;;  %v5124_v44 = vsub.f32 %v4338_v53, %v4343_v9  ;;  %v1312_v6 = vld [vmem:[%s1310_s9 + $0x8] sm:$0xff]  ;;  %v1664_v9 = vmul.f32 1.442695, %v1636_v23 }
 0x4fc   : > { %v1646_v13 = vmul.f32 1.442695, %v1627_v41  ;;  %v1635_v41 = vsub.f32 %v4364_v51, %v4369_v36  ;;  %v1313_v51 = vld [vmem:[%s1310_s9 + $0x10] sm:$0xff] }
 0x4fd   : > { %v1654_v36 = vmul.f32 1.442695, %v1631_v12  ;;  %3038 = vmatpush.msra.mxu3 %v1313_v51  ;;  %v1658_v47 = vmul.f32 1.442695, %v5124_v44  ;;  %2102 = vmatpush.msra.mxu1 %v1313_v51 }
 0x4fe   : > { %v1607_v27 = vpop.xlane.xlu0 %1606  ;;  %3216 = vpow2.f32 %v1646_v13  ;;  %v1662_v19 = vmul.f32 1.442695, %v1635_v41  ;;  %v1311_v13 = vld [vmem:[%s1310_s9] sm:$0xff] }
 0x4ff   : > { %v4423_v46 = vmax.f32 %v4420_v29, %v1607_v27  ;;  %v1648_v27 = vmul.f32 1.442695, %v1628_v43  ;;  %v4438_v40 = vpop.eup %3212  ;;  %3039 = vmatpush.msra.mxu3 %v1312_v6  ;;  %2103 = vmatpush.msra.mxu1 %v1312_v6 }
 0x501   : > { %v1639_v5 = vsub.f32 %v4420_v29, %v4423_v46  ;;  %2201 = vst.msk [vmem:[#allocation3 + $0x78] sm:$0xff] %vm1912_vm5, %v4423_v46  ;;  %1714 = vperm.xlu0 %3207, %v4330_v24   ;;  %1749 = vperm.xlu1 %3205, %v4423_v46   ;;  %v4445_v31 = vpop.eup %3214  ;;  %3218 = vpow2.f32 %v1648_v27  ;;  %v1660_v24 = vmul.f32 1.442695, %v1634_v32 }
 0x502   : > { %3220 = vpow2.f32 %v1656_v26  ;;  %3040 = vmatpush.msra.mxu3 %v1311_v13  ;;  %2104 = vmatpush.msra.mxu1 %v1311_v13 }
 0x503   : > { %1952 = vperm.xlu2 %3206, %v4433_v63   ;;  %3222 = vpow2.f32 %v1652_v37 }
 0x504   : > { %v4452_v34 = vpop.eup %3216  ;;  %3224 = vpow2.f32 %v1660_v24 }
 0x505   : > { %3226 = vpow2.f32 %v1662_v19 }
 0x506   : > { %3228 = vpow2.f32 %v1654_v36 }
 0x507   : > { %v4456_v17 = vpop.eup %3218  ;;  %3230 = vpow2.f32 %v1658_v47 }
 0x508   : > { %v4461_v11 = vpop.eup %3220  ;;  %3232 = vpow2.f32 %v1664_v9 }
 0x509   : > { %1957 = vperm.xlu0 %3207, %v4438_v40   ;;  %1947 = vperm.xlu1 %3205, %v4436_v61   ;;  %v4464_v54 = vpop.eup %3222 }
 0x50a   : > { %v4469_v43 = vpop.eup %3224 }
 0x50b   : > { %1972 = vperm.xlu2 %3206, %v4445_v31   ;;  %v4473_v27 = vpop.eup %3226 }
 0x50c   : > { %v4478_v53 = vpop.eup %3228 }
 0x50d   : > { %v4480_v26 = vpop.eup %3230 }
 0x50e   : > { %v4484_v32 = vpop.eup %3232 }
 0x511   : > { %1967 = vperm.xlu0 %3207, %v4456_v17   ;;  %1962 = vperm.xlu1 %3205, %v4452_v34  }
 0x513   : > { %1987 = vperm.xlu2 %3206, %v4461_v11  }
 0x519   : > { %1997 = vperm.xlu0 %3207, %v4469_v43   ;;  %1977 = vperm.xlu1 %3205, %v4464_v54  }
 0x51b   : > { %2002 = vperm.xlu2 %3206, %v4473_v27  }
 0x521   : > { %1992 = vperm.xlu1 %3205, %v4480_v26   ;;  %1982 = vperm.xlu0 %3207, %v4478_v53  }
 0x525   : > { %v1680_v59 = vpop.permute.xlu2 %1679 }
 0x526   : > { %v1753_v12 = vsub.f32 %v4150_v49, %v1680_v59 }
 0x528   : > { %v1770_v36 = vmul.f32 1.442695, %v1753_v12 }
 0x529   : > { %2007 = vperm.xlu1 %3205, %v4484_v32  }
 0x52d   : > { %v1720_v58 = vpop.permute.xlu2 %1719 }
 0x52e   : > { %v1761_v18 = vsub.f32 %v4164_v14, %v1720_v58 }
 0x530   : > { %v1786_v41 = vmul.f32 1.442695, %v1761_v18 }
 0x532   : > { %3234 = vpow2.f32 %v1786_v41 }
 0x535   : > { %v1675_v37 = vpop.permute.xlu1 %1674 }
 0x536   : > { %v1752_v24 = vsub.f32 %v4124_v50, %v1675_v37 }
 0x538   : > { %v3235_v19 = vpop.eup %3234  ;;  %v1768_v45 = vmul.f32 1.442695, %v1752_v24 }
 0x539   : > { %v1809_v51 = vsel %vm1520_vm11, 0.0, %v3235_v19 }
 0x53a   : > { %3236 = vpow2.f32 %v1768_v45  ;;  %2977 = vmatmul.msk.f32.vlgmr.msra.gmra.mxu3 %vm1559_vm8, %v1809_v51  ;;  %v1875_v25 = vsel %vm1559_vm8, %v1809_v51, 0.0 }
 0x53b   : > { %3238 = vpow2.f32 %v1770_v36 }
 0x53d   : > { %v1690_v49 = vpop.permute.xlu2 %1689 }
 0x53e   : > { %v1755_v23 = vsub.f32 %v4208_v48, %v1690_v49 }
 0x540   : > { %v3237_v44 = vpop.eup %3236  ;;  %v1774_v59 = vmul.f32 1.442695, %v1755_v23 }
 0x541   : > { %v1800_v14 = vsel %vm1511_vm7, 0.0, %v3237_v44  ;;  %v3239_v6 = vpop.eup %3238  ;;  %vm5125_vm7 = vcmp.gt.s32.totalorder %v4109_v42, %v4274_v55 }
 0x542   : > { %2968 = vmatmul.msk.f32.vlgmr.msra.gmra.mxu1 %vm1559_vm8, %v1800_v14  ;;  %v1848_v50 = vsel %vm1559_vm8, %v1800_v14, 0.0  ;;  %v1801_v9 = vsel %vm1512_vm10, 0.0, %v3239_v6 }
 0x543   : > { %v1851_v24 = vsel %vm1559_vm8, %v1801_v9, 0.0 }
 0x544   : > { %1849 = vadd.xlane.f32.xlu2 %v1848_v50 }
 0x545   : > { %v1685_v47 = vpop.permute.xlu0 %1684  ;;  %v1730_v18 = vpop.permute.xlu2 %1729 }
 0x546   : > { %v1754_v38 = vsub.f32 %v4174_v39, %v1685_v47  ;;  %v1763_v48 = vsub.f32 %v4213_v3, %v1730_v18 }
 0x548   : > { %v1772_v13 = vmul.f32 1.442695, %v1754_v38  ;;  %v1790_v12 = vmul.f32 1.442695, %v1763_v48 }
 0x54a   : > { %2969 = vmatmul.msk.f32.gmra.mxu1 %vm1559_vm8, %v1801_v9  ;;  %3240 = vpow2.f32 %v1772_v13 }
 0x54b   : > { %1876 = vadd.xlane.f32.xlu0 %v1875_v25  ;;  %3242 = vpow2.f32 %v1774_v59 }
 0x54d   : > { %v1725_v58 = vpop.permute.xlu1 %1724  ;;  %v1740_v45 = vpop.permute.xlu2 %1739 }
 0x54e   : > { %v1762_v41 = vsub.f32 %v4186_v1, %v1725_v58  ;;  %v1765_v49 = vsub.f32 %v4269_v22, %v1740_v45 }
 0x550   : > { %v1788_v37 = vmul.f32 1.442695, %v1762_v41  ;;  %v3241_v39 = vpop.eup %3240  ;;  %v1794_v38 = vmul.f32 1.442695, %v1765_v49 }
 0x551   : > { %v1802_v7 = vsel %vm1513_vm12, 0.0, %v3241_v39  ;;  %v3243_v1 = vpop.eup %3242 }
 0x552   : > { %3244 = vpow2.f32 %v1788_v37  ;;  %2970 = vmatmul.msk.f32.gmra.mxu1 %vm1559_vm8, %v1802_v7  ;;  %v1854_v19 = vsel %vm1559_vm8, %v1802_v7, 0.0  ;;  %v4517_v3 = vsel %vm1514_vm14, 0.0, %v3243_v1 }
 0x553   : > { %1852 = vadd.xlane.f32.xlu1 %v1851_v24  ;;  %1855 = vadd.xlane.f32.xlu0 %v1854_v19  ;;  %3246 = vpow2.f32 %v1790_v12 }
 0x555   : > { %v1710_v13 = vpop.permute.xlu2 %1709 }
 0x556   : > { %v1759_v22 = vsub.f32 %v4304_v60, %v1710_v13  ;;  %v1670_v13 = vmul.f32 1.442695, %v1639_v5 }
 0x558   : > { %v3245_v51 = vpop.eup %3244  ;;  %v1782_v41 = vmul.f32 1.442695, %v1759_v22 }
 0x559   : > { %v1810_v62 = vsel %vm1521_vm13, 0.0, %v3245_v51  ;;  %v3247_v56 = vpop.eup %3246 }
 0x55a   : > { %2971 = vmatmul.msk.f32.gmra.mxu1 %vm1559_vm8, %v4517_v3  ;;  %2978 = vmatmul.msk.f32.gmra.mxu3 %vm1559_vm8, %v1810_v62  ;;  %v1878_v44 = vsel %vm1559_vm8, %v1810_v62, 0.0  ;;  %v4532_v23 = vsel %vm1522_vm15, 0.0, %v3247_v56 }
 0x55b   : > { %v1735_v36 = vpop.permute.xlu0 %1734  ;;  %v1695_v14 = vpop.permute.xlu1 %1694  ;;  %1879 = vadd.xlane.f32.xlu1 %v1878_v44 }
 0x55c   : > { %v1764_v50 = vsub.f32 %v4241_v0, %v1735_v36  ;;  %v1756_v33 = vsub.f32 %v4229_v28, %v1695_v14 }
 0x55e   : > { %v1792_v47 = vmul.f32 1.442695, %v1764_v50  ;;  %v1776_v6 = vmul.f32 1.442695, %v1756_v33 }
 0x560   : > { %3248 = vpow2.f32 %v1792_v47 }
 0x561   : > { %3250 = vpow2.f32 %v1776_v6 }
 0x562   : > { %2979 = vmatmul.msk.f32.gmra.mxu3 %vm1559_vm8, %v4532_v23  ;;  %3252 = vpow2.f32 %v1794_v38 }
 0x563   : > { %v1700_v0 = vpop.permute.xlu1 %1699 }
 0x564   : > { %v1757_v28 = vsub.f32 %v4258_v15, %v1700_v0  ;;  %v1857_v0 = vsel %vm1559_vm8, %v4517_v3, 0.0 }
 0x566   : > { %v3249_v9 = vpop.eup %3248  ;;  %v1778_v25 = vmul.f32 1.442695, %v1757_v28  ;;  %v5130_v28 = vld [vmem:[#allocation22_spill] sm:$0xff] }
 0x567   : > { %v3251_v59 = vpop.eup %3250  ;;  %v1812_v58 = vsel %vm1523_vm1, 0.0, %v3249_v9 }
 0x568   : > { %3254 = vpow2.f32 %v1778_v25  ;;  %v1804_v35 = vsel %vm1515_vm0, 0.0, %v3251_v59  ;;  %v1884_v18 = vsel %vm1559_vm8, %v1812_v58, 0.0  ;;  %v3253_v60 = vpop.eup %3252  ;;  %v1881_v25 = vsel %vm1559_vm8, %v4532_v23, 0.0  ;;  %v1953_v59 = vpop.permute.xlu2 %1952 }
 0x569   : > { %2972 = vmatmul.msk.f32.gmra.mxu1 %vm1559_vm8, %v1804_v35  ;;  %1885 = vadd.xlane.f32.xlu0 %v1884_v18  ;;  %v1860_v15 = vsel %vm1559_vm8, %v1804_v35, 0.0  ;;  %3256 = vpow2.f32 %v1782_v41  ;;  %v1813_v19 = vsel %vm1524_vm3, 0.0, %v3253_v60 }
 0x56a   : > { %1861 = vadd.xlane.f32.xlu1 %v1860_v15  ;;  %2980 = vmatmul.msk.f32.gmra.mxu3 %vm1559_vm8, %v1812_v58 }
 0x56b   : > { %v1745_v37 = vpop.permute.xlu0 %1744  ;;  %v1705_v21 = vpop.permute.xlu1 %1704 }
 0x56c   : > { %v1766_v39 = vsub.f32 %v4294_v4, %v1745_v37  ;;  %v1758_v48 = vsub.f32 %v4280_v57, %v1705_v21  ;;  %v1887_v4 = vsel %vm1559_vm8, %v1813_v19, 0.0  ;;  %v5132_v21 = vld [vmem:[#allocation23_spill] sm:$0xff] }
 0x56e   : > { %v3255_v16 = vpop.eup %3254  ;;  %v1796_v7 = vmul.f32 1.442695, %v1766_v39  ;;  %v1780_v24 = vmul.f32 1.442695, %v1758_v48  ;;  %v5133_v39 = vld [vmem:[#allocation24_spill] sm:$0xff] }
 0x56f   : > { %v1805_v12 = vsel %vm1516_vm2, 0.0, %v3255_v16  ;;  %v3257_v57 = vpop.eup %3256  ;;  %v5134_v48 = vsub.f32 %v5132_v21, %v5133_v39 }
 0x570   : > { %3258 = vpow2.f32 %v1796_v7  ;;  %v1807_v44 = vsel %vm1518_vm6, 0.0, %v3257_v57  ;;  %vm5127_vm6 = vcmp.gt.s32.totalorder %v4109_v42, %v5126_v2  ;;  %v5129_v42 = vld [vmem:[#allocation21_spill] sm:$0xff]  ;;  %v1863_v3 = vsel %vm1559_vm8, %v1805_v12, 0.0  ;;  %v4602_v35 = vpop.permute.xlu2 %1972  ;;  %v1930_v2 = vld [vmem:[#allocation5 + $0x8] sm:$0xff] }
 0x571   : > { %3260 = vpow2.f32 %v1780_v24  ;;  %2973 = vmatmul.msk.f32.gmra.mxu1 %vm1559_vm8, %v1805_v12  ;;  %v5131_v22 = vsub.f32 %v5129_v42, %v5130_v28  ;;  %v1668_v16 = vmul.f32 1.442695, %v5134_v48  ;;  %v1816_v24 = vld [vmem:[#allocation4] sm:$0xff] }
 0x572   : > { %1888 = vadd.xlane.f32.xlu1 %v1887_v4  ;;  %2981 = vmatmul.msk.f32.gmra.mxu3 %vm1559_vm8, %v1813_v19  ;;  %v1832_v4 = vmul.f32 %v4436_v61, %v1816_v24  ;;  %v1828_v48 = vld [vmem:[#allocation4 + $0x60] sm:$0xff] }
 0x573   : > { %v1715_v1 = vpop.permute.xlu0 %1714  ;;  %v1750_v45 = vpop.permute.xlu1 %1749  ;;  %v1666_v9 = vmul.f32 1.442695, %v5131_v22  ;;  %v1826_v22 = vld [vmem:[#allocation4 + $0x50] sm:$0xff]  ;;  %v1820_v24 = vld [vmem:[#allocation4 + $0x20] sm:$0xff] }
 0x574   : > { %v1760_v51 = vsub.f32 %v4139_v20, %v1715_v1  ;;  %v1767_v8 = vsub.f32 %v4313_v52, %v1750_v45  ;;  %v1869_v20 = vsel %vm1559_vm8, %v1807_v44, 0.0 }
 0x576   : > { %v3259_v62 = vpop.eup %3258  ;;  %v1784_v36 = vmul.f32 1.442695, %v1760_v51  ;;  %v1798_v30 = vmul.f32 1.442695, %v1767_v8  ;;  %v1938_v51 = vld [vmem:[#allocation5 + $0x48] sm:$0xff] }
 0x577   : > { %v3261_v14 = vpop.eup %3260  ;;  %v1814_v10 = vsel %vm5125_vm7, 0.0, %v3259_v62  ;;  %v1825_v8 = vld [vmem:[#allocation4 + $0x48] sm:$0xff]  ;;  %v1929_v62 = vld [vmem:[#allocation5] sm:$0xff] }
 0x578   : > { %3262 = vpow2.f32 %v1784_v36  ;;  %v1806_v50 = vsel %vm1517_vm4, 0.0, %v3261_v14  ;;  %v1890_v23 = vsel %vm1559_vm8, %v1814_v10, 0.0  ;;  %v4607_v15 = vpop.permute.xlu2 %1987 }
 0x579   : > { %3264 = vpow2.f32 %v1798_v30  ;;  %2974 = vmatmul.msk.f32.gmra.mxu1 %vm1559_vm8, %v1806_v50  ;;  %v1866_v52 = vsel %vm1559_vm8, %v1806_v50, 0.0 }
 0x57a   : > { %1870 = vadd.xlane.f32.xlu1 %v1869_v20  ;;  %1867 = vadd.xlane.f32.xlu0 %v1866_v52  ;;  %3266 = vpow2.f32 %v1670_v13 }
 0x57b   : > { %2982 = vmatmul.msk.f32.gmra.mxu3 %vm1559_vm8, %v1814_v10  ;;  %3268 = vpow2.f32 %v1666_v9  ;;  %v1948_v29 = vpop.permute.xlu1 %1947  ;;  %v1958_v5 = vpop.permute.xlu0 %1957  ;;  %v1931_v9 = vld [vmem:[#allocation5 + $0x10] sm:$0xff] }
 0x57c   : > { %3270 = vpow2.f32 %v1668_v16  ;;  %v2025_v14 = vmul.f32 %v1948_v29, %v1929_v62 }
 0x57e   : > { %v3263_v33 = vpop.eup %3262 }
 0x57f   : > { %v3265_v49 = vpop.eup %3264  ;;  %v1808_v47 = vsel %vm5127_vm6, 0.0, %v3263_v33 }
 0x580   : > { %v1872_v6 = vsel %vm1559_vm8, %v1808_v47, 0.0  ;;  %v1815_v38 = vsel %vm1526_vm9, 0.0, %v3265_v49  ;;  %v4595_v58 = vpop.eup %3266  ;;  %v4616_v7 = vpop.permute.xlu2 %2002  ;;  %v1817_v49 = vld [vmem:[#allocation4 + $0x8] sm:$0xff] }
 0x581   : > { %2975 = vmatmul.msk.f32.gmra.mxu1 %vm1559_vm8, %v1807_v44  ;;  %1873 = vadd.xlane.f32.xlu2 %v1872_v6  ;;  %v1893_v55 = vsel %vm1559_vm8, %v1815_v38, 0.0  ;;  %v4598_v46 = vpop.eup %3268  ;;  %v1841_v44 = vmul.f32 %v4480_v26, %v1825_v8  ;;  %v1833_v6 = vmul.f32 %v4433_v63, %v1817_v49  ;;  %v2026_v26 = vmul.f32 %v1953_v59, %v1930_v2  ;;  %v1822_v49 = vld [vmem:[#allocation4 + $0x30] sm:$0xff]  ;;  %v1823_v2 = vld [vmem:[#allocation4 + $0x38] sm:$0xff] }
 0x582   : > { %1894 = vadd.xlane.f32.xlu0 %v1893_v55  ;;  %v4621_v1 = vpop.eup %3270  ;;  %v2027_v63 = vmul.f32 %v1958_v5, %v1931_v9  ;;  %v1824_v9 = vld [vmem:[#allocation4 + $0x40] sm:$0xff] }
 0x583   : > { %2983 = vmatmul.msk.f32.gmra.mxu3 %vm1559_vm8, %v1815_v38  ;;  %v1963_v18 = vpop.permute.xlu1 %1962  ;;  %v4605_v41 = vpop.permute.xlu0 %1967 }
 0x589   : > { %2976 = vmatmul.msk.f32.gmra.mxu1 %vm1559_vm8, %v1808_v47  ;;  %1858 = vadd.xlane.f32.xlu2 %v1857_v0  ;;  %vm5135_vm8 = vcmask 130048   ;;  %v1818_v47 = vld [vmem:[#allocation4 + $0x10] sm:$0xff] }
 0x58a   : > { %vm5136_vm9 = vmmov %vm5135_vm8  ;;  %v1834_v56 = vmul.f32 %v4438_v40, %v1818_v47  ;;  %v1934_v47 = vld [vmem:[#allocation5 + $0x28] sm:$0xff] }
 0x58b   : > { %v4609_v60 = vpop.permute.xlu1 %1977  ;;  %v4611_v37 = vpop.permute.xlu0 %1997  ;;  %vm5137_vm10 = vmmov %vm5135_vm8 }
 0x58c   : > { %vm5138_vm11 = vmmov %vm5135_vm8 }
 0x58d   : > { %vm5139_vm12 = vmmov %vm5135_vm8 }
 0x58e   : > { %vm5140_vm13 = vmmov %vm5135_vm8 }
 0x58f   : > { %vm5141_vm14 = vmmov %vm5135_vm8 }
 0x590   : > { %vm5142_vm15 = vmmov %vm5135_vm8 }
 0x591   : > { %1882 = vadd.xlane.f32.xlu2 %v1881_v25  ;;  %v1842_v25 = vmul.f32 %v4469_v43, %v1826_v22  ;;  %v1844_v43 = vmul.f32 %v4484_v32, %v1828_v48  ;;  %vm5143_vm0 = vmmov %vm5135_vm8  ;;  %v1936_v48 = vld [vmem:[#allocation5 + $0x38] sm:$0xff] }
 0x592   : > { %vm5144_vm1 = vmmov %vm5143_vm0 }
 0x593   : > { %2022 = vperm.xlu1 %3205, %v4595_v58   ;;  %v1993_v19 = vpop.permute.xlu1 %1992  ;;  %v4618_v12 = vpop.permute.xlu0 %1982  ;;  %vm5145_vm2 = vmmov %vm5143_vm0 }
 0x594   : > { %v2034_v36 = vmul.f32 %v1993_v19, %v1938_v51  ;;  %v1939_v19 = vld [vmem:[#allocation5 + $0x50] sm:$0xff]  ;;  %vm5146_vm3 = vmmov %vm5143_vm0 }
 0x595   : > { %vm5147_vm4 = vmmov %vm5143_vm0 }
 0x596   : > { %2012 = vperm.xlu0 %3207, %v4598_v46   ;;  %vm5148_vm7 = vmmov %vm5143_vm0 }
 0x597   : > { %vm5149_vm6 = vmmov %vm5143_vm0 }
 0x599   : > { %1864 = vadd.xlane.f32.xlu2 %v1863_v3 }
 0x59b   : > { %v4626_v50 = vpop.permute.xlu1 %2007 }
 0x5a1   : > { %1891 = vadd.xlane.f32.xlu2 %v1890_v23  ;;  %v1932_v23 = vld [vmem:[#allocation5 + $0x18] sm:$0xff] }
 0x5a2   : > { %v2028_v21 = vmul.f32 %v1963_v18, %v1932_v23 }
 0x5b7   : > { %v1850_v57 = vpop.xlane.xlu2 %1849 }
 0x5b8   : > { %v1896_v45 = vadd.f32 %v1850_v57, %v1832_v4  ;;  %v1836_v4 = vmul.f32 %v4456_v17, %v1820_v24  ;;  %v2035_v57 = vmul.f32 %v4611_v37, %v1939_v19 }
 0x5b9   : > { %2017 = vperm.xlu2 %3206, %v4621_v1  }
 0x5ba   : > { %1913 = vst.msk [vmem:[#allocation4] sm:$0xff] %vm1912_vm5, %v1896_v45 }
 0x5bd   : > { %v2133_v30 = vpop.f32.mrf.mxu3 }
 0x5be   : > { %v2163_v20 = vadd.f32 %v2133_v30, %v2034_v36  ;;  %v1877_v61 = vpop.xlane.xlu0 %1876  ;;  %v1829_v36 = vld [vmem:[#allocation4 + $0x68] sm:$0xff]  ;;  %v1940_v30 = vld [vmem:[#allocation5 + $0x58] sm:$0xff] }
 0x5bf   : > { %v1905_v52 = vadd.f32 %v1877_v61, %v1841_v44  ;;  %v2106_v10 = vpop.f32.mrf.mxu1  ;;  %v1933_v44 = vld [vmem:[#allocation5 + $0x20] sm:$0xff]  ;;  %v1845_v32 = vmul.f32 %v4598_v46, %v1829_v36  ;;  %v2036_v17 = vmul.f32 %v4616_v7, %v1940_v30  ;;  %v1838_v46 = vmul.f32 %v4464_v54, %v1822_v49  ;;  %v1831_v54 = vld [vmem:[#allocation4 + $0x78] sm:$0xff]  ;;  %v1942_v30 = vld [vmem:[#allocation5 + $0x68] sm:$0xff] }
 0x5c0   : > { %2179 = vst.msk [vmem:[#allocation5 + $0x48] sm:$0xff] %vm5135_vm8, %v2163_v20  ;;  %v2154_v33 = vadd.f32 %v2106_v10, %v2025_v14  ;;  %v2029_v37 = vmul.f32 %v4605_v41, %v1933_v44  ;;  %v1839_v41 = vmul.f32 %v4478_v53, %v1823_v2  ;;  %v2030_v7 = vmul.f32 %v4602_v35, %v1934_v47  ;;  %v1943_v2 = vld [vmem:[#allocation5 + $0x70] sm:$0xff]  ;;  %vm5150_vm8 = vmmov %vm5143_vm0 }
 0x5c1   : > { %1922 = vst.msk [vmem:[#allocation4 + $0x48] sm:$0xff] %vm1912_vm5, %v1905_v52  ;;  %v1840_v53 = vmul.f32 %v4461_v11, %v1824_v9 }
 0x5c2   : > { %2170 = vst.msk [vmem:[#allocation5] sm:$0xff] %vm5136_vm9, %v2154_v33 }
 0x5c6   : > { %v1853_v38 = vpop.xlane.xlu1 %1852  ;;  %v1856_v55 = vpop.xlane.xlu0 %1855 }
 0x5c7   : > { %v1897_v13 = vadd.f32 %v1853_v38, %v1833_v6  ;;  %v2109_v0 = vpop.f32.mrf.mxu1  ;;  %v1898_v42 = vadd.f32 %v1856_v55, %v1834_v56  ;;  %v1941_v6 = vld [vmem:[#allocation5 + $0x60] sm:$0xff] }
 0x5c8   : > { %v2155_v28 = vadd.f32 %v2109_v0, %v2026_v26  ;;  %v2037_v26 = vmul.f32 %v4626_v50, %v1941_v6  ;;  %v1847_v50 = vmul.f32 %v4595_v58, %v1831_v54  ;;  %v2032_v58 = vmul.f32 %v4618_v12, %v1936_v48 }
 0x5c9   : > { %1914 = vst.msk [vmem:[#allocation4 + $0x8] sm:$0xff] %vm1912_vm5, %v1897_v13 }
 0x5ca   : > { %1915 = vst.msk [vmem:[#allocation4 + $0x10] sm:$0xff] %vm1912_vm5, %v1898_v42 }
 0x5cb   : > { %2171 = vst.msk [vmem:[#allocation5 + $0x8] sm:$0xff] %vm5137_vm10, %v2155_v28 }
 0x5ce   : > { %v1880_v59 = vpop.xlane.xlu1 %1879 }
 0x5cf   : > { %v1906_v29 = vadd.f32 %v1880_v59, %v1842_v25  ;;  %v2112_v40 = vpop.f32.mrf.mxu1  ;;  %v1935_v25 = vld [vmem:[#allocation5 + $0x30] sm:$0xff] }
 0x5d0   : > { %v2156_v3 = vadd.f32 %v2112_v40, %v2027_v63  ;;  %v2031_v63 = vmul.f32 %v4609_v60, %v1935_v25 }
 0x5d1   : > { %1923 = vst.msk [vmem:[#allocation4 + $0x50] sm:$0xff] %vm1912_vm5, %v1906_v29 }
 0x5d2   : > { %2172 = vst.msk [vmem:[#allocation5 + $0x10] sm:$0xff] %vm5138_vm11, %v2156_v3 }
 0x5d7   : > { %v2115_v39 = vpop.f32.mrf.mxu1 }
 0x5d8   : > { %v2157_v16 = vadd.f32 %v2115_v39, %v2028_v21  ;;  %v1819_v39 = vld [vmem:[#allocation4 + $0x18] sm:$0xff] }
 0x5d9   : > { %v1835_v11 = vmul.f32 %v4452_v34, %v1819_v39 }
 0x5da   : > { %2173 = vst.msk [vmem:[#allocation5 + $0x18] sm:$0xff] %vm5139_vm12, %v2157_v16 }
 0x5dc   : > { %v1886_v5 = vpop.xlane.xlu0 %1885 }
 0x5dd   : > { %v1908_v45 = vadd.f32 %v1886_v5, %v1844_v43  ;;  %v1862_v51 = vpop.xlane.xlu1 %1861  ;;  %v2136_v62 = vpop.f32.mrf.mxu3  ;;  %v1827_v5 = vld [vmem:[#allocation4 + $0x58] sm:$0xff] }
 0x5de   : > { %v1900_v8 = vadd.f32 %v1862_v51, %v1836_v4  ;;  %v2164_v18 = vadd.f32 %v2136_v62, %v2035_v57  ;;  %v1937_v4 = vld [vmem:[#allocation5 + $0x40] sm:$0xff]  ;;  %v1843_v57 = vmul.f32 %v4473_v27, %v1827_v5 }
 0x5df   : > { %1925 = vst.msk [vmem:[#allocation4 + $0x60] sm:$0xff] %vm1912_vm5, %v1908_v45  ;;  %v1944_v45 = vld [vmem:[#allocation5 + $0x78] sm:$0xff] }
 0x5e0   : > { %1917 = vst.msk [vmem:[#allocation4 + $0x20] sm:$0xff] %vm1912_vm5, %v1900_v8  ;;  %v2033_v8 = vmul.f32 %v4607_v15, %v1937_v4 }
 0x5e1   : > { %2180 = vst.msk [vmem:[#allocation5 + $0x50] sm:$0xff] %vm5140_vm13, %v2164_v18 }
 0x5e5   : > { %v1889_v14 = vpop.xlane.xlu1 %1888  ;;  %v2139_v52 = vpop.f32.mrf.mxu3 }
 0x5e6   : > { %v1909_v20 = vadd.f32 %v1889_v14, %v1845_v32  ;;  %v2118_v61 = vpop.f32.mrf.mxu1  ;;  %v2165_v33 = vadd.f32 %v2139_v52, %v2036_v17  ;;  %v1830_v52 = vld [vmem:[#allocation4 + $0x70] sm:$0xff] }
 0x5e7   : > { %v2158_v10 = vadd.f32 %v2118_v61, %v2029_v37  ;;  %v1821_v37 = vld [vmem:[#allocation4 + $0x28] sm:$0xff] }
 0x5e8   : > { %1926 = vst.msk [vmem:[#allocation4 + $0x68] sm:$0xff] %vm1912_vm5, %v1909_v20  ;;  %v1837_v15 = vmul.f32 %v4445_v31, %v1821_v37 }
 0x5e9   : > { %2174 = vst.msk [vmem:[#allocation5 + $0x20] sm:$0xff] %vm5141_vm14, %v2158_v10  ;;  %v1846_v10 = vmul.f32 %v4621_v1, %v1830_v52 }
 0x5ea   : > { %2181 = vst.msk [vmem:[#allocation5 + $0x58] sm:$0xff] %vm5142_vm15, %v2165_v33 }
 0x5ed   : > { %v1868_v56 = vpop.xlane.xlu0 %1867  ;;  %v1871_v38 = vpop.xlane.xlu1 %1870 }
 0x5ee   : > { %v1902_v55 = vadd.f32 %v1868_v56, %v1838_v46  ;;  %v1903_v13 = vadd.f32 %v1871_v38, %v1839_v41  ;;  %v2121_v0 = vpop.f32.mrf.mxu1  ;;  %v2142_v42 = vpop.f32.mrf.mxu3 }
 0x5ef   : > { %v2159_v28 = vadd.f32 %v2121_v0, %v2030_v7  ;;  %v2166_v22 = vadd.f32 %v2142_v42, %v2037_v26 }
 0x5f0   : > { %1919 = vst.msk [vmem:[#allocation4 + $0x30] sm:$0xff] %vm1912_vm5, %v1902_v55 }
 0x5f1   : > { %1920 = vst.msk [vmem:[#allocation4 + $0x38] sm:$0xff] %vm1912_vm5, %v1903_v13 }
 0x5f2   : > { %2175 = vst.msk [vmem:[#allocation5 + $0x28] sm:$0xff] %vm5143_vm0, %v2159_v28 }
 0x5f3   : > { %2182 = vst.msk [vmem:[#allocation5 + $0x60] sm:$0xff] %vm5144_vm1, %v2166_v22 }
 0x5f4   : > { %v1874_v35 = vpop.xlane.xlu2 %1873 }
 0x5f5   : > { %v1904_v59 = vadd.f32 %v1874_v35, %v1840_v53  ;;  %v1895_v29 = vpop.xlane.xlu0 %1894 }
 0x5f6   : > { %v1911_v40 = vadd.f32 %v1895_v29, %v1847_v50  ;;  %v2124_v3 = vpop.f32.mrf.mxu1  ;;  %v2145_v23 = vpop.f32.mrf.mxu3 }
 0x5f7   : > { %1921 = vst.msk [vmem:[#allocation4 + $0x40] sm:$0xff] %vm1912_vm5, %v1904_v59  ;;  %v2160_v21 = vadd.f32 %v2124_v3, %v2031_v63 }
 0x5f8   : > { %1928 = vst.msk [vmem:[#allocation4 + $0x78] sm:$0xff] %vm1912_vm5, %v1911_v40 }
 0x5f9   : > { %2176 = vst.msk [vmem:[#allocation5 + $0x30] sm:$0xff] %vm5145_vm2, %v2160_v21 }
 0x5fc   : > { %v1859_v16 = vpop.xlane.xlu2 %1858 }
 0x5fd   : > { %v1899_v60 = vadd.f32 %v1859_v16, %v1835_v11 }
 0x5fe   : > { %v2127_v24 = vpop.f32.mrf.mxu1  ;;  %v2148_v19 = vpop.f32.mrf.mxu3 }
 0x5ff   : > { %1916 = vst.msk [vmem:[#allocation4 + $0x18] sm:$0xff] %vm1912_vm5, %v1899_v60  ;;  %v2161_v43 = vadd.f32 %v2127_v24, %v2032_v58 }
 0x601   : > { %2177 = vst.msk [vmem:[#allocation5 + $0x38] sm:$0xff] %vm5146_vm3, %v2161_v43 }
 0x604   : > { %v1883_v51 = vpop.xlane.xlu2 %1882 }
 0x605   : > { %v1907_v34 = vadd.f32 %v1883_v51, %v1843_v57  ;;  %v2023_v62 = vpop.permute.xlu1 %2022 }
 0x606   : > { %v2040_v18 = vmul.f32 %v2023_v62, %v1944_v45  ;;  %v2130_v12 = vpop.f32.mrf.mxu1  ;;  %v2151_v36 = vpop.f32.mrf.mxu3 }
 0x607   : > { %1924 = vst.msk [vmem:[#allocation4 + $0x58] sm:$0xff] %vm1912_vm5, %v1907_v34  ;;  %v2162_v44 = vadd.f32 %v2130_v12, %v2033_v8 }
 0x608   : > { %v2169_v32 = vadd.f32 %v2151_v36, %v2040_v18  ;;  %v2013_v17 = vpop.permute.xlu0 %2012 }
 0x609   : > { %2178 = vst.msk [vmem:[#allocation5 + $0x40] sm:$0xff] %vm5147_vm4, %v2162_v44  ;;  %v2038_v14 = vmul.f32 %v2013_v17, %v1942_v30 }
 0x60a   : > { %2185 = vst.msk [vmem:[#allocation5 + $0x78] sm:$0xff] %vm5148_vm7, %v2169_v32 }
 0x60b   : > { %v2167_v27 = vadd.f32 %v2145_v23, %v2038_v14 }
 0x60c   : > { %v1865_v20 = vpop.xlane.xlu2 %1864 }
 0x60d   : > { %2183 = vst.msk [vmem:[#allocation5 + $0x68] sm:$0xff] %vm5149_vm6, %v2167_v27  ;;  %v1901_v61 = vadd.f32 %v1865_v20, %v1837_v15 }
 0x60f   : > { %1918 = vst.msk [vmem:[#allocation4 + $0x28] sm:$0xff] %vm1912_vm5, %v1901_v61 }
 0x614   : > { %v1892_v33 = vpop.xlane.xlu2 %1891 }
 0x615   : > { %v1910_v49 = vadd.f32 %v1892_v33, %v1846_v10 }
 0x617   : > { %1927 = vst.msk [vmem:[#allocation4 + $0x70] sm:$0xff] %vm1912_vm5, %v1910_v49 }
 0x61c   : > { %v2018_v47 = vpop.permute.xlu2 %2017 }
 0x61d   : > { %v2039_v6 = vmul.f32 %v2018_v47, %v1943_v2 }
 0x61f   : > { %v2168_v46 = vadd.f32 %v2148_v19, %v2039_v6 }
 0x621   : > { %2184 = vst.msk [vmem:[#allocation5 + $0x70] sm:$0xff] %vm5150_vm8, %v2168_v46 }
 0x622 PF: > { %p2984_p9 = scmp.ne.s32.totalorder %s3394_s24, 1 }
 0x624   : > { %2205 = sbr.rel (%p2984_p9) target bundleno = 1890 (0x762), region = 60 }
 0x629   : > { %v2231_v31 = vld [vmem:[#allocation4 + $0x48] sm:$0xff]  ;;  %v4682_v41 = vld [vmem:[#allocation4 + $0x40] sm:$0xff]  ;;  %v3427_v1 = vmov 0   ;;  %v4720_v21 = vld [vmem:[#allocation4 + $0x50] sm:$0xff] }
 0x62a   : > { %v4684_v7 = vld [vmem:[#allocation4] sm:$0xff]  ;;  %3274 = vset.pattern.permute.xlu2 %v3427_v1  ;;  %3273 = vset.pattern.permute.xlu1 %v3427_v1  ;;  %3276 = vrcp.f32 %v2231_v31  ;;  %v2373_v26 = vand.u32 2147483647, %v2231_v31  ;;  %v2375_v56 = vand.u32 2147483648, %v2231_v31  ;;  %v4687_v38 = vld [vmem:[#allocation4 + $0x68] sm:$0xff]  ;;  %v2361_v13 = vand.u32 2147483648, %v4682_v41 }
 0x62b   : > { %3272 = vset.pattern.permute.xlu0 %v3427_v1  ;;  %3278 = vrcp.f32 %v4682_v41  ;;  %v2359_v55 = vand.u32 2147483647, %v4682_v41  ;;  %v4692_v0 = vld [vmem:[#allocation4 + $0x60] sm:$0xff]  ;;  %vm2369_vm5 = vweird.f32 %v2231_v31  ;;  %v2247_v42 = vand.u32 2147483647, %v4684_v7  ;;  %v4820_v54 = vld [vmem:[#allocation4 + $0x28] sm:$0xff] }
 0x62c   : > { %3280 = vrcp.f32 %v4684_v7  ;;  %vm2355_vm9 = vweird.f32 %v4682_v41  ;;  %v2249_v28 = vand.u32 2147483648, %v4684_v7  ;;  %v2431_v22 = vand.u32 2147483648, %v4687_v38  ;;  %v4699_v9 = vld [vmem:[#allocation4 + $0x20] sm:$0xff] }
 0x62d   : > { %3282 = vrcp.f32 %v4687_v38  ;;  %vm4701_vm10 = vcmp.eq.f32.partialorder %v2373_v26, 8.507059e+37  ;;  %v2376_v25 = vor.u32 1.1754944e-38, %v2375_v56  ;;  %vm2243_vm11 = vweird.f32 %v4684_v7  ;;  %v4803_v56 = vld [vmem:[#allocation4 + $0x8] sm:$0xff] }
 0x62e   : > { %3284 = vrcp.f32 %v4692_v0  ;;  %vm4707_vm12 = vcmp.eq.f32.partialorder %v2359_v55, 8.507059e+37  ;;  %v2362_v50 = vor.u32 1.1754944e-38, %v2361_v13  ;;  %vm2425_vm13 = vweird.f32 %v4687_v38 }
 0x62f   : > { %v2429_v63 = vand.u32 2147483647, %v4687_v38  ;;  %v2417_v59 = vand.u32 2147483648, %v4692_v0  ;;  %vm4714_vm14 = vcmp.eq.f32.partialorder %v2247_v42, 8.507059e+37  ;;  %v2415_v23 = vand.u32 2147483647, %v4692_v0 }
 0x630   : > { %v3277_v53 = vpop.eup %3276  ;;  %3286 = vrcp.f32 %v4699_v9  ;;  %v2250_v11 = vor.u32 1.1754944e-38, %v2249_v28  ;;  %v4723_v16 = vor.u32 1.1754944e-38, %v2431_v22  ;;  %vm2411_vm15 = vweird.f32 %v4692_v0 }
 0x631   : > { %v3279_v29 = vpop.eup %3278  ;;  %v2365_v40 = vmul.f32 %v3277_v53, %v2231_v31  ;;  %vm2370_vm0 = vweird.f32 %v3277_v53  ;;  %v4730_v43 = vor.u32 1.1754944e-38, %v2417_v59  ;;  %3288 = vrcp.f32 %v4720_v21 }
 0x632   : > { %v3281_v39 = vpop.eup %3280  ;;  %v2351_v48 = vmul.f32 %v3279_v29, %v4682_v41  ;;  %vm2356_vm2 = vweird.f32 %v3279_v29  ;;  %vm4737_vm4 = vcmp.eq.f32.partialorder %v2429_v63, 8.507059e+37  ;;  %vm4741_vm7 = vcmp.eq.f32.partialorder %v2415_v23, 8.507059e+37  ;;  %vm4747_vm6 = vmor %vm2369_vm5, %vm2370_vm0  ;;  %v4829_v63 = vld [vmem:[#allocation4 + $0x30] sm:$0xff] }
 0x633   : > { %v2366_v58 = vsub.f32 1.0, %v2365_v40  ;;  %v2239_v60 = vmul.f32 %v3281_v39, %v4684_v7  ;;  %v4728_v24 = vpop.eup %3282  ;;  %vm2244_vm3 = vweird.f32 %v3281_v39  ;;  %v2303_v12 = vand.u32 2147483647, %v4699_v9  ;;  %vm4758_vm8 = vmor %vm2355_vm9, %vm2356_vm2 }
 0x634   : > { %v2352_v19 = vsub.f32 1.0, %v2351_v48  ;;  %v4733_v5 = vpop.eup %3284  ;;  %v2421_v45 = vmul.f32 %v4728_v24, %v4687_v38  ;;  %v2305_v36 = vand.u32 2147483648, %v4699_v9  ;;  %vm2426_vm5 = vweird.f32 %v4728_v24  ;;  %vm4766_vm0 = vmor %vm2243_vm11, %vm2244_vm3 }
 0x635   : > { %v2367_v4 = vmul.f32 %v3277_v53, %v2366_v58  ;;  %v2240_v57 = vsub.f32 1.0, %v2239_v60  ;;  %v2407_v18 = vmul.f32 %v4733_v5, %v4692_v0  ;;  %vm2412_vm1 = vweird.f32 %v4733_v5  ;;  %vm4783_vm11 = vmor %vm2425_vm13, %vm2426_vm5 }
 0x636   : > { %v2353_v62 = vmul.f32 %v3279_v29, %v2352_v19  ;;  %v3287_v30 = vpop.eup %3286  ;;  %v2422_v37 = vsub.f32 1.0, %v2421_v45  ;;  %vm5171_vm13 = vweird.f32 %v4699_v9  ;;  %v2306_v28 = vor.u32 1.1754944e-38, %v2305_v36 }
 0x637   : > { %v2368_v44 = vadd.f32 %v3277_v53, %v2367_v4  ;;  %v2241_v17 = vmul.f32 %v3281_v39, %v2240_v57  ;;  %v2408_v15 = vsub.f32 1.0, %v2407_v18  ;;  %v2295_v20 = vmul.f32 %v3287_v30, %v4699_v9  ;;  %v4775_v33 = vpop.eup %3288 }
 0x638   : > { %v2354_v14 = vadd.f32 %v3279_v29, %v2353_v62  ;;  %v2423_v10 = vmul.f32 %v4728_v24, %v2422_v37  ;;  %vm2300_vm9 = vweird.f32 %v3287_v30  ;;  %v2379_v26 = vmul.f32 %v4775_v33, %v4720_v21 }
 0x639   : > { %v2372_v61 = vsel %vm4747_vm6, %v3277_v53, %v2368_v44  ;;  %v2242_v52 = vadd.f32 %v3281_v39, %v2241_v17  ;;  %v2409_v6 = vmul.f32 %v4733_v5, %v2408_v15  ;;  %v2296_v46 = vsub.f32 1.0, %v2295_v20  ;;  %v4880_v44 = vld [vmem:[#allocation4 + $0x18] sm:$0xff] }
 0x63a   : > { %v2377_v49 = vsel %vm4701_vm10, %v2376_v25, %v2372_v61  ;;  %v2358_v2 = vsel %vm4758_vm8, %v3279_v29, %v2354_v14  ;;  %v2424_v7 = vadd.f32 %v4728_v24, %v2423_v10  ;;  %vm4797_vm10 = vmor %vm2411_vm15, %vm2412_vm1  ;;  %v2380_v22 = vsub.f32 1.0, %v2379_v26  ;;  %v4886_v61 = vld [vmem:[#allocation4 + $0x58] sm:$0xff] }
 0x63b   : > { %2509 = vperm.xlu2 %3274, %v2377_v49   ;;  %v2363_v31 = vsel %vm4707_vm12, %v2362_v50, %v2358_v2  ;;  %v2246_v41 = vsel %vm4766_vm0, %v3281_v39, %v2242_v52  ;;  %v2410_v55 = vadd.f32 %v4733_v5, %v2409_v6  ;;  %v2297_v13 = vmul.f32 %v3287_v30, %v2296_v46  ;;  %vm4815_vm15 = vmor %vm5171_vm13, %vm2300_vm9 }
 0x63c   : > { %2504 = vperm.xlu0 %3272, %v2363_v31   ;;  %v2251_v38 = vsel %vm4714_vm14, %v2250_v11, %v2246_v41  ;;  %vm2383_vm12 = vweird.f32 %v4720_v21  ;;  %v2428_v0 = vsel %vm4783_vm11, %v4728_v24, %v2424_v7  ;;  %vm2384_vm14 = vweird.f32 %v4775_v33 }
 0x63d   : > { %2464 = vperm.xlu1 %3273, %v2251_v38   ;;  %v2414_v25 = vsel %vm4797_vm10, %v4733_v5, %v2410_v55  ;;  %v2298_v53 = vadd.f32 %v3287_v30, %v2297_v13  ;;  %v2389_v35 = vand.u32 2147483648, %v4720_v21  ;;  %3290 = vrcp.f32 %v4803_v56  ;;  %vm4841_vm2 = vmor %vm2383_vm12, %vm2384_vm14  ;;  %v2646_v13 = vld [vmem:[%s5083_s4 + $0x28] sm:$0xff] }
 0x63e   : > { %vm2304_vm1 = vcmp.eq.f32.partialorder %v2303_v12, 8.507059e+37  ;;  %v2381_v9 = vmul.f32 %v4775_v33, %v2380_v22  ;;  %v2387_v50 = vand.u32 2147483647, %v4720_v21  ;;  %v2433_v59 = vsel %vm4737_vm4, %v4723_v16, %v2428_v0  ;;  %v4850_v16 = vld [vmem:[#allocation4 + $0x70] sm:$0xff]  ;;  %2673 = vmatpush.msra.mxu2 %v2646_v13 }
 0x63f   : > { %v2419_v29 = vsel %vm4741_vm7, %v4730_v43, %v2414_v25  ;;  %v2302_v40 = vsel %vm4815_vm15, %v3287_v30, %v2298_v53  ;;  %3292 = vrcp.f32 %v4820_v54  ;;  %v2261_v39 = vand.u32 2147483647, %v4803_v56  ;;  %v4858_v43 = vld [vmem:[#allocation4 + $0x10] sm:$0xff] }
 0x640   : > { %v2382_v23 = vadd.f32 %v4775_v33, %v2381_v9  ;;  %v2263_v48 = vand.u32 2147483648, %v4803_v56  ;;  %v2317_v11 = vand.u32 2147483647, %v4820_v54  ;;  %v2307_v58 = vsel %vm2304_vm1, %v2306_v28, %v2302_v40  ;;  %v2561_v28 = vld [vmem:[%s5083_s4 + $0x18] sm:$0xff] }
 0x641   : > { %v2390_v60 = vor.u32 1.1754944e-38, %v2389_v35  ;;  %v2319_v21 = vand.u32 2147483648, %v4820_v54  ;;  %3294 = vrcp.f32 %v4829_v63  ;;  %vm2388_vm3 = vcmp.eq.f32.partialorder %v2387_v50, 8.507059e+37  ;;  %2589 = vmatpush.msra.mxu0 %v2561_v28  ;;  %v2206_v50 = vld [vmem:[#allocation5] sm:$0xff] }
 0x642   : > { %v2386_v24 = vsel %vm4841_vm2, %v4775_v33, %v2382_v23  ;;  %v2331_v19 = vand.u32 2147483647, %v4829_v63  ;;  %vm2257_vm4 = vweird.f32 %v4803_v56  ;;  %vm2313_vm7 = vweird.f32 %v4820_v54  ;;  %v2237_v23 = vld [vmem:[#allocation4 + $0x78] sm:$0xff] }
 0x643   : > { %2529 = vperm.xlu2 %3274, %v2433_v59   ;;  %v3291_v5 = vpop.eup %3290  ;;  %v2333_v4 = vand.u32 2147483648, %v4829_v63  ;;  %3296 = vrcp.f32 %v4850_v16  ;;  %vm4865_vm6 = vcmp.eq.f32.partialorder %v2261_v39, 8.507059e+37  ;;  %v2264_v51 = vor.u32 1.1754944e-38, %v2263_v48 }
 0x644   : > { %2524 = vperm.xlu0 %3272, %v2419_v29   ;;  %v2253_v57 = vmul.f32 %v3291_v5, %v4803_v56  ;;  %vm4869_vm8 = vcmp.eq.f32.partialorder %v2317_v11, 8.507059e+37  ;;  %v2391_v62 = vsel %vm2388_vm3, %v2390_v60, %v2386_v24  ;;  %v2320_v18 = vor.u32 1.1754944e-38, %v2319_v21 }
 0x645   : > { %2484 = vperm.xlu1 %3273, %v2307_v58   ;;  %v3293_v34 = vpop.eup %3292  ;;  %vm2327_vm5 = vweird.f32 %v4829_v63  ;;  %3298 = vrcp.f32 %v4858_v43  ;;  %vm2258_vm0 = vweird.f32 %v3291_v5  ;;  %vm4876_vm9 = vcmp.eq.f32.partialorder %v2331_v19, 8.507059e+37  ;;  %v2229_v19 = vld [vmem:[#allocation4 + $0x38] sm:$0xff] }
 0x646   : > { %v2254_v12 = vsub.f32 1.0, %v2253_v57  ;;  %v2309_v36 = vmul.f32 %v3293_v34, %v4820_v54  ;;  %v2334_v17 = vor.u32 1.1754944e-38, %v2333_v4  ;;  %vm2439_vm11 = vweird.f32 %v4850_v16  ;;  %vm4891_vm12 = vmor %vm2257_vm4, %vm2258_vm0 }
 0x647   : > { %v3295_v32 = vpop.eup %3294  ;;  %v2443_v37 = vand.u32 2147483647, %v4850_v16  ;;  %v2445_v14 = vand.u32 2147483648, %v4850_v16  ;;  %vm2314_vm10 = vweird.f32 %v3293_v34  ;;  %v2275_v33 = vand.u32 2147483647, %v4858_v43 }
 0x648   : > { %v2255_v27 = vmul.f32 %v3291_v5, %v2254_v12  ;;  %v2310_v15 = vsub.f32 1.0, %v2309_v36  ;;  %v2323_v20 = vmul.f32 %v3295_v32, %v4829_v63  ;;  %vm2328_vm13 = vweird.f32 %v3295_v32  ;;  %vm4902_vm15 = vmor %vm2313_vm7, %vm2314_vm10 }
 0x649   : > { %v3297_v52 = vpop.eup %3296  ;;  %v2277_v49 = vand.u32 2147483648, %v4858_v43  ;;  %3300 = vrcp.f32 %v4880_v44  ;;  %vm4906_vm1 = vcmp.eq.f32.partialorder %v2443_v37, 8.507059e+37  ;;  %vm2271_vm2 = vweird.f32 %v4858_v43  ;;  %vm4919_vm3 = vmor %vm2327_vm5, %vm2328_vm13 }
 0x64a   : > { %v2256_v2 = vadd.f32 %v3291_v5, %v2255_v27  ;;  %v2311_v47 = vmul.f32 %v3293_v34, %v2310_v15  ;;  %v2324_v6 = vsub.f32 1.0, %v2323_v20  ;;  %v2435_v46 = vmul.f32 %v3297_v52, %v4850_v16 }
 0x64b   : > { %2514 = vperm.xlu2 %3274, %v2391_v62   ;;  %v3299_v31 = vpop.eup %3298  ;;  %vm2440_vm14 = vweird.f32 %v3297_v52  ;;  %3302 = vrcp.f32 %v4886_v61  ;;  %v2446_v0 = vor.u32 1.1754944e-38, %v2445_v14  ;;  %vm4924_vm4 = vcmp.eq.f32.partialorder %v2275_v33, 8.507059e+37 }
 0x64c   : > { %v2260_v1 = vsel %vm4891_vm12, %v3291_v5, %v2256_v2  ;;  %v2312_v26 = vadd.f32 %v3293_v34, %v2311_v47  ;;  %v2325_v56 = vmul.f32 %v3295_v32, %v2324_v6  ;;  %v2436_v38 = vsub.f32 1.0, %v2435_v46  ;;  %vm4935_vm7 = vmor %vm2439_vm11, %vm2440_vm14 }
 0x64d   : > { %v2265_v55 = vsel %vm4865_vm6, %v2264_v51, %v2260_v1  ;;  %v2267_v42 = vmul.f32 %v3299_v31, %v4858_v43  ;;  %v2278_v53 = vor.u32 1.1754944e-38, %v2277_v49  ;;  %vm2272_vm6 = vweird.f32 %v3299_v31 }
 0x64e   : > { %2469 = vperm.xlu0 %3272, %v2265_v55   ;;  %v2316_v22 = vsel %vm4902_vm15, %v3293_v34, %v2312_v26  ;;  %v2326_v54 = vadd.f32 %v3295_v32, %v2325_v56  ;;  %v2437_v25 = vmul.f32 %v3297_v52, %v2436_v38  ;;  %vm2285_vm5 = vweird.f32 %v4880_v44  ;;  %vm4953_vm0 = vmor %vm2271_vm2, %vm2272_vm6 }
 0x64f   : > { %v3301_v35 = vpop.eup %3300  ;;  %v2321_v9 = vsel %vm4869_vm8, %v2320_v18, %v2316_v22  ;;  %v2268_v63 = vsub.f32 1.0, %v2267_v42  ;;  %v2289_v3 = vand.u32 2147483647, %v4880_v44  ;;  %v2291_v16 = vand.u32 2147483648, %v4880_v44  ;;  %v2559_v42 = vld [vmem:[%s5083_s4 + $0x8] sm:$0xff]  ;;  %v2558_v22 = vld [vmem:[%s5083_s4] sm:$0xff] }
 0x650   : > { %2489 = vperm.xlu1 %3273, %v2321_v9   ;;  %v2330_v59 = vsel %vm4919_vm3, %v3295_v32, %v2326_v54  ;;  %v2438_v29 = vadd.f32 %v3297_v52, %v2437_v25  ;;  %v2281_v40 = vmul.f32 %v3301_v35, %v4880_v44  ;;  %vm2397_vm8 = vweird.f32 %v4886_v61  ;;  %2630 = vmatpush.msra.mxu1 %v2559_v42  ;;  %v2693_v54 = vld [vmem:[%s5083_s4 + $0x38] sm:$0xff]  ;;  %v2560_v25 = vld [vmem:[%s5083_s4 + $0x10] sm:$0xff]  ;;  %v2214_v9 = vld [vmem:[#allocation5 + $0x40] sm:$0xff] }
 0x651   : > { %v3303_v39 = vpop.eup %3302  ;;  %v2335_v48 = vsel %vm4876_vm9, %v2334_v17, %v2330_v59  ;;  %v2269_v11 = vmul.f32 %v3299_v31, %v2268_v63  ;;  %vm2286_vm11 = vweird.f32 %v3301_v35  ;;  %v2403_v57 = vand.u32 2147483648, %v4886_v61  ;;  %2720 = vmatpush.msra.mxu3 %v2693_v54  ;;  %2590 = vmatpush.msra.mxu0 %v2560_v25 }
 0x652   : > { %v2442_v58 = vsel %vm4935_vm7, %v3297_v52, %v2438_v29  ;;  %v2282_v21 = vsub.f32 1.0, %v2281_v40  ;;  %v2393_v24 = vmul.f32 %v3303_v39, %v4886_v61  ;;  %3304 = vrcp.f32 %v2237_v23  ;;  %vm4966_vm10 = vmor %vm2285_vm5, %vm2286_vm11  ;;  %2631 = vmatpush.msra.mxu1 %v2558_v22 }
 0x653   : > { %2494 = vperm.xlu2 %3274, %v2335_v48   ;;  %v2447_v5 = vsel %vm4906_vm1, %v2446_v0, %v2442_v58  ;;  %v2270_v4 = vadd.f32 %v3299_v31, %v2269_v11  ;;  %vm2398_vm9 = vweird.f32 %v3303_v39  ;;  %v2401_v43 = vand.u32 2147483647, %v4886_v61  ;;  %v2645_v0 = vld [vmem:[%s5083_s4 + $0x20] sm:$0xff] }
 0x654   : > { %v2283_v45 = vmul.f32 %v3301_v35, %v2282_v21  ;;  %v2394_v51 = vsub.f32 1.0, %v2393_v24  ;;  %v2292_v62 = vor.u32 1.1754944e-38, %v2291_v16  ;;  %3306 = vrcp.f32 %v2229_v19  ;;  %vm2399_vm13 = vmor %vm2397_vm8, %vm2398_vm9  ;;  %2674 = vmatpush.msra.mxu2 %v2645_v0  ;;  %v2210_v11 = vld [vmem:[#allocation5 + $0x20] sm:$0xff]  ;;  %v2219_v24 = vld [vmem:[#allocation5 + $0x68] sm:$0xff] }
 0x655   : > { %v2274_v8 = vsel %vm4953_vm0, %v3299_v31, %v2270_v4  ;;  %vm2290_vm12 = vcmp.eq.f32.partialorder %v2289_v3, 8.507059e+37  ;;  %v2404_v30 = vor.u32 1.1754944e-38, %v2403_v57  ;;  %vm2402_vm15 = vcmp.eq.f32.partialorder %v2401_v43, 8.507059e+37  ;;  %v2215_v3 = vld [vmem:[#allocation5 + $0x48] sm:$0xff] }
 0x656   : > { %2534 = vperm.xlu0 %3272, %v2447_v5   ;;  %v2279_v18 = vsel %vm4924_vm4, %v2278_v53, %v2274_v8  ;;  %v2284_v12 = vadd.f32 %v3301_v35, %v2283_v45  ;;  %v2395_v36 = vmul.f32 %v3303_v39, %v2394_v51  ;;  %vm2453_vm14 = vweird.f32 %v2237_v23  ;;  %v2692_v53 = vld [vmem:[%s5083_s4 + $0x30] sm:$0xff]  ;;  %v2207_v45 = vld [vmem:[#allocation5 + $0x8] sm:$0xff] }
 0x657   : > { %v2459_v52 = vand.u32 2147483648, %v2237_v23  ;;  %v2457_v61 = vand.u32 2147483647, %v2237_v23  ;;  %vm2341_vm2 = vweird.f32 %v2229_v19  ;;  %v2347_v49 = vand.u32 2147483648, %v2229_v19  ;;  %2721 = vmatpush.msra.mxu3 %v2692_v53  ;;  %v2211_v43 = vld [vmem:[#allocation5 + $0x28] sm:$0xff] }
 0x658   : > { %2474 = vperm.xlu1 %3273, %v2279_v18   ;;  %v2288_v44 = vsel %vm4966_vm10, %v3301_v35, %v2284_v12  ;;  %v2396_v32 = vadd.f32 %v3303_v39, %v2395_v36  ;;  %v3305_v17 = vpop.eup %3304  ;;  %v2345_v6 = vand.u32 2147483647, %v2229_v19  ;;  %vm2562_vm8 = vcmask 130048   ;;  %v2220_v12 = vld [vmem:[#allocation5 + $0x70] sm:$0xff] }
 0x659   : > { %v2293_v37 = vsel %vm2290_vm12, %v2292_v62, %v2288_v44  ;;  %v2449_v27 = vmul.f32 %v3305_v17, %v2237_v23  ;;  %vm2454_vm1 = vweird.f32 %v3305_v17  ;;  %v2460_v46 = vor.u32 1.1754944e-38, %v2459_v52  ;;  %v2212_v36 = vld [vmem:[#allocation5 + $0x30] sm:$0xff] }
 0x65a   : > { %v2400_v14 = vsel %vm2399_vm13, %v3303_v39, %v2396_v32  ;;  %v3307_v15 = vpop.eup %3306  ;;  %vm2455_vm4 = vmor %vm2453_vm14, %vm2454_vm1  ;;  %vm2458_vm7 = vcmp.eq.f32.partialorder %v2457_v61, 8.507059e+37  ;;  %v2348_v7 = vor.u32 1.1754944e-38, %v2347_v49  ;;  %vm2346_vm5 = vcmp.eq.f32.partialorder %v2345_v6, 8.507059e+37  ;;  %v2218_v39 = vld [vmem:[#allocation5 + $0x60] sm:$0xff]  ;;  %v2208_v44 = vld [vmem:[#allocation5 + $0x10] sm:$0xff] }
 0x65b   : > { %2479 = vperm.xlu2 %3274, %v2293_v37   ;;  %v2405_v20 = vsel %vm2402_vm15, %v2404_v30, %v2400_v14  ;;  %v2450_v10 = vsub.f32 1.0, %v2449_v27  ;;  %v2337_v33 = vmul.f32 %v3307_v15, %v2229_v19  ;;  %vm2342_vm3 = vweird.f32 %v3307_v15  ;;  %v2216_v19 = vld [vmem:[#allocation5 + $0x50] sm:$0xff]  ;;  %v2217_v27 = vld [vmem:[#allocation5 + $0x58] sm:$0xff] }
 0x65c   : > { %vm2343_vm6 = vmor %vm2341_vm2, %vm2342_vm3  ;;  %vm2747_vm0 = vcmask 523264  }
 0x65d   : > { %v2451_v2 = vmul.f32 %v3305_v17, %v2450_v10  ;;  %v2338_v47 = vsub.f32 1.0, %v2337_v33  ;;  %v2221_v33 = vld [vmem:[#allocation5 + $0x78] sm:$0xff] }
 0x65e   : > { %2519 = vperm.xlu0 %3272, %v2405_v20   ;;  %v2209_v20 = vld [vmem:[#allocation5 + $0x18] sm:$0xff] }
 0x65f   : > { %v2452_v31 = vadd.f32 %v3305_v17, %v2451_v2  ;;  %v2339_v41 = vmul.f32 %v3307_v15, %v2338_v47  ;;  %v2213_v2 = vld [vmem:[#allocation5 + $0x38] sm:$0xff] }
 0x661   : > { %v2456_v1 = vsel %vm2455_vm4, %v3305_v17, %v2452_v31  ;;  %v2340_v26 = vadd.f32 %v3307_v15, %v2339_v41 }
 0x662   : > { %v2461_v56 = vsel %vm2458_vm7, %v2460_v46, %v2456_v1 }
 0x663   : > { %2539 = vperm.xlu1 %3273, %v2461_v56   ;;  %v2344_v38 = vsel %vm2343_vm6, %v3307_v15, %v2340_v26  ;;  %v3275_v56 = vld [vmem:[%s5084_s5] ss:$0 sm:$0xff] }
 0x664   : > { %v2349_v55 = vsel %vm2346_vm5, %v2348_v7, %v2344_v38 }
 0x666   : > { %2499 = vperm.xlu0 %3272, %v2349_v55  }
 0x695   : > { %v2510_v35 = vpop.permute.xlu2 %2509 }
 0x696   : > { %v2551_v48 = vmul.f32 %v2510_v35, %v2215_v3 }
 0x69d   : > { %v2530_v23 = vpop.permute.xlu2 %2529 }
 0x69e   : > { %v2555_v4 = vmul.f32 %v2530_v23, %v2219_v24 }
 0x6a5   : > { %v2515_v5 = vpop.permute.xlu2 %2514 }
 0x6a6   : > { %v2552_v57 = vmul.f32 %v2515_v5, %v2216_v19 }
 0x6ad   : > { %v2495_v18 = vpop.permute.xlu2 %2494 }
 0x6ae   : > { %v2505_v63 = vpop.permute.xlu0 %2504  ;;  %v2548_v37 = vmul.f32 %v2495_v18, %v2212_v36 }
 0x6af   : > { %v2550_v59 = vmul.f32 %v2505_v63, %v2214_v9  ;;  %v2465_v29 = vpop.permute.xlu1 %2464 }
 0x6b0   : > { %v2542_v40 = vmul.f32 %v2465_v29, %v2206_v50 }
 0x6b1   : > { %2993 = vmatmul.msk.f32.vlgmr.msra.gmra.mxu2 %vm2562_vm8, %v2550_v59 }
 0x6b2   : > { %2989 = vmatmul.msk.f32.vlgmr.msra.gmra.mxu1 %vm2562_vm8, %v2542_v40 }
 0x6b5   : > { %v2480_v15 = vpop.permute.xlu2 %2479 }
 0x6b6   : > { %v2525_v16 = vpop.permute.xlu0 %2524  ;;  %v2545_v61 = vmul.f32 %v2480_v15, %v2209_v20 }
 0x6b7   : > { %v2554_v58 = vmul.f32 %v2525_v16, %v2218_v39  ;;  %v2485_v60 = vpop.permute.xlu1 %2484 }
 0x6b8   : > { %v2546_v21 = vmul.f32 %v2485_v60, %v2210_v11 }
 0x6b9   : > { %2994 = vmatmul.msk.f32.gmra.mxu2 %vm2562_vm8, %v2551_v48  ;;  %2997 = vmatmul.msk.f32.vlgmr.msra.gmra.mxu3 %vm2562_vm8, %v2554_v58 }
 0x6ba   : > { %2985 = vmatmul.msk.f32.vlgmr.msra.gmra.mxu0 %vm2562_vm8, %v2546_v21 }
 0x6c0   : > { %v2470_v51 = vpop.permute.xlu0 %2469 }
 0x6c1   : > { %2995 = vmatmul.msk.f32.gmra.mxu2 %vm2562_vm8, %v2552_v57  ;;  %2998 = vmatmul.msk.f32.gmra.mxu3 %vm2562_vm8, %v2555_v4  ;;  %v2543_v8 = vmul.f32 %v2470_v51, %v2207_v45 }
 0x6c2   : > { %v2490_v34 = vpop.permute.xlu1 %2489 }
 0x6c3   : > { %v2547_v62 = vmul.f32 %v2490_v34, %v2211_v43  ;;  %2990 = vmatmul.msk.f32.gmra.mxu1 %vm2562_vm8, %v2543_v8 }
 0x6c5   : > { %2986 = vmatmul.msk.f32.gmra.mxu0 %vm2562_vm8, %v2547_v62 }
 0x6c8   : > { %v2535_v30 = vpop.permute.xlu0 %2534 }
 0x6c9   : > { %v2556_v32 = vmul.f32 %v2535_v30, %v2220_v12 }
 0x6ca   : > { %v2475_v17 = vpop.permute.xlu1 %2474 }
 0x6cb   : > { %v2544_v14 = vmul.f32 %v2475_v17, %v2208_v44  ;;  %2999 = vmatmul.msk.f32.gmra.mxu3 %vm2562_vm8, %v2556_v32 }
 0x6cd   : > { %2987 = vmatmul.msk.f32.gmra.mxu0 %vm2562_vm8, %v2548_v37  ;;  %2991 = vmatmul.msk.f32.gmra.mxu1 %vm2562_vm8, %v2544_v14 }
 0x6d0   : > { %v2520_v52 = vpop.permute.xlu0 %2519 }
 0x6d1   : > { %v2553_v10 = vmul.f32 %v2520_v52, %v2217_v27 }
 0x6d3   : > { %2996 = vmatmul.msk.f32.gmra.mxu2 %vm2562_vm8, %v2553_v10 }
 0x6d5   : > { %2992 = vmatmul.msk.f32.gmra.mxu1 %vm2562_vm8, %v2545_v61  ;;  %v2540_v49 = vpop.permute.xlu1 %2539 }
 0x6d6   : > { %v2557_v47 = vmul.f32 %v2540_v49, %v2221_v33 }
 0x6d8   : > { %v2500_v6 = vpop.permute.xlu0 %2499  ;;  %3000 = vmatmul.msk.f32.gmra.mxu3 %vm2562_vm8, %v2557_v47 }
 0x6d9   : > { %v2549_v46 = vmul.f32 %v2500_v6, %v2213_v2 }
 0x6db   : > { %2988 = vmatmul.msk.f32.gmra.mxu0 %vm2562_vm8, %v2549_v46 }
 0x72f   : > { %v2633_v31 = vpop.f32.mrf.mxu1 }
 0x734   : > { %v2676_v1 = vpop.f32.mrf.mxu2 }
 0x737   : > { %v2592_v41 = vpop.f32.mrf.mxu0 }
 0x738   : > { %v2634_v7 = vadd.f32 %v2633_v31, %v2592_v41 }
 0x73a   : > { %v2688_v26 = vadd.f32 %v2676_v1, %v2634_v7 }
 0x73c   : > { %v2723_v38 = vpop.f32.mrf.mxu3  ;;  %v2679_v42 = vpop.f32.mrf.mxu2 }
 0x73d   : > { %v2735_v55 = vadd.f32 %v2723_v38, %v2688_v26 }
 0x73f   : > { %v2743_v13 = vadd.f32 %v3275_v56, %v2735_v55 }
 0x740   : > { %v2636_v0 = vpop.f32.mrf.mxu1 }
 0x741   : > { %2748 = vst.msk [vmem:[%s3573_s21] sm:$0xff] %vm2747_vm0, %v2743_v13 }
 0x742   : > { %v2595_v28 = vpop.f32.mrf.mxu0 }
 0x743   : > { %v2637_v22 = vadd.f32 %v2636_v0, %v2595_v28 }
 0x744   : > { %v2726_v54 = vpop.f32.mrf.mxu3  ;;  %v2682_v59 = vpop.f32.mrf.mxu2 }
 0x745   : > { %v2689_v25 = vadd.f32 %v2679_v42, %v2637_v22 }
 0x747   : > { %v2736_v53 = vadd.f32 %v2726_v54, %v2689_v25 }
 0x749   : > { %v2744_v35 = vadd.f32 %v3275_v56, %v2736_v53 }
 0x74a   : > { %v2598_v9 = vpop.f32.mrf.mxu0  ;;  %v2639_v50 = vpop.f32.mrf.mxu1 }
 0x74b   : > { %2749 = vst.msk [vmem:[%s3573_s21 + $0x8] sm:$0xff] %vm2747_vm0, %v2744_v35  ;;  %v2640_v63 = vadd.f32 %v2639_v50, %v2598_v9 }
 0x74d   : > { %v2690_v29 = vadd.f32 %v2682_v59, %v2640_v63 }
 0x74e   : > { %v2729_v40 = vpop.f32.mrf.mxu3 }
 0x74f   : > { %v2737_v3 = vadd.f32 %v2729_v40, %v2690_v29 }
 0x751   : > { %v2745_v23 = vadd.f32 %v3275_v56, %v2737_v3 }
 0x752   : > { %v2642_v39 = vpop.f32.mrf.mxu1 }
 0x753   : > { %2750 = vst.msk [vmem:[%s3573_s21 + $0x10] sm:$0xff] %vm2747_vm0, %v2745_v23 }
 0x756   : > { %v2685_v16 = vpop.f32.mrf.mxu2 }
 0x758   : > { %v2601_v48 = vpop.f32.mrf.mxu0 }
 0x759   : > { %v2643_v11 = vadd.f32 %v2642_v39, %v2601_v48 }
 0x75b   : > { %v2691_v58 = vadd.f32 %v2685_v16, %v2643_v11  ;;  %v2732_v60 = vpop.f32.mrf.mxu3 }
 0x75d   : > { %v2738_v21 = vadd.f32 %v2732_v60, %v2691_v58 }
 0x75f   : > { %v2746_v24 = vadd.f32 %v3275_v56, %v2738_v21 }
 0x761   : > { %2751 = vst.msk [vmem:[%s3573_s21 + $0x18] sm:$0xff] %vm2747_vm0, %v2746_v24 }
 0x762 PF: > { %s3003_s24 = sshll.u32 %s3402_s26, 3  ;;  %s2767_s28 = sshll.u32 %s3573_s21, 4  ;;  %s2768_s28 = int_to_ptr.vmem [resolvable:$true] %s2767_s28 }
 0x763   : > { %s2764_s18 = sadd.s32 %s3003_s24, %s3552_s20  ;;  %s5198_s15 = sand.u32 1, %s3386_s22  }
 0x764   : > { %s3004_s23 = sshll.u32 %s2764_s18, 3  ;;  %s2753_s16 = scalar_lea.sflag [#allocation7], %s5198_s15 }
 0x765   : > { %s2766_s19 = scalar_lea.hbm %s5085_s6, %s3004_s23  ;;  %s3328_s21 = scalar_lea.hbm %s5085_s6, 128 }
 0x766   : > { %s2769_s7 = sshll.u32 %s2766_s19, 4  ;;  %s2770_s7 = int_to_ptr.hbm [resolvable:$true] %s2769_s7 }
 0x767   : > { %s3322_s17 = sshra.s32 %s2770_s7, 4  ;;  %s3323_s17 = int_to_ptr.hbm [resolvable:$true] %s3322_s17 }
 0x768   : > { %s3324_s8 = scalar_lea.hbm %s3323_s17, 32  ;;  %p3329_p13 = scmp.lt.s32.totalorder %s3323_s17, %s5085_s6 }
 0x769   : > { %p3325_p10 = scmp.ne.s32.totalorder %s3323_s17, %s3324_s8  ;;  %p3330_p0 = scmp.lt.s32.totalorder %s3328_s21, %s3324_s8 }
 0x76b   : > { %p3326_p11 = pnand %p3325_p10, %p3527_p6  ;;  %p3331_p1 = por %p3330_p0, %p3329_p13 }
 0x76d   : > { %p3327_p12 = pneg %p3326_p11 }
 0x76f   : > { %p3332_p2 = pnand %p3331_p1, %p3327_p12 }
 0x771   : > { %3335 = shalt.err (!%p3332_p2)
}
 0x772   : > { %s3428_s25 = smov 128   ;;  %s3429_s11 = smov 8  }
 0x773   : > { %3041 = dma.vmem_to_hbm [thread:$0]  (%p3527_p6), %s2768_s28, 512, %s2770_s7, %s2753_s16, %s3428_s25, %s3428_s25, %s3429_s11  }
 0x774 PF: > { %s5199_s27 = sld [smem:[#allocation9_spill]]  ;;  %p3047_p3 = scmp.ge.s32.totalorder %s3418_s30, 2 }
 0x776   : > { %p3044_p4 = pnand %p3047_p3, %p3534_p7 }
 0x778   : > { %p3045_p5 = pneg %p3044_p4 }
 0x77a   : > { %s2784_s24 = sand.u32 1, %s5199_s27  }
 0x77b   : > { %s2785_s18 = scalar_lea.sflag [#allocation7], %s2784_s24 }
 0x77c   : > { %3377 = dma.done.wait (%p3045_p5), %s2785_s18, 512  }
 0x77d   : > { %3379 = vsyncadd (%p3045_p5), %s2785_s18, 4294966784  ;;  %s19_s30 = sadd.s32 1, %s3418_s30   ;;  %s5201_s23 = sld [smem:[#allocation10_spill]] }
 0x77e   : > { %p16_p8 = scmp.ge.s32.totalorder %s19_s30, 10   ;;  %s5202_s29 = sld [smem:[#allocation18_spill]] }
 0x77f   : > { %s5203_s24 = sld [smem:[#allocation11_spill]]  ;;  %s5209_s21 = smov %s3386_s22 }
 0x780   : > { %s5204_s25 = sld [smem:[#allocation12_spill]] }
 0x781   : > { %s5205_s26 = sld [smem:[#allocation13_spill]] }
 0x782   : > { %s5206_s27 = sld [smem:[#allocation14_spill]] }
 0x783   : > { %s5207_s28 = sld [smem:[#allocation15_spill]]  ;;  %s5210_s22 = smov %s5201_s23 }
 0x784   : > { %s5208_s12 = sld [smem:[#allocation17_spill]]  ;;  %s5211_s23 = smov %s5202_s29 }
 0x786   :  { %18 = sbr.rel (!%p16_p8) target bundleno = 6 (0x6), region = 105 }
 0x78a   : > { %s5212_s29 = smov %s5208_s12 }
 0x78b   :  { %2791 = vsyncpa [#allocation7], 1 }
 0x78c   :  { %2793 = vsyncpa [#allocation7 + $0x1], 1 }

</bundles_post_ra>
